<compile_context>
chip_gen: v7x
topology: tpu7x:2x2x1
jax: 0.10.0
libtpu: 0.0.40
codegen_flags: <defaults>
</compile_context>

<pallas_src>
import jax
import jax.numpy as jnp
from jax.experimental import pallas as pl
from jax.experimental.pallas import tpu as pltpu


# --------------------------- hardware selection ----------------------------- #

def _tensorcores_per_chip():
    """v7x has 2 TensorCores per chip (split the pixel grid across them);
    v5e/v6e have 1 (grid steps are purely serial there -> use one step)."""
    try:
        kind = jax.devices()[0].device_kind.lower()
        if "v7" in kind or "7x" in kind:
            return 2
    except Exception:
        pass
    try:
        cv = getattr(pltpu.get_tpu_info(), "chip_version", None)
        if cv is not None and "7" in str(cv):
            return 2
    except Exception:
        pass
    return 1


# ----------------------------- Pallas kernel ------------------------------- #

def _make_fused_kernel(num_stages):
    """Fused (1x1 conv + folded-BN + ReLU) x num_stages on one pixel tile."""
    def kernel(x_ref, *refs):
        # refs = (w1, s1, w2, s2, ..., o_ref)
        # x_ref:  (tm, K0p)        pixel-rows x (padded) in-channels
        # wj:     (Kj_in, Kj_out)  conv weight^T with BN scale pre-folded
        # sj:     (1, Kj_out)      folded conv-bias + BN shift
        o_ref = refs[-1]
        h = x_ref[...]
        for j in range(num_stages):
            w = refs[2 * j][...]
            s = refs[2 * j + 1][...]
            h = jnp.dot(h, w, preferred_element_type=jnp.float32)
            h = jnp.maximum(h + s, 0.0)
        o_ref[...] = h.astype(o_ref.dtype)
    return kernel


_WEIGHTS_SINGLE_BUFFER_OK = None  # probed lazily on the first fused call


def plainnet_fused(x2d, ws, shifts, *, tm=None):
    """Run all PlainNet stages fused, on a (M, K0p) pixel-major tensor.

    ws[j]: (Kj_in, Kj_out) folded weights (stage-0 already K-padded),
    shifts[j]: (1, Kj_out) folded bias+BN shift.
    """
    global _WEIGHTS_SINGLE_BUFFER_OK

    M, K0p = x2d.shape
    assert K0p == ws[0].shape[0]
    num_stages = len(ws)
    N_last = int(ws[-1].shape[1])

    # Generation-tuned pixel tiling:
    #   1 TC (v5e/v6e): one grid step, tm = M.
    #   2 TC (v7x):     even 2-way split so both TensorCores get a tile.
    # Cap tm at 2048 rows (~8 MiB working set) so large spatial sizes still
    # fit the default scoped-VMEM budget on every generation.
    num_tc = _tensorcores_per_chip()
    if tm is None:
        tm = pl.cdiv(M, num_tc)
    tm_eff = min(2048, ((min(tm, M) + 7) // 8) * 8)
    Mp = pl.cdiv(M, tm_eff) * tm_eff
    if Mp != M:
        # Padded rows produce relu(shift) garbage; sliced off below.
        x2d = jnp.pad(x2d, ((0, Mp - M), (0, 0)))
    grid = (Mp // tm_eff,)

    operands = [x2d]
    for w, sh in zip(ws, shifts):
        operands += [w, sh]

    flops = 2 * Mp * sum(int(w.shape[0]) * int(w.shape[1]) for w in ws)
    bytes_accessed = (int(x2d.size)
                      + sum(int(w.size) for w in ws)
                      + sum(int(s.size) for s in shifts)
                      + Mp * N_last) * 4

    def run(single_buffer_weights):
        # Weights/shifts have a constant index_map -> double buffering buys
        # nothing; single-buffer them (VMEM hygiene, no useless buffer swaps).
        in_specs = [pl.BlockSpec((tm_eff, K0p), lambda i: (i, 0))]
        for w, _ in zip(ws, shifts):
            kin, kout = int(w.shape[0]), int(w.shape[1])
            if single_buffer_weights:
                in_specs.append(pl.BlockSpec((kin, kout), lambda i: (0, 0),
                                             pipeline_mode=pl.Buffered(1)))
                in_specs.append(pl.BlockSpec((1, kout), lambda i: (0, 0),
                                             pipeline_mode=pl.Buffered(1)))
            else:
                in_specs.append(pl.BlockSpec((kin, kout), lambda i: (0, 0)))
                in_specs.append(pl.BlockSpec((1, kout), lambda i: (0, 0)))
        return pl.pallas_call(
            _make_fused_kernel(num_stages),
            out_shape=jax.ShapeDtypeStruct((Mp, N_last), jnp.float32),
            grid_spec=pltpu.PrefetchScalarGridSpec(
                num_scalar_prefetch=0,
                grid=grid,
                in_specs=in_specs,
                out_specs=pl.BlockSpec((tm_eff, N_last), lambda i: (i, 0)),
            ),
            compiler_params=pltpu.CompilerParams(
                dimension_semantics=("parallel",)),
            cost_estimate=pl.CostEstimate(
                flops=flops, transcendentals=0, bytes_accessed=bytes_accessed),
        )(*operands)

    if _WEIGHTS_SINGLE_BUFFER_OK is None:
        try:
            out = jax.block_until_ready(run(True))
            _WEIGHTS_SINGLE_BUFFER_OK = True
            return out[:M] if Mp != M else out
        except Exception:
            _WEIGHTS_SINGLE_BUFFER_OK = False
    out = run(_WEIGHTS_SINGLE_BUFFER_OK)
    return out[:M] if Mp != M else out


# ------------------------- parameters & preparation ------------------------- #

def init_plainnet_params(key, input_channels=3, layer_cfg=(128, 128, 256)):
    params = []
    cin = input_channels
    for cout in layer_cfg:
        key, k1, k2, k3, k4, k5, k6 = jax.random.split(key, 7)
        params.append(dict(
            # Conv2d(cin, cout, kernel_size=1): weight (cout, cin, 1, 1) -> (cout, cin)
            w=jax.random.normal(k1, (cout, cin), jnp.float32) / jnp.sqrt(float(cin)),
            b=0.1 * jax.random.normal(k2, (cout,), jnp.float32),
            # BatchNorm2d(cout), eval mode (running statistics)
            gamma=1.0 + 0.1 * jax.random.normal(k3, (cout,), jnp.float32),
            beta=0.1 * jax.random.normal(k4, (cout,), jnp.float32),
            mean=0.1 * jax.random.normal(k5, (cout,), jnp.float32),
            var=jnp.abs(jax.random.normal(k6, (cout,), jnp.float32)) + 0.5,
        ))
        cin = cout
    return params


def prepare_plainnet_params(params, eps=1e-5):
    """One-time prep (hoisted out of the per-call path):
      * fold BN (eval) into the conv weight and an additive shift:
          y = x @ (W^T * scale) + ((b - mean) * scale + beta)
      * pad stage-0's K dim (C_in) up to a sublane multiple (>= 8).
    """
    ws, shifts = [], []
    for j, p in enumerate(params):
        scale = p["gamma"] / jnp.sqrt(p["var"] + eps)                     # (N,)
        w = p["w"].T * scale[None, :]                                     # (K, N)
        s = ((p["b"] - p["mean"]) * scale + p["beta"])[None, :]           # (1, N)
        if j == 0:
            k0 = w.shape[0]
            k0p = max(8, ((k0 + 7) // 8) * 8)
            if k0p != k0:
                w = jnp.pad(w, ((0, k0p - k0), (0, 0)))
        ws.append(w)
        shifts.append(s)
    return {"ws": ws, "shifts": shifts}


# --------------------------------- forward ---------------------------------- #

def plainnet_forward(x_nchw, prepared, *, channels_last=False):
    B, C, H, W = x_nchw.shape
    ws, shifts = prepared["ws"], prepared["shifts"]
    k0p = ws[0].shape[0]

    # NCHW -> (B*H*W, C): channel axis last (lane-dense) for the kernel.
    x2d = jnp.transpose(x_nchw, (0, 2, 3, 1)).reshape(B * H * W, C)
    if k0p != C:
        x2d = jnp.pad(x2d, ((0, 0), (0, k0p - C)))

    out2d = plainnet_fused(x2d, ws, shifts)
    c_out = ws[-1].shape[1]
    out_nhwc = out2d.reshape(B, H, W, c_out)
    if channels_last:
        # Skips the output transpose entirely (use when the consumer is
        # layout-agnostic or channels-last).
        return out_nhwc
    return jnp.transpose(out_nhwc, (0, 3, 1, 2))


def plainnet_reference(x_nchw, params, eps=1e-5):
    """Pure-JAX reference matching PyTorch Conv2d(1x1)+BN(eval)+ReLU."""
    x = x_nchw
    for p in params:
        y = jnp.einsum("bchw,oc->bohw", x, p["w"],
                       precision=jax.lax.Precision.HIGHEST) \
            + p["b"][None, :, None, None]
        y = (y - p["mean"][None, :, None, None]) \
            / jnp.sqrt(p["var"][None, :, None, None] + eps) \
            * p["gamma"][None, :, None, None] + p["beta"][None, :, None, None]
        x = jnp.maximum(y, 0.0)
    return x


# ---------------------------------- main ------------------------------------ #

if __name__ == "__main__":
    key = jax.random.PRNGKey(0)
    kp, kx = jax.random.split(key)

    B, C_in, H, W = 2, 3, 16, 16
    layer_cfg = (128, 128, 256)

    params = init_plainnet_params(kp, input_channels=C_in, layer_cfg=layer_cfg)
    # BN fold + weight pad done ONCE, outside the per-call path.
    prepared = jax.block_until_ready(prepare_plainnet_params(params))

    x = jax.random.normal(kx, (B, C_in, H, W), jnp.float32)

    out = jax.block_until_ready(plainnet_forward(x, prepared))

    ref = plainnet_reference(x, params)
    assert out.shape == (B, layer_cfg[-1], H, W), out.shape
    assert jnp.allclose(out, ref, atol=1e-4, rtol=1e-4), \
        float(jnp.max(jnp.abs(out - ref)))

    # Channels-last path (no output transpose) must match too.
    out_nhwc = jax.block_until_ready(plainnet_forward(x, prepared, channels_last=True))
    assert jnp.allclose(jnp.transpose(out_nhwc, (0, 3, 1, 2)), ref,
                        atol=1e-4, rtol=1e-4)

    print("KERNEL_OK")
</pallas_src>

<mosaic_0001>
module attributes {stable_mosaic.version = 11 : i64} {
  func.func @kernel(%arg0: i32, %arg1: memref<512x8xf32, #tpu.memory_space<vmem>>, %arg2: memref<8x128xf32, #tpu.memory_space<vmem>>, %arg3: memref<1x128xf32, #tpu.memory_space<vmem>>, %arg4: memref<128x128xf32, #tpu.memory_space<vmem>>, %arg5: memref<1x128xf32, #tpu.memory_space<vmem>>, %arg6: memref<128x256xf32, #tpu.memory_space<vmem>>, %arg7: memref<1x256xf32, #tpu.memory_space<vmem>>, %arg8: memref<512x256xf32, #tpu.memory_space<vmem>>) attributes {dimension_semantics = [#tpu.dimension_semantics<parallel>], iteration_bounds = array<i64: 1>, scalar_prefetch = 0 : i64, scratch_operands = 0 : i64, tpu.core_type = #tpu.core_type<tc>, window_params = [{transform_indices = @transform_0, window_bounds = array<i64: 512, 8>}, {pipeline_mode = #tpu.pipeline_mode<synchronous>, transform_indices = @transform_1, window_bounds = array<i64: 8, 128>}, {pipeline_mode = #tpu.pipeline_mode<synchronous>, transform_indices = @transform_2, window_bounds = array<i64: 1, 128>}, {pipeline_mode = #tpu.pipeline_mode<synchronous>, transform_indices = @transform_3, window_bounds = array<i64: 128, 128>}, {pipeline_mode = #tpu.pipeline_mode<synchronous>, transform_indices = @transform_4, window_bounds = array<i64: 1, 128>}, {pipeline_mode = #tpu.pipeline_mode<synchronous>, transform_indices = @transform_5, window_bounds = array<i64: 128, 256>}, {pipeline_mode = #tpu.pipeline_mode<synchronous>, transform_indices = @transform_6, window_bounds = array<i64: 1, 256>}, {transform_indices = @transform_7, window_bounds = array<i64: 512, 256>}]} {
    %c0 = arith.constant 0 : index
    %c0_0 = arith.constant 0 : index
    %0 = vector.load %arg1[%c0, %c0_0] : memref<512x8xf32, #tpu.memory_space<vmem>>, vector<512x8xf32>
    %c0_1 = arith.constant 0 : index
    %c0_2 = arith.constant 0 : index
    %1 = vector.load %arg2[%c0_1, %c0_2] : memref<8x128xf32, #tpu.memory_space<vmem>>, vector<8x128xf32>
    %c0_3 = arith.constant 0 : index
    %c0_4 = arith.constant 0 : index
    %2 = vector.load %arg3[%c0_3, %c0_4] : memref<1x128xf32, #tpu.memory_space<vmem>>, vector<1x128xf32>
    %cst = arith.constant dense<0.000000e+00> : vector<512x128xf32>
    %3 = tpu.matmul %0, %1, %cst {dimension_numbers = #tpu.dot_dimension_numbers<[1], [0], [0], [1], [0, 0, 1, 1], [], []>} : vector<512x8xf32>, vector<8x128xf32>, vector<512x128xf32> -> vector<512x128xf32>
    %4 = vector.broadcast %2 : vector<1x128xf32> to vector<512x128xf32>
    %5 = arith.addf %3, %4 : vector<512x128xf32>
    %cst_5 = arith.constant 0.000000e+00 : f32
    %6 = vector.broadcast %cst_5 : f32 to vector<512x128xf32>
    %7 = arith.maximumf %5, %6 : vector<512x128xf32>
    %c0_6 = arith.constant 0 : index
    %c0_7 = arith.constant 0 : index
    %8 = vector.load %arg4[%c0_6, %c0_7] : memref<128x128xf32, #tpu.memory_space<vmem>>, vector<128x128xf32>
    %c0_8 = arith.constant 0 : index
    %c0_9 = arith.constant 0 : index
    %9 = vector.load %arg5[%c0_8, %c0_9] : memref<1x128xf32, #tpu.memory_space<vmem>>, vector<1x128xf32>
    %cst_10 = arith.constant dense<0.000000e+00> : vector<512x128xf32>
    %10 = tpu.matmul %7, %8, %cst_10 {dimension_numbers = #tpu.dot_dimension_numbers<[1], [0], [0], [1], [0, 0, 1, 1], [], []>} : vector<512x128xf32>, vector<128x128xf32>, vector<512x128xf32> -> vector<512x128xf32>
    %11 = vector.broadcast %9 : vector<1x128xf32> to vector<512x128xf32>
    %12 = arith.addf %10, %11 : vector<512x128xf32>
    %cst_11 = arith.constant 0.000000e+00 : f32
    %13 = vector.broadcast %cst_11 : f32 to vector<512x128xf32>
    %14 = arith.maximumf %12, %13 : vector<512x128xf32>
    %c0_12 = arith.constant 0 : index
    %c0_13 = arith.constant 0 : index
    %15 = vector.load %arg6[%c0_12, %c0_13] : memref<128x256xf32, #tpu.memory_space<vmem>>, vector<128x256xf32>
    %c0_14 = arith.constant 0 : index
    %c0_15 = arith.constant 0 : index
    %16 = vector.load %arg7[%c0_14, %c0_15] : memref<1x256xf32, #tpu.memory_space<vmem>>, vector<1x256xf32>
    %cst_16 = arith.constant dense<0.000000e+00> : vector<512x256xf32>
    %17 = tpu.matmul %14, %15, %cst_16 {dimension_numbers = #tpu.dot_dimension_numbers<[1], [0], [0], [1], [0, 0, 1, 1], [], []>} : vector<512x128xf32>, vector<128x256xf32>, vector<512x256xf32> -> vector<512x256xf32>
    %18 = vector.broadcast %16 : vector<1x256xf32> to vector<512x256xf32>
    %19 = arith.addf %17, %18 : vector<512x256xf32>
    %cst_17 = arith.constant 0.000000e+00 : f32
    %20 = vector.broadcast %cst_17 : f32 to vector<512x256xf32>
    %21 = arith.maximumf %19, %20 : vector<512x256xf32>
    %c0_18 = arith.constant 0 : index
    %c0_19 = arith.constant 0 : index
    %22 = vector.load %arg8[%c0_18, %c0_19] : memref<512x256xf32, #tpu.memory_space<vmem>>, vector<512x256xf32>
    tpu.vector_store %arg8[%c0_18, %c0_19], %21 {strides = array<i32>} : memref<512x256xf32, #tpu.memory_space<vmem>>, vector<512x256xf32>,
    return
  }
  func.func @transform_0(%arg0: i32) -> (i32, i32) {
    %c0_i32 = arith.constant 0 : i32
    %c0_i32_0 = arith.constant 0 : i32
    return %arg0, %c0_i32 : i32, i32
  }
  func.func @transform_1(%arg0: i32) -> (i32, i32) {
    %c0_i32 = arith.constant 0 : i32
    %c0_i32_0 = arith.constant 0 : i32
    %c0_i32_1 = arith.constant 0 : i32
    return %c0_i32, %c0_i32_0 : i32, i32
  }
  func.func @transform_2(%arg0: i32) -> (i32, i32) {
    %c0_i32 = arith.constant 0 : i32
    %c0_i32_0 = arith.constant 0 : i32
    %c0_i32_1 = arith.constant 0 : i32
    return %c0_i32, %c0_i32_0 : i32, i32
  }
  func.func @transform_3(%arg0: i32) -> (i32, i32) {
    %c0_i32 = arith.constant 0 : i32
    %c0_i32_0 = arith.constant 0 : i32
    %c0_i32_1 = arith.constant 0 : i32
    return %c0_i32, %c0_i32_0 : i32, i32
  }
  func.func @transform_4(%arg0: i32) -> (i32, i32) {
    %c0_i32 = arith.constant 0 : i32
    %c0_i32_0 = arith.constant 0 : i32
    %c0_i32_1 = arith.constant 0 : i32
    return %c0_i32, %c0_i32_0 : i32, i32
  }
  func.func @transform_5(%arg0: i32) -> (i32, i32) {
    %c0_i32 = arith.constant 0 : i32
    %c0_i32_0 = arith.constant 0 : i32
    %c0_i32_1 = arith.constant 0 : i32
    return %c0_i32, %c0_i32_0 : i32, i32
  }
  func.func @transform_6(%arg0: i32) -> (i32, i32) {
    %c0_i32 = arith.constant 0 : i32
    %c0_i32_0 = arith.constant 0 : i32
    %c0_i32_1 = arith.constant 0 : i32
    return %c0_i32, %c0_i32_0 : i32, i32
  }
  func.func @transform_7(%arg0: i32) -> (i32, i32) {
    %c0_i32 = arith.constant 0 : i32
    %c0_i32_0 = arith.constant 0 : i32
    return %arg0, %c0_i32 : i32, i32
  }
}

module attributes {stable_mosaic.version = 11 : i64} {
  func.func @kernel(%arg0: i32, %arg1: memref<512x8xf32, #tpu.memory_space<vmem>>, %arg2: memref<8x128xf32, #tpu.memory_space<vmem>>, %arg3: memref<1x128xf32, #tpu.memory_space<vmem>>, %arg4: memref<128x128xf32, #tpu.memory_space<vmem>>, %arg5: memref<1x128xf32, #tpu.memory_space<vmem>>, %arg6: memref<128x256xf32, #tpu.memory_space<vmem>>, %arg7: memref<1x256xf32, #tpu.memory_space<vmem>>, %arg8: memref<512x256xf32, #tpu.memory_space<vmem>>) attributes {dimension_semantics = [#tpu.dimension_semantics<parallel>], iteration_bounds = array<i64: 1>, scalar_prefetch = 0 : i64, scratch_operands = 0 : i64, tpu.core_type = #tpu.core_type<tc>, window_params = [{transform_indices = @transform_0, window_bounds = array<i64: 512, 8>}, {pipeline_mode = #tpu.pipeline_mode<synchronous>, transform_indices = @transform_1, window_bounds = array<i64: 8, 128>}, {pipeline_mode = #tpu.pipeline_mode<synchronous>, transform_indices = @transform_2, window_bounds = array<i64: 1, 128>}, {pipeline_mode = #tpu.pipeline_mode<synchronous>, transform_indices = @transform_3, window_bounds = array<i64: 128, 128>}, {pipeline_mode = #tpu.pipeline_mode<synchronous>, transform_indices = @transform_4, window_bounds = array<i64: 1, 128>}, {pipeline_mode = #tpu.pipeline_mode<synchronous>, transform_indices = @transform_5, window_bounds = array<i64: 128, 256>}, {pipeline_mode = #tpu.pipeline_mode<synchronous>, transform_indices = @transform_6, window_bounds = array<i64: 1, 256>}, {transform_indices = @transform_7, window_bounds = array<i64: 512, 256>}]} {
    %c0 = arith.constant 0 : index
    %c0_0 = arith.constant 0 : index
    %0 = vector.load %arg1[%c0, %c0_0] : memref<512x8xf32, #tpu.memory_space<vmem>>, vector<512x8xf32>
    %c0_1 = arith.constant 0 : index
    %c0_2 = arith.constant 0 : index
    %1 = vector.load %arg2[%c0_1, %c0_2] : memref<8x128xf32, #tpu.memory_space<vmem>>, vector<8x128xf32>
    %c0_3 = arith.constant 0 : index
    %c0_4 = arith.constant 0 : index
    %2 = vector.load %arg3[%c0_3, %c0_4] : memref<1x128xf32, #tpu.memory_space<vmem>>, vector<1x128xf32>
    %cst = arith.constant dense<0.000000e+00> : vector<512x128xf32>
    %3 = tpu.matmul %0, %1, %cst {dimension_numbers = #tpu.dot_dimension_numbers<[1], [0], [0], [1], [0, 0, 1, 1], [], []>} : vector<512x8xf32>, vector<8x128xf32>, vector<512x128xf32> -> vector<512x128xf32>
    %4 = vector.broadcast %2 : vector<1x128xf32> to vector<512x128xf32>
    %5 = arith.addf %3, %4 : vector<512x128xf32>
    %cst_5 = arith.constant 0.000000e+00 : f32
    %6 = vector.broadcast %cst_5 : f32 to vector<512x128xf32>
    %7 = arith.maximumf %5, %6 : vector<512x128xf32>
    %c0_6 = arith.constant 0 : index
    %c0_7 = arith.constant 0 : index
    %8 = vector.load %arg4[%c0_6, %c0_7] : memref<128x128xf32, #tpu.memory_space<vmem>>, vector<128x128xf32>
    %c0_8 = arith.constant 0 : index
    %c0_9 = arith.constant 0 : index
    %9 = vector.load %arg5[%c0_8, %c0_9] : memref<1x128xf32, #tpu.memory_space<vmem>>, vector<1x128xf32>
    %cst_10 = arith.constant dense<0.000000e+00> : vector<512x128xf32>
    %10 = tpu.matmul %7, %8, %cst_10 {dimension_numbers = #tpu.dot_dimension_numbers<[1], [0], [0], [1], [0, 0, 1, 1], [], []>} : vector<512x128xf32>, vector<128x128xf32>, vector<512x128xf32> -> vector<512x128xf32>
    %11 = vector.broadcast %9 : vector<1x128xf32> to vector<512x128xf32>
    %12 = arith.addf %10, %11 : vector<512x128xf32>
    %cst_11 = arith.constant 0.000000e+00 : f32
    %13 = vector.broadcast %cst_11 : f32 to vector<512x128xf32>
    %14 = arith.maximumf %12, %13 : vector<512x128xf32>
    %c0_12 = arith.constant 0 : index
    %c0_13 = arith.constant 0 : index
    %15 = vector.load %arg6[%c0_12, %c0_13] : memref<128x256xf32, #tpu.memory_space<vmem>>, vector<128x256xf32>
    %c0_14 = arith.constant 0 : index
    %c0_15 = arith.constant 0 : index
    %16 = vector.load %arg7[%c0_14, %c0_15] : memref<1x256xf32, #tpu.memory_space<vmem>>, vector<1x256xf32>
    %cst_16 = arith.constant dense<0.000000e+00> : vector<512x256xf32>
    %17 = tpu.matmul %14, %15, %cst_16 {dimension_numbers = #tpu.dot_dimension_numbers<[1], [0], [0], [1], [0, 0, 1, 1], [], []>} : vector<512x128xf32>, vector<128x256xf32>, vector<512x256xf32> -> vector<512x256xf32>
    %18 = vector.broadcast %16 : vector<1x256xf32> to vector<512x256xf32>
    %19 = arith.addf %17, %18 : vector<512x256xf32>
    %cst_17 = arith.constant 0.000000e+00 : f32
    %20 = vector.broadcast %cst_17 : f32 to vector<512x256xf32>
    %21 = arith.maximumf %19, %20 : vector<512x256xf32>
    %c0_18 = arith.constant 0 : index
    %c0_19 = arith.constant 0 : index
    %22 = vector.load %arg8[%c0_18, %c0_19] : memref<512x256xf32, #tpu.memory_space<vmem>>, vector<512x256xf32>
    tpu.vector_store %arg8[%c0_18, %c0_19], %21 {strides = array<i32>} : memref<512x256xf32, #tpu.memory_space<vmem>>, vector<512x256xf32>,
    return
  }
  func.func @transform_0(%arg0: i32) -> (i32, i32) {
    %c0_i32 = arith.constant 0 : i32
    %c0_i32_0 = arith.constant 0 : i32
    return %arg0, %c0_i32 : i32, i32
  }
  func.func @transform_1(%arg0: i32) -> (i32, i32) {
    %c0_i32 = arith.constant 0 : i32
    %c0_i32_0 = arith.constant 0 : i32
    %c0_i32_1 = arith.constant 0 : i32
    return %c0_i32, %c0_i32_0 : i32, i32
  }
  func.func @transform_2(%arg0: i32) -> (i32, i32) {
    %c0_i32 = arith.constant 0 : i32
    %c0_i32_0 = arith.constant 0 : i32
    %c0_i32_1 = arith.constant 0 : i32
    return %c0_i32, %c0_i32_0 : i32, i32
  }
  func.func @transform_3(%arg0: i32) -> (i32, i32) {
    %c0_i32 = arith.constant 0 : i32
    %c0_i32_0 = arith.constant 0 : i32
    %c0_i32_1 = arith.constant 0 : i32
    return %c0_i32, %c0_i32_0 : i32, i32
  }
  func.func @transform_4(%arg0: i32) -> (i32, i32) {
    %c0_i32 = arith.constant 0 : i32
    %c0_i32_0 = arith.constant 0 : i32
    %c0_i32_1 = arith.constant 0 : i32
    return %c0_i32, %c0_i32_0 : i32, i32
  }
  func.func @transform_5(%arg0: i32) -> (i32, i32) {
    %c0_i32 = arith.constant 0 : i32
    %c0_i32_0 = arith.constant 0 : i32
    %c0_i32_1 = arith.constant 0 : i32
    return %c0_i32, %c0_i32_0 : i32, i32
  }
  func.func @transform_6(%arg0: i32) -> (i32, i32) {
    %c0_i32 = arith.constant 0 : i32
    %c0_i32_0 = arith.constant 0 : i32
    %c0_i32_1 = arith.constant 0 : i32
    return %c0_i32, %c0_i32_0 : i32, i32
  }
  func.func @transform_7(%arg0: i32) -> (i32, i32) {
    %c0_i32 = arith.constant 0 : i32
    %c0_i32_0 = arith.constant 0 : i32
    return %arg0, %c0_i32 : i32, i32
  }
}

</mosaic_0001>

<bundles_post_ra>
// kernel: tpu_custom_call.1
= control target key start
LH: loop header
LB: loop body
LE: loop exit
PB: predicated region body
PF: predicated region fallthrough
CT: control target
= control target key end

     0   :  { %vm99_vm0 = vcmask 64512   ;;  %s3416_s0 = inlined_call_operand.vmem [shape: f32[512,8], index: 0, kind: input, shape index: {}]   ;;  %s3417_s1 = inlined_call_operand.vmem [shape: f32[8,128], index: 1, kind: input, shape index: {}]   ;;  %s3418_s2 = inlined_call_operand.vmem [shape: f32[1,128], index: 2, kind: input, shape index: {}]   ;;  %s3419_s3 = inlined_call_operand.vmem [shape: f32[128,128], index: 3, kind: input, shape index: {}]   ;;  %s3420_s4 = inlined_call_operand.vmem [shape: f32[1,128], index: 4, kind: input, shape index: {}]   ;;  %s3421_s5 = inlined_call_operand.vmem [shape: f32[128,256], index: 5, kind: input, shape index: {}]   ;;  %s3422_s6 = inlined_call_operand.vmem [shape: f32[1,256], index: 6, kind: input, shape index: {}]   ;;  %s3423_s7 = inlined_call_operand.hbm [shape: f32[512,256], index: 7, kind: output, shape index: {}]  }
   0x1   :  { %v91_v0 = vld [vmem:[%s3417_s1] sm:$0xff]  ;;  %v28_v2 = vld [vmem:[%s3416_s0 + $0x8] sm:$0xff]  ;;  %v29_v3 = vld [vmem:[%s3416_s0 + $0x10] sm:$0xff] }
   0x2   :  { %v27_v1 = vld [vmem:[%s3416_s0] sm:$0xff]  ;;  %2189 = vmatprep.subr.mxu0 %v91_v0  ;;  %v30_v4 = vld [vmem:[%s3416_s0 + $0x18] sm:$0xff]  ;;  %v32_v6 = vld [vmem:[%s3416_s0 + $0x28] sm:$0xff] }
   0x3   :  { %2191 = vmatprep.mubr.msk.f32.mxu0 %vm99_vm0, %v27_v1  ;;  %2190 = vmatpush3.msra.mxu0 %v91_v0  ;;  %v31_v5 = vld [vmem:[%s3416_s0 + $0x20] sm:$0xff]  ;;  %v33_v7 = vld [vmem:[%s3416_s0 + $0x30] sm:$0xff]  ;;  %v34_v8 = vld [vmem:[%s3416_s0 + $0x38] sm:$0xff] }
   0x4   :  { %2192 = vmatmul.mubr.msk.f32.vlgmr.msra.gmra.mrb[0].mxu0 %vm99_vm0, %v28_v2  ;;  %v35_v9 = vld [vmem:[%s3416_s0 + $0x40] sm:$0xff]  ;;  %v36_v10 = vld [vmem:[%s3416_s0 + $0x48] sm:$0xff]  ;;  %v37_v11 = vld [vmem:[%s3416_s0 + $0x50] sm:$0xff] }
   0x5   :  { %2194 = vmatprep.mubr.msk.f32.mxu0 %vm99_vm0, %v29_v3  ;;  %v38_v12 = vld [vmem:[%s3416_s0 + $0x58] sm:$0xff]  ;;  %v39_v13 = vld [vmem:[%s3416_s0 + $0x60] sm:$0xff]  ;;  %v742_v15 = vld [vmem:[%s3419_s3 + $0x8] sm:$0xff] }
   0x6   :  { %v741_v14 = vld [vmem:[%s3419_s3] sm:$0xff]  ;;  %v743_v16 = vld [vmem:[%s3419_s3 + $0x10] sm:$0xff]  ;;  %v744_v17 = vld [vmem:[%s3419_s3 + $0x18] sm:$0xff] }
   0x7   :  { %v2415_v18 = vpack.c.bf16 %v742_v15, %v741_v14  ;;  %v2419_v19 = vpack.c.bf16 %v744_v17, %v743_v16  ;;  %v40_v20 = vld [vmem:[%s3416_s0 + $0x68] sm:$0xff]  ;;  %v745_v21 = vld [vmem:[%s3419_s3 + $0x20] sm:$0xff]  ;;  %v41_v23 = vld [vmem:[%s3416_s0 + $0x70] sm:$0xff] }
   0x8   :  { %2195 = vmatmul.mubr.msk.f32.gmra.mrb[2].mxu0 %vm99_vm0, %v30_v4  ;;  %v746_v22 = vld [vmem:[%s3419_s3 + $0x28] sm:$0xff] }
   0x9   :  { %2197 = vmatprep.mubr.msk.f32.mxu0 %vm99_vm0, %v31_v5  ;;  %2416 = vmatprep.subr.bf16.mxu1 %v2415_v18 }
   0xa   :  { %2418 = vmatpush3.bf16.msra.mxu1 %v2415_v18 }
   0xc   :  { %2198 = vmatmul.mubr.msk.f32.gmra.mrb[4].mxu0 %vm99_vm0, %v32_v6 }
   0xd   :  { %2200 = vmatprep.mubr.msk.f32.mxu0 %vm99_vm0, %v33_v7 }
  0x10   :  { %2201 = vmatmul.mubr.msk.f32.gmra.mrb[6].mxu0 %vm99_vm0, %v34_v8 }
  0x11   :  { %2203 = vmatprep.mubr.msk.f32.mxu0 %vm99_vm0, %v35_v9 }
  0x14   :  { %2204 = vmatmul.mubr.msk.f32.gmra.mrb[8].mxu0 %vm99_vm0, %v36_v10 }
  0x15   :  { %2206 = vmatprep.mubr.msk.f32.mxu0 %vm99_vm0, %v37_v11 }
  0x18   :  { %2207 = vmatmul.mubr.msk.f32.gmra.mrb[10].mxu0 %vm99_vm0, %v38_v12 }
  0x19   :  { %2209 = vmatprep.mubr.msk.f32.mxu0 %vm99_vm0, %v39_v13 }
  0x1a   :  { %12 = vsyncpa [#allocation3], 0  ;;  %2420 = vmatprep.subr.bf16.mxu1 %v2419_v19  ;;  %v2423_v24 = vpack.c.bf16 %v746_v22, %v745_v21  ;;  %v42_v25 = vld [vmem:[%s3416_s0 + $0x78] sm:$0xff]  ;;  %v747_v26 = vld [vmem:[%s3419_s3 + $0x30] sm:$0xff] }
  0x1b   :  { %v748_v27 = vld [vmem:[%s3419_s3 + $0x38] sm:$0xff]  ;;  %v43_v28 = vld [vmem:[%s3416_s0 + $0x80] sm:$0xff]  ;;  %2422 = vmatpush3.bf16.msra.mxu1 %v2419_v19  ;;  %v44_v30 = vld [vmem:[%s3416_s0 + $0x88] sm:$0xff] }
  0x1c   :  { %2210 = vmatmul.mubr.msk.f32.gmra.mrb[12].mxu0 %vm99_vm0, %v40_v20  ;;  %2424 = vmatprep.subr.bf16.mxu1 %v2423_v24  ;;  %v2427_v29 = vpack.c.bf16 %v748_v27, %v747_v26  ;;  %v749_v31 = vld [vmem:[%s3419_s3 + $0x40] sm:$0xff]  ;;  %v750_v32 = vld [vmem:[%s3419_s3 + $0x48] sm:$0xff]  ;;  %v45_v33 = vld [vmem:[%s3416_s0 + $0x90] sm:$0xff] }
  0x1d   :  { %2212 = vmatprep.mubr.msk.f32.mxu0 %vm99_vm0, %v41_v23  ;;  %v2431_v34 = vpack.c.bf16 %v750_v32, %v749_v31  ;;  %v46_v35 = vld [vmem:[%s3416_s0 + $0x98] sm:$0xff]  ;;  %v751_v36 = vld [vmem:[%s3419_s3 + $0x50] sm:$0xff]  ;;  %v47_v38 = vld [vmem:[%s3416_s0 + $0xa0] sm:$0xff] }
  0x1e   :  { %v752_v37 = vld [vmem:[%s3419_s3 + $0x58] sm:$0xff]  ;;  %v48_v40 = vld [vmem:[%s3416_s0 + $0xa8] sm:$0xff]  ;;  %v753_v41 = vld [vmem:[%s3419_s3 + $0x60] sm:$0xff] }
  0x1f   :  { %2426 = vmatpush3.bf16.msra.mxu1 %v2423_v24  ;;  %v2435_v39 = vpack.c.bf16 %v752_v37, %v751_v36  ;;  %v754_v42 = vld [vmem:[%s3419_s3 + $0x68] sm:$0xff]  ;;  %v49_v43 = vld [vmem:[%s3416_s0 + $0xb0] sm:$0xff]  ;;  %v50_v45 = vld [vmem:[%s3416_s0 + $0xb8] sm:$0xff] }
  0x20   :  { %2213 = vmatmul.mubr.msk.f32.gmra.mrb[14].mxu0 %vm99_vm0, %v42_v25  ;;  %2428 = vmatprep.subr.bf16.mxu1 %v2427_v29  ;;  %v2439_v44 = vpack.c.bf16 %v754_v42, %v753_v41  ;;  %v51_v46 = vld [vmem:[%s3416_s0 + $0xc0] sm:$0xff]  ;;  %v52_v47 = vld [vmem:[%s3416_s0 + $0xc8] sm:$0xff]  ;;  %v53_v48 = vld [vmem:[%s3416_s0 + $0xd0] sm:$0xff] }
  0x21   :  { %2215 = vmatprep.mubr.msk.f32.mxu0 %vm99_vm0, %v43_v28  ;;  %v54_v49 = vld [vmem:[%s3416_s0 + $0xd8] sm:$0xff]  ;;  %v55_v50 = vld [vmem:[%s3416_s0 + $0xe0] sm:$0xff]  ;;  %v56_v51 = vld [vmem:[%s3416_s0 + $0xe8] sm:$0xff] }
  0x22   :  { %v57_v52 = vld [vmem:[%s3416_s0 + $0xf0] sm:$0xff]  ;;  %v58_v53 = vld [vmem:[%s3416_s0 + $0xf8] sm:$0xff]  ;;  %v59_v54 = vld [vmem:[%s3416_s0 + $0x100] sm:$0xff] }
  0x23   :  { %2430 = vmatpush3.bf16.msra.mxu1 %v2427_v29  ;;  %v60_v55 = vld [vmem:[%s3416_s0 + $0x108] sm:$0xff]  ;;  %v61_v56 = vld [vmem:[%s3416_s0 + $0x110] sm:$0xff]  ;;  %v62_v57 = vld [vmem:[%s3416_s0 + $0x118] sm:$0xff] }
  0x24   :  { %2216 = vmatmul.mubr.msk.f32.gmra.mrb[16].mxu0 %vm99_vm0, %v44_v30  ;;  %2432 = vmatprep.subr.bf16.mxu1 %v2431_v34  ;;  %v63_v58 = vld [vmem:[%s3416_s0 + $0x120] sm:$0xff]  ;;  %v64_v59 = vld [vmem:[%s3416_s0 + $0x128] sm:$0xff]  ;;  %v65_v60 = vld [vmem:[%s3416_s0 + $0x130] sm:$0xff] }
  0x25   :  { %2218 = vmatprep.mubr.msk.f32.mxu0 %vm99_vm0, %v45_v33  ;;  %v66_v61 = vld [vmem:[%s3416_s0 + $0x138] sm:$0xff]  ;;  %v67_v62 = vld [vmem:[%s3416_s0 + $0x140] sm:$0xff]  ;;  %v68_v63 = vld [vmem:[%s3416_s0 + $0x148] sm:$0xff] }
  0x26   :  { %v69_v0 = vld [vmem:[%s3416_s0 + $0x150] sm:$0xff]  ;;  %v70_v1 = vld [vmem:[%s3416_s0 + $0x158] sm:$0xff]  ;;  %v71_v2 = vld [vmem:[%s3416_s0 + $0x160] sm:$0xff] }
  0x27   :  { %2434 = vmatpush3.bf16.msra.mxu1 %v2431_v34  ;;  %v755_v3 = vld [vmem:[%s3419_s3 + $0x70] sm:$0xff]  ;;  %v756_v4 = vld [vmem:[%s3419_s3 + $0x78] sm:$0xff]  ;;  %v72_v6 = vld [vmem:[%s3416_s0 + $0x168] sm:$0xff] }
  0x28   :  { %2219 = vmatmul.mubr.msk.f32.gmra.mrb[18].mxu0 %vm99_vm0, %v46_v35  ;;  %2436 = vmatprep.subr.bf16.mxu1 %v2435_v39  ;;  %v2443_v5 = vpack.c.bf16 %v756_v4, %v755_v3  ;;  %v73_v7 = vld [vmem:[%s3416_s0 + $0x170] sm:$0xff]  ;;  %v74_v8 = vld [vmem:[%s3416_s0 + $0x178] sm:$0xff]  ;;  %v75_v9 = vld [vmem:[%s3416_s0 + $0x180] sm:$0xff] }
  0x29   :  { %2221 = vmatprep.mubr.msk.f32.mxu0 %vm99_vm0, %v47_v38  ;;  %v76_v10 = vld [vmem:[%s3416_s0 + $0x188] sm:$0xff]  ;;  %v77_v11 = vld [vmem:[%s3416_s0 + $0x190] sm:$0xff]  ;;  %v78_v12 = vld [vmem:[%s3416_s0 + $0x198] sm:$0xff] }
  0x2a   :  { %v79_v13 = vld [vmem:[%s3416_s0 + $0x1a0] sm:$0xff]  ;;  %v80_v14 = vld [vmem:[%s3416_s0 + $0x1a8] sm:$0xff]  ;;  %v81_v15 = vld [vmem:[%s3416_s0 + $0x1b0] sm:$0xff] }
  0x2b   :  { %2438 = vmatpush3.bf16.msra.mxu1 %v2435_v39  ;;  %v82_v16 = vld [vmem:[%s3416_s0 + $0x1b8] sm:$0xff]  ;;  %v83_v17 = vld [vmem:[%s3416_s0 + $0x1c0] sm:$0xff]  ;;  %v84_v18 = vld [vmem:[%s3416_s0 + $0x1c8] sm:$0xff] }
  0x2c   :  { %2222 = vmatmul.mubr.msk.f32.gmra.mrb[20].mxu0 %vm99_vm0, %v48_v40  ;;  %2440 = vmatprep.subr.bf16.mxu1 %v2439_v44  ;;  %v85_v19 = vld [vmem:[%s3416_s0 + $0x1d0] sm:$0xff]  ;;  %v86_v20 = vld [vmem:[%s3416_s0 + $0x1d8] sm:$0xff]  ;;  %v87_v21 = vld [vmem:[%s3416_s0 + $0x1e0] sm:$0xff] }
  0x2d   :  { %2224 = vmatprep.mubr.msk.f32.mxu0 %vm99_vm0, %v49_v43  ;;  %v88_v22 = vld [vmem:[%s3416_s0 + $0x1e8] sm:$0xff]  ;;  %v89_v23 = vld [vmem:[%s3416_s0 + $0x1f0] sm:$0xff]  ;;  %v90_v24 = vld [vmem:[%s3416_s0 + $0x1f8] sm:$0xff] }
  0x2e   :  { %v1214_v25 = vld [vmem:[%s3421_s5 + $0x8] sm:$0xff]  ;;  %v1216_v26 = vld [vmem:[%s3421_s5 + $0x18] sm:$0xff]  ;;  %v1213_v27 = vld [vmem:[%s3421_s5] sm:$0xff] }
  0x2f   :  { %2442 = vmatpush3.bf16.msra.mxu1 %v2439_v44  ;;  %v2447_v28 = vpack.c.bf16 %v1216_v26, %v1214_v25  ;;  %v1215_v29 = vld [vmem:[%s3421_s5 + $0x10] sm:$0xff]  ;;  %v1218_v31 = vld [vmem:[%s3421_s5 + $0x28] sm:$0xff]  ;;  %v1220_v32 = vld [vmem:[%s3421_s5 + $0x38] sm:$0xff] }
  0x30   :  { %2225 = vmatmul.mubr.msk.f32.gmra.mrb[22].mxu0 %vm99_vm0, %v50_v45  ;;  %2444 = vmatprep.subr.bf16.mxu1 %v2443_v5  ;;  %v2449_v30 = vpack.c.bf16 %v1215_v29, %v1213_v27  ;;  %v1217_v33 = vld [vmem:[%s3421_s5 + $0x20] sm:$0xff]  ;;  %v2451_v34 = vpack.c.bf16 %v1220_v32, %v1218_v31  ;;  %v1219_v35 = vld [vmem:[%s3421_s5 + $0x30] sm:$0xff]  ;;  %v1222_v37 = vld [vmem:[%s3421_s5 + $0x48] sm:$0xff] }
  0x31   :  { %2227 = vmatprep.mubr.msk.f32.mxu0 %vm99_vm0, %v51_v46  ;;  %2448 = vmatprep.subr.bf16.mxu0 %v2447_v28  ;;  %v2453_v36 = vpack.c.bf16 %v1219_v35, %v1217_v33  ;;  %v1224_v38 = vld [vmem:[%s3421_s5 + $0x58] sm:$0xff]  ;;  %v1221_v39 = vld [vmem:[%s3421_s5 + $0x40] sm:$0xff]  ;;  %v1223_v41 = vld [vmem:[%s3421_s5 + $0x50] sm:$0xff] }
  0x32   :  { %2450 = vmatpush1.bf16.msra.mxu0 %v2449_v30  ;;  %v2455_v40 = vpack.c.bf16 %v1224_v38, %v1222_v37  ;;  %v2913_v42 = vld [vmem:[%s3418_s2] ss:$0 sm:$0xff]  ;;  %v2915_v43 = vpack.c.bf16 %v1223_v41, %v1221_v39 }
  0x33   :  { %2446 = vmatpush3.bf16.msra.mxu1 %v2443_v5  ;;  %2452 = vmatprep.subr.bf16.mxu0 %v2451_v34 }
  0x34   :  { %2228 = vmatmul.mubr.msk.f32.gmra.mrb[24].mxu0 %vm99_vm0, %v52_v47  ;;  %2479 = vmatprep.subr.bf16.mxu1 %v2447_v28 }
  0x35   :  { %2230 = vmatprep.mubr.msk.f32.mxu0 %vm99_vm0, %v53_v48  ;;  %v1226_v48 = vld [vmem:[%s3421_s5 + $0x68] sm:$0xff] }
  0x36   :  { %2454 = vmatpush1.bf16.msra.mxu0 %v2453_v36 }
  0x37   :  { %2456 = vmatprep.subr.bf16.mxu0 %v2455_v40 }
  0x38   :  { %2231 = vmatmul.mubr.msk.f32.gmra.mrb[26].mxu0 %vm99_vm0, %v54_v49  ;;  %v1228_v49 = vld [vmem:[%s3421_s5 + $0x78] sm:$0xff] }
  0x39   :  { %2233 = vmatprep.mubr.msk.f32.mxu0 %vm99_vm0, %v55_v50  ;;  %v1225_v50 = vld [vmem:[%s3421_s5 + $0x60] sm:$0xff] }
  0x3a   :  { %2458 = vmatpush1.bf16.msra.mxu0 %v2915_v43 }
  0x3c   :  { %2234 = vmatmul.mubr.msk.f32.gmra.mrb[28].mxu0 %vm99_vm0, %v56_v51 }
  0x3d   :  { %2236 = vmatprep.mubr.msk.f32.mxu0 %vm99_vm0, %v57_v52 }
  0x40   :  { %2237 = vmatmul.mubr.msk.f32.gmra.mrb[30].mxu0 %vm99_vm0, %v58_v53  ;;  %v2459_v53 = vpack.c.bf16 %v1228_v49, %v1226_v48 }
  0x41   :  { %2239 = vmatprep.mubr.msk.f32.mxu0 %vm99_vm0, %v59_v54  ;;  %v1227_v54 = vld [vmem:[%s3421_s5 + $0x70] sm:$0xff] }
  0x42   :  { %2460 = vmatprep.subr.bf16.mxu0 %v2459_v53 }
  0x44   :  { %2240 = vmatmul.mubr.msk.f32.gmra.mrb[32].mxu0 %vm99_vm0, %v60_v55  ;;  %v1230_v55 = vld [vmem:[%s3421_s5 + $0x88] sm:$0xff] }
  0x45   :  { %2242 = vmatprep.mubr.msk.f32.mxu0 %vm99_vm0, %v61_v56  ;;  %v1232_v56 = vld [vmem:[%s3421_s5 + $0x98] sm:$0xff] }
  0x48   :  { %2243 = vmatmul.mubr.msk.f32.gmra.mrb[34].mxu0 %vm99_vm0, %v62_v57 }
  0x49   :  { %2245 = vmatprep.mubr.msk.f32.mxu0 %vm99_vm0, %v63_v58 }
  0x4c   :  { %2246 = vmatmul.mubr.msk.f32.gmra.mrb[36].mxu0 %vm99_vm0, %v64_v59 }
  0x4d   :  { %2248 = vmatprep.mubr.msk.f32.mxu0 %vm99_vm0, %v65_v60  ;;  %v2461_v60 = vpack.c.bf16 %v1227_v54, %v1225_v50 }
  0x4f   :  { %2462 = vmatpush1.bf16.msra.mxu0 %v2461_v60 }
  0x50   :  { %2249 = vmatmul.mubr.msk.f32.gmra.mrb[38].mxu0 %vm99_vm0, %v66_v61  ;;  %v2463_v61 = vpack.c.bf16 %v1232_v56, %v1230_v55 }
  0x51   :  { %2251 = vmatprep.mubr.msk.f32.mxu0 %vm99_vm0, %v67_v62  ;;  %v1229_v62 = vld [vmem:[%s3421_s5 + $0x80] sm:$0xff] }
  0x52   :  { %2464 = vmatprep.subr.bf16.mxu0 %v2463_v61 }
  0x54   :  { %2252 = vmatmul.mubr.msk.f32.gmra.mrb[40].mxu0 %vm99_vm0, %v68_v63  ;;  %v1231_v63 = vld [vmem:[%s3421_s5 + $0x90] sm:$0xff] }
  0x55   :  { %2254 = vmatprep.mubr.msk.f32.mxu0 %vm99_vm0, %v69_v0  ;;  %v1234_v0 = vld [vmem:[%s3421_s5 + $0xa8] sm:$0xff]  ;;  %v2465_v3 = vpack.c.bf16 %v1231_v63, %v1229_v62 }
  0x57   :  { %2466 = vmatpush1.bf16.msra.mxu0 %v2465_v3 }
  0x58   :  { %2255 = vmatmul.mubr.msk.f32.gmra.mrb[42].mxu0 %vm99_vm0, %v70_v1 }
  0x59   :  { %2257 = vmatprep.mubr.msk.f32.mxu0 %vm99_vm0, %v71_v2  ;;  %v1236_v2 = vld [vmem:[%s3421_s5 + $0xb8] sm:$0xff] }
  0x5c   :  { %2258 = vmatmul.mubr.msk.f32.gmra.mrb[44].mxu0 %vm99_vm0, %v72_v6  ;;  %v2467_v6 = vpack.c.bf16 %v1236_v2, %v1234_v0 }
  0x5d   :  { %2260 = vmatprep.mubr.msk.f32.mxu0 %vm99_vm0, %v73_v7  ;;  %v1233_v7 = vld [vmem:[%s3421_s5 + $0xa0] sm:$0xff] }
  0x5e   :  { %2468 = vmatprep.subr.bf16.mxu0 %v2467_v6 }
  0x60   :  { %2261 = vmatmul.mubr.msk.f32.gmra.mrb[46].mxu0 %vm99_vm0, %v74_v8  ;;  %v1235_v8 = vld [vmem:[%s3421_s5 + $0xb0] sm:$0xff] }
  0x61   :  { %2263 = vmatprep.mubr.msk.f32.mxu0 %vm99_vm0, %v75_v9 }
  0x64   :  { %2264 = vmatmul.mubr.msk.f32.gmra.mrb[48].mxu0 %vm99_vm0, %v76_v10 }
  0x65   :  { %2266 = vmatprep.mubr.msk.f32.mxu0 %vm99_vm0, %v77_v11 }
  0x68   :  { %2267 = vmatmul.mubr.msk.f32.gmra.mrb[50].mxu0 %vm99_vm0, %v78_v12  ;;  %v1238_v12 = vld [vmem:[%s3421_s5 + $0xc8] sm:$0xff] }
  0x69   :  { %2269 = vmatprep.mubr.msk.f32.mxu0 %vm99_vm0, %v79_v13  ;;  %v1240_v13 = vld [vmem:[%s3421_s5 + $0xd8] sm:$0xff] }
  0x6c   :  { %2270 = vmatmul.mubr.msk.f32.gmra.mrb[52].mxu0 %vm99_vm0, %v80_v14 }
  0x6d   :  { %2272 = vmatprep.mubr.msk.f32.mxu0 %vm99_vm0, %v81_v15  ;;  %v2469_v15 = vpack.c.bf16 %v1235_v8, %v1233_v7 }
  0x6f   :  { %2470 = vmatpush1.bf16.msra.mxu0 %v2469_v15 }
  0x70   :  { %2273 = vmatmul.mubr.msk.f32.gmra.mrb[54].mxu0 %vm99_vm0, %v82_v16 }
  0x71   :  { %2275 = vmatprep.mubr.msk.f32.mxu0 %vm99_vm0, %v83_v17 }
  0x74   :  { %2276 = vmatmul.mubr.msk.f32.gmra.mrb[56].mxu0 %vm99_vm0, %v84_v18  ;;  %v2471_v18 = vpack.c.bf16 %v1240_v13, %v1238_v12 }
  0x75   :  { %2278 = vmatprep.mubr.msk.f32.mxu0 %vm99_vm0, %v85_v19  ;;  %v1237_v19 = vld [vmem:[%s3421_s5 + $0xc0] sm:$0xff] }
  0x76   :  { %2472 = vmatprep.subr.bf16.mxu0 %v2471_v18 }
  0x78   :  { %2279 = vmatmul.mubr.msk.f32.gmra.mrb[58].mxu0 %vm99_vm0, %v86_v20  ;;  %v1239_v20 = vld [vmem:[%s3421_s5 + $0xd0] sm:$0xff] }
  0x79   :  { %2281 = vmatprep.mubr.msk.f32.mxu0 %vm99_vm0, %v87_v21  ;;  %v2473_v25 = vpack.c.bf16 %v1239_v20, %v1237_v19 }
  0x7b   :  { %2474 = vmatpush1.bf16.msra.mxu0 %v2473_v25 }
  0x7c   :  { %2282 = vmatmul.mubr.msk.f32.gmra.mrb[60].mxu0 %vm99_vm0, %v88_v22 }
  0x7d   :  { %2284 = vmatprep.mubr.msk.f32.mxu0 %vm99_vm0, %v89_v23 }
  0x80   :  { %2285 = vmatmul.mubr.msk.f32.gmra.mrb[62].mxu0 %vm99_vm0, %v90_v24 }
  0xd7   :  { %v2193_v44 = vpop.f32.mrb[0].mxu0 }
  0xd8   :  { %v364_v45 = vadd.f32 %v2193_v44, %v2913_v42  ;;  %v358_v46 = vpop.f32.mrb[1].mxu0 }
  0xd9   :  { %v359_v47 = vadd.f32 %v2913_v42, %v358_v46 }
  0xda   :  { %v678_v57 = vmax.f32 %v364_v45, 0.0 }
  0xdb   :  { %v2196_v51 = vpop.f32.mrb[2].mxu0  ;;  %v677_v52 = vmax.f32 %v359_v47, 0.0 }
  0xdc   :  { %v374_v58 = vadd.f32 %v2196_v51, %v2913_v42  ;;  %v368_v59 = vpop.f32.mrb[3].mxu0 }
  0xdd   :  { %v369_v1 = vadd.f32 %v2913_v42, %v368_v59  ;;  %2319 = vmatprep.mubr.f32.mxu1 %v677_v52 }
  0xde   :  { %2320 = vmatmul.mubr.f32.vlgmr.msra.gmra.mrb[0].mxu1 %v678_v57  ;;  %v680_v9 = vmax.f32 %v374_v58, 0.0 }
  0xdf   :  { %v679_v4 = vmax.f32 %v369_v1, 0.0  ;;  %v2199_v5 = vpop.f32.mrb[4].mxu0  ;;  %2487 = vmatpush1.bf16.msra.mxu1 %v2449_v30 }
  0xe0   :  { %v384_v10 = vadd.f32 %v2199_v5, %v2913_v42  ;;  %v378_v11 = vpop.f32.mrb[5].mxu0  ;;  %2480 = vmatprep.subr.bf16.mxu1 %v2451_v34 }
  0xe1   :  { %v379_v14 = vadd.f32 %v2913_v42, %v378_v11  ;;  %2322 = vmatprep.mubr.f32.mxu1 %v679_v4 }
  0xe2   :  { %2323 = vmatmul.mubr.f32.gmra.mrb[2].mxu1 %v680_v9  ;;  %v682_v21 = vmax.f32 %v384_v10, 0.0 }
  0xe3   :  { %v681_v16 = vmax.f32 %v379_v14, 0.0  ;;  %v2202_v17 = vpop.f32.mrb[6].mxu0  ;;  %2488 = vmatpush1.bf16.msra.mxu1 %v2453_v36 }
  0xe4   :  { %v394_v22 = vadd.f32 %v2202_v17, %v2913_v42  ;;  %v388_v23 = vpop.f32.mrb[7].mxu0  ;;  %2481 = vmatprep.subr.bf16.mxu1 %v2455_v40 }
  0xe5   :  { %v389_v24 = vadd.f32 %v2913_v42, %v388_v23  ;;  %2325 = vmatprep.mubr.f32.mxu1 %v681_v16 }
  0xe6   :  { %2326 = vmatmul.mubr.f32.gmra.mrb[4].mxu1 %v682_v21  ;;  %v684_v28 = vmax.f32 %v394_v22, 0.0 }
  0xe7   :  { %v683_v26 = vmax.f32 %v389_v24, 0.0  ;;  %v2205_v27 = vpop.f32.mrb[8].mxu0  ;;  %2489 = vmatpush1.bf16.msra.mxu1 %v2915_v43 }
  0xe8   :  { %v404_v29 = vadd.f32 %v2205_v27, %v2913_v42  ;;  %v398_v30 = vpop.f32.mrb[9].mxu0  ;;  %2482 = vmatprep.subr.bf16.mxu1 %v2459_v53 }
  0xe9   :  { %v399_v31 = vadd.f32 %v2913_v42, %v398_v30  ;;  %2328 = vmatprep.mubr.f32.mxu1 %v683_v26 }
  0xea   :  { %2329 = vmatmul.mubr.f32.gmra.mrb[6].mxu1 %v684_v28  ;;  %v686_v34 = vmax.f32 %v404_v29, 0.0 }
  0xeb   :  { %v685_v32 = vmax.f32 %v399_v31, 0.0  ;;  %v2208_v33 = vpop.f32.mrb[10].mxu0  ;;  %2490 = vmatpush1.bf16.msra.mxu1 %v2461_v60 }
  0xec   :  { %v414_v35 = vadd.f32 %v2208_v33, %v2913_v42  ;;  %v408_v36 = vpop.f32.mrb[11].mxu0  ;;  %2483 = vmatprep.subr.bf16.mxu1 %v2463_v61 }
  0xed   :  { %v409_v37 = vadd.f32 %v2913_v42, %v408_v36  ;;  %2331 = vmatprep.mubr.f32.mxu1 %v685_v32 }
  0xee   :  { %2332 = vmatmul.mubr.f32.gmra.mrb[8].mxu1 %v686_v34  ;;  %v688_v40 = vmax.f32 %v414_v35, 0.0 }
  0xef   :  { %v687_v38 = vmax.f32 %v409_v37, 0.0  ;;  %v2211_v39 = vpop.f32.mrb[12].mxu0  ;;  %2491 = vmatpush1.bf16.msra.mxu1 %v2465_v3 }
  0xf0   :  { %v424_v41 = vadd.f32 %v2211_v39, %v2913_v42  ;;  %v418_v43 = vpop.f32.mrb[13].mxu0  ;;  %2484 = vmatprep.subr.bf16.mxu1 %v2467_v6 }
  0xf1   :  { %v419_v44 = vadd.f32 %v2913_v42, %v418_v43  ;;  %2334 = vmatprep.mubr.f32.mxu1 %v687_v38 }
  0xf2   :  { %2335 = vmatmul.mubr.f32.gmra.mrb[10].mxu1 %v688_v40  ;;  %v690_v47 = vmax.f32 %v424_v41, 0.0 }
  0xf3   :  { %v689_v45 = vmax.f32 %v419_v44, 0.0  ;;  %v2214_v46 = vpop.f32.mrb[14].mxu0  ;;  %2492 = vmatpush1.bf16.msra.mxu1 %v2469_v15 }
  0xf4   :  { %v434_v48 = vadd.f32 %v2214_v46, %v2913_v42  ;;  %v428_v49 = vpop.f32.mrb[15].mxu0  ;;  %2485 = vmatprep.subr.bf16.mxu1 %v2471_v18 }
  0xf5   :  { %v429_v50 = vadd.f32 %v2913_v42, %v428_v49  ;;  %2337 = vmatprep.mubr.f32.mxu1 %v689_v45 }
  0xf6   :  { %2338 = vmatmul.mubr.f32.gmra.mrb[12].mxu1 %v690_v47  ;;  %v692_v53 = vmax.f32 %v434_v48, 0.0 }
  0xf7   :  { %v691_v51 = vmax.f32 %v429_v50, 0.0  ;;  %v2217_v52 = vpop.f32.mrb[16].mxu0  ;;  %2493 = vmatpush1.bf16.msra.mxu1 %v2473_v25 }
  0xf8   :  { %v444_v54 = vadd.f32 %v2217_v52, %v2913_v42  ;;  %v438_v55 = vpop.f32.mrb[17].mxu0 }
  0xf9   :  { %v439_v56 = vadd.f32 %v2913_v42, %v438_v55  ;;  %2340 = vmatprep.mubr.f32.mxu1 %v691_v51 }
  0xfa   :  { %2341 = vmatmul.mubr.f32.gmra.mrb[14].mxu1 %v692_v53  ;;  %v694_v59 = vmax.f32 %v444_v54, 0.0 }
  0xfb   :  { %v693_v57 = vmax.f32 %v439_v56, 0.0  ;;  %v2220_v58 = vpop.f32.mrb[18].mxu0 }
  0xfc   :  { %v454_v60 = vadd.f32 %v2220_v58, %v2913_v42  ;;  %v448_v61 = vpop.f32.mrb[19].mxu0 }
  0xfd   :  { %v449_v62 = vadd.f32 %v2913_v42, %v448_v61  ;;  %2343 = vmatprep.mubr.f32.mxu1 %v693_v57 }
  0xfe   :  { %2344 = vmatmul.mubr.f32.gmra.mrb[16].mxu1 %v694_v59  ;;  %v696_v1 = vmax.f32 %v454_v60, 0.0 }
  0xff   :  { %v695_v63 = vmax.f32 %v449_v62, 0.0  ;;  %v2223_v0 = vpop.f32.mrb[20].mxu0 }
 0x100   :  { %v464_v2 = vadd.f32 %v2223_v0, %v2913_v42  ;;  %v458_v3 = vpop.f32.mrb[21].mxu0 }
 0x101   :  { %v459_v4 = vadd.f32 %v2913_v42, %v458_v3  ;;  %2346 = vmatprep.mubr.f32.mxu1 %v695_v63 }
 0x102   :  { %2347 = vmatmul.mubr.f32.gmra.mrb[18].mxu1 %v696_v1  ;;  %v698_v7 = vmax.f32 %v464_v2, 0.0 }
 0x103   :  { %v697_v5 = vmax.f32 %v459_v4, 0.0  ;;  %v2226_v6 = vpop.f32.mrb[22].mxu0 }
 0x104   :  { %v474_v8 = vadd.f32 %v2226_v6, %v2913_v42  ;;  %v468_v9 = vpop.f32.mrb[23].mxu0 }
 0x105   :  { %v469_v10 = vadd.f32 %v2913_v42, %v468_v9  ;;  %2349 = vmatprep.mubr.f32.mxu1 %v697_v5 }
 0x106   :  { %2350 = vmatmul.mubr.f32.gmra.mrb[20].mxu1 %v698_v7  ;;  %v700_v13 = vmax.f32 %v474_v8, 0.0 }
 0x107   :  { %v699_v11 = vmax.f32 %v469_v10, 0.0  ;;  %v2229_v12 = vpop.f32.mrb[24].mxu0 }
 0x108   :  { %v484_v14 = vadd.f32 %v2229_v12, %v2913_v42  ;;  %v478_v15 = vpop.f32.mrb[25].mxu0 }
 0x109   :  { %v479_v16 = vadd.f32 %v2913_v42, %v478_v15  ;;  %2352 = vmatprep.mubr.f32.mxu1 %v699_v11 }
 0x10a   :  { %2353 = vmatmul.mubr.f32.gmra.mrb[22].mxu1 %v700_v13  ;;  %v702_v19 = vmax.f32 %v484_v14, 0.0  ;;  %v1242_v13 = vld [vmem:[%s3421_s5 + $0xe8] sm:$0xff]  ;;  %v1244_v14 = vld [vmem:[%s3421_s5 + $0xf8] sm:$0xff] }
 0x10b   :  { %v701_v17 = vmax.f32 %v479_v16, 0.0  ;;  %v2232_v18 = vpop.f32.mrb[26].mxu0  ;;  %v2475_v16 = vpack.c.bf16 %v1244_v14, %v1242_v13  ;;  %v3048_v14 = vld [vmem:[%s3420_s4] ss:$0 sm:$0xff] }
 0x10c   :  { %v494_v20 = vadd.f32 %v2232_v18, %v2913_v42  ;;  %v488_v21 = vpop.f32.mrb[27].mxu0  ;;  %v1243_v18 = vld [vmem:[%s3421_s5 + $0xf0] sm:$0xff] }
 0x10d   :  { %v489_v22 = vadd.f32 %v2913_v42, %v488_v21  ;;  %2355 = vmatprep.mubr.f32.mxu1 %v701_v17  ;;  %v1241_v17 = vld [vmem:[%s3421_s5 + $0xe0] sm:$0xff]  ;;  %2476 = vmatprep.subr.bf16.mxu0 %v2475_v16 }
 0x10e   :  { %2356 = vmatmul.mubr.f32.gmra.mrb[24].mxu1 %v702_v19  ;;  %v704_v25 = vmax.f32 %v494_v20, 0.0  ;;  %v2477_v20 = vpack.c.bf16 %v1243_v18, %v1241_v17  ;;  %2486 = vmatprep.subr.bf16.mxu1 %v2475_v16 }
 0x10f   :  { %v703_v23 = vmax.f32 %v489_v22, 0.0  ;;  %v2235_v24 = vpop.f32.mrb[28].mxu0 }
 0x110   :  { %v504_v26 = vadd.f32 %v2235_v24, %v2913_v42  ;;  %v498_v27 = vpop.f32.mrb[29].mxu0  ;;  %2478 = vmatpush1.bf16.msra.mxu0 %v2477_v20  ;;  %2494 = vmatpush1.bf16.msra.mxu1 %v2477_v20 }
 0x111   :  { %v499_v28 = vadd.f32 %v2913_v42, %v498_v27  ;;  %2358 = vmatprep.mubr.f32.mxu1 %v703_v23  ;;  %v2523_v27 = vmov 0.0  }
 0x112   :  { %2359 = vmatmul.mubr.f32.gmra.mrb[26].mxu1 %v704_v25  ;;  %v706_v31 = vmax.f32 %v504_v26, 0.0  ;;  %1321 = vmatprep.mubr.f32.mxu0 %v2523_v27 }
 0x113   :  { %v705_v29 = vmax.f32 %v499_v28, 0.0  ;;  %v2238_v30 = vpop.f32.mrb[30].mxu0 }
 0x114   :  { %v514_v32 = vadd.f32 %v2238_v30, %v2913_v42  ;;  %v508_v33 = vpop.f32.mrb[31].mxu0 }
 0x115   :  { %v509_v34 = vadd.f32 %v2913_v42, %v508_v33  ;;  %2361 = vmatprep.mubr.f32.mxu1 %v705_v29 }
 0x116   :  { %2362 = vmatmul.mubr.f32.gmra.mrb[28].mxu1 %v706_v31  ;;  %v708_v37 = vmax.f32 %v514_v32, 0.0 }
 0x117   :  { %v707_v35 = vmax.f32 %v509_v34, 0.0  ;;  %v2241_v36 = vpop.f32.mrb[32].mxu0 }
 0x118   :  { %v524_v38 = vadd.f32 %v2241_v36, %v2913_v42  ;;  %v518_v39 = vpop.f32.mrb[33].mxu0 }
 0x119   :  { %v519_v40 = vadd.f32 %v2913_v42, %v518_v39  ;;  %2364 = vmatprep.mubr.f32.mxu1 %v707_v35 }
 0x11a   :  { %2365 = vmatmul.mubr.f32.gmra.mrb[30].mxu1 %v708_v37  ;;  %v710_v44 = vmax.f32 %v524_v38, 0.0 }
 0x11b   :  { %v709_v41 = vmax.f32 %v519_v40, 0.0  ;;  %v2244_v43 = vpop.f32.mrb[34].mxu0 }
 0x11c   :  { %v534_v45 = vadd.f32 %v2244_v43, %v2913_v42  ;;  %v528_v46 = vpop.f32.mrb[35].mxu0 }
 0x11d   :  { %v529_v47 = vadd.f32 %v2913_v42, %v528_v46  ;;  %2367 = vmatprep.mubr.f32.mxu1 %v709_v41 }
 0x11e   :  { %2368 = vmatmul.mubr.f32.gmra.mrb[32].mxu1 %v710_v44  ;;  %v712_v50 = vmax.f32 %v534_v45, 0.0 }
 0x11f   :  { %v711_v48 = vmax.f32 %v529_v47, 0.0  ;;  %v2247_v49 = vpop.f32.mrb[36].mxu0 }
 0x120   :  { %v544_v51 = vadd.f32 %v2247_v49, %v2913_v42  ;;  %v538_v52 = vpop.f32.mrb[37].mxu0 }
 0x121   :  { %v539_v53 = vadd.f32 %v2913_v42, %v538_v52  ;;  %2370 = vmatprep.mubr.f32.mxu1 %v711_v48 }
 0x122   :  { %2371 = vmatmul.mubr.f32.gmra.mrb[34].mxu1 %v712_v50  ;;  %v714_v56 = vmax.f32 %v544_v51, 0.0 }
 0x123   :  { %v713_v54 = vmax.f32 %v539_v53, 0.0  ;;  %v2250_v55 = vpop.f32.mrb[38].mxu0 }
 0x124   :  { %v554_v57 = vadd.f32 %v2250_v55, %v2913_v42  ;;  %v548_v58 = vpop.f32.mrb[39].mxu0 }
 0x125   :  { %v549_v59 = vadd.f32 %v2913_v42, %v548_v58  ;;  %2373 = vmatprep.mubr.f32.mxu1 %v713_v54 }
 0x126   :  { %v716_v60 = vmax.f32 %v554_v57, 0.0  ;;  %2374 = vmatmul.mubr.f32.gmra.mrb[36].mxu1 %v714_v56 }
 0x127   :  { %v715_v61 = vmax.f32 %v549_v59, 0.0  ;;  %v2253_v62 = vpop.f32.mrb[40].mxu0 }
 0x128   :  { %v564_v63 = vadd.f32 %v2253_v62, %v2913_v42  ;;  %v558_v0 = vpop.f32.mrb[41].mxu0 }
 0x129   :  { %2376 = vmatprep.mubr.f32.mxu1 %v715_v61  ;;  %v559_v1 = vadd.f32 %v2913_v42, %v558_v0 }
 0x12a   :  { %2377 = vmatmul.mubr.f32.gmra.mrb[38].mxu1 %v716_v60  ;;  %v718_v2 = vmax.f32 %v564_v63, 0.0 }
 0x12b   :  { %v717_v3 = vmax.f32 %v559_v1, 0.0  ;;  %v2256_v4 = vpop.f32.mrb[42].mxu0 }
 0x12c   :  { %v574_v5 = vadd.f32 %v2256_v4, %v2913_v42  ;;  %v568_v6 = vpop.f32.mrb[43].mxu0 }
 0x12d   :  { %2379 = vmatprep.mubr.f32.mxu1 %v717_v3  ;;  %v569_v7 = vadd.f32 %v2913_v42, %v568_v6 }
 0x12e   :  { %2380 = vmatmul.mubr.f32.gmra.mrb[40].mxu1 %v718_v2  ;;  %v720_v8 = vmax.f32 %v574_v5, 0.0 }
 0x12f   :  { %v719_v9 = vmax.f32 %v569_v7, 0.0  ;;  %v2259_v10 = vpop.f32.mrb[44].mxu0 }
 0x130   :  { %v584_v11 = vadd.f32 %v2259_v10, %v2913_v42  ;;  %v578_v12 = vpop.f32.mrb[45].mxu0 }
 0x131   :  { %2382 = vmatprep.mubr.f32.mxu1 %v719_v9  ;;  %v579_v15 = vadd.f32 %v2913_v42, %v578_v12 }
 0x132   :  { %2383 = vmatmul.mubr.f32.gmra.mrb[42].mxu1 %v720_v8  ;;  %v722_v19 = vmax.f32 %v584_v11, 0.0 }
 0x133   :  { %v721_v21 = vmax.f32 %v579_v15, 0.0  ;;  %v2262_v22 = vpop.f32.mrb[46].mxu0 }
 0x134   :  { %v594_v23 = vadd.f32 %v2262_v22, %v2913_v42  ;;  %v588_v24 = vpop.f32.mrb[47].mxu0 }
 0x135   :  { %2385 = vmatprep.mubr.f32.mxu1 %v721_v21  ;;  %v589_v25 = vadd.f32 %v2913_v42, %v588_v24 }
 0x136   :  { %2386 = vmatmul.mubr.f32.gmra.mrb[44].mxu1 %v722_v19  ;;  %v724_v26 = vmax.f32 %v594_v23, 0.0 }
 0x137   :  { %v723_v28 = vmax.f32 %v589_v25, 0.0  ;;  %v2265_v29 = vpop.f32.mrb[48].mxu0 }
 0x138   :  { %v604_v30 = vadd.f32 %v2265_v29, %v2913_v42  ;;  %v598_v31 = vpop.f32.mrb[49].mxu0 }
 0x139   :  { %2388 = vmatprep.mubr.f32.mxu1 %v723_v28  ;;  %v599_v32 = vadd.f32 %v2913_v42, %v598_v31 }
 0x13a   :  { %2389 = vmatmul.mubr.f32.gmra.mrb[46].mxu1 %v724_v26  ;;  %v726_v33 = vmax.f32 %v604_v30, 0.0 }
 0x13b   :  { %v725_v34 = vmax.f32 %v599_v32, 0.0  ;;  %v2268_v35 = vpop.f32.mrb[50].mxu0 }
 0x13c   :  { %v614_v36 = vadd.f32 %v2268_v35, %v2913_v42  ;;  %v608_v37 = vpop.f32.mrb[51].mxu0 }
 0x13d   :  { %2391 = vmatprep.mubr.f32.mxu1 %v725_v34  ;;  %v609_v38 = vadd.f32 %v2913_v42, %v608_v37 }
 0x13e   :  { %2392 = vmatmul.mubr.f32.gmra.mrb[48].mxu1 %v726_v33  ;;  %v728_v39 = vmax.f32 %v614_v36, 0.0 }
 0x13f   :  { %v727_v40 = vmax.f32 %v609_v38, 0.0  ;;  %v2271_v41 = vpop.f32.mrb[52].mxu0 }
 0x140   :  { %v624_v43 = vadd.f32 %v2271_v41, %v2913_v42  ;;  %v618_v44 = vpop.f32.mrb[53].mxu0 }
 0x141   :  { %2394 = vmatprep.mubr.f32.mxu1 %v727_v40  ;;  %v619_v45 = vadd.f32 %v2913_v42, %v618_v44 }
 0x142   :  { %2395 = vmatmul.mubr.f32.gmra.mrb[50].mxu1 %v728_v39  ;;  %v730_v46 = vmax.f32 %v624_v43, 0.0 }
 0x143   :  { %v729_v47 = vmax.f32 %v619_v45, 0.0  ;;  %v2274_v48 = vpop.f32.mrb[54].mxu0 }
 0x144   :  { %v634_v49 = vadd.f32 %v2274_v48, %v2913_v42  ;;  %v628_v50 = vpop.f32.mrb[55].mxu0 }
 0x145   :  { %2397 = vmatprep.mubr.f32.mxu1 %v729_v47  ;;  %v629_v51 = vadd.f32 %v2913_v42, %v628_v50 }
 0x146   :  { %2398 = vmatmul.mubr.f32.gmra.mrb[52].mxu1 %v730_v46  ;;  %v732_v52 = vmax.f32 %v634_v49, 0.0 }
 0x147   :  { %v731_v53 = vmax.f32 %v629_v51, 0.0  ;;  %v2277_v54 = vpop.f32.mrb[56].mxu0 }
 0x148   :  { %v644_v55 = vadd.f32 %v2277_v54, %v2913_v42  ;;  %v638_v56 = vpop.f32.mrb[57].mxu0 }
 0x149   :  { %2400 = vmatprep.mubr.f32.mxu1 %v731_v53  ;;  %v639_v57 = vadd.f32 %v2913_v42, %v638_v56 }
 0x14a   :  { %2401 = vmatmul.mubr.f32.gmra.mrb[54].mxu1 %v732_v52  ;;  %v734_v58 = vmax.f32 %v644_v55, 0.0 }
 0x14b   :  { %v733_v59 = vmax.f32 %v639_v57, 0.0  ;;  %v2280_v60 = vpop.f32.mrb[58].mxu0 }
 0x14c   :  { %v654_v61 = vadd.f32 %v2280_v60, %v2913_v42  ;;  %v648_v62 = vpop.f32.mrb[59].mxu0 }
 0x14d   :  { %2403 = vmatprep.mubr.f32.mxu1 %v733_v59  ;;  %v649_v63 = vadd.f32 %v2913_v42, %v648_v62 }
 0x14e   :  { %2404 = vmatmul.mubr.f32.gmra.mrb[56].mxu1 %v734_v58  ;;  %v736_v0 = vmax.f32 %v654_v61, 0.0 }
 0x14f   :  { %v735_v1 = vmax.f32 %v649_v63, 0.0  ;;  %v2283_v2 = vpop.f32.mrb[60].mxu0 }
 0x150   :  { %v664_v3 = vadd.f32 %v2283_v2, %v2913_v42  ;;  %v658_v4 = vpop.f32.mrb[61].mxu0 }
 0x151   :  { %2406 = vmatprep.mubr.f32.mxu1 %v735_v1  ;;  %v659_v5 = vadd.f32 %v2913_v42, %v658_v4 }
 0x152   :  { %2407 = vmatmul.mubr.f32.gmra.mrb[58].mxu1 %v736_v0  ;;  %v738_v6 = vmax.f32 %v664_v3, 0.0 }
 0x153   :  { %v737_v7 = vmax.f32 %v659_v5, 0.0  ;;  %v2286_v8 = vpop.f32.mrb[62].mxu0 }
 0x154   :  { %v674_v9 = vadd.f32 %v2286_v8, %v2913_v42  ;;  %v668_v10 = vpop.f32.mrb[63].mxu0 }
 0x155   :  { %2409 = vmatprep.mubr.f32.mxu1 %v737_v7  ;;  %v669_v11 = vadd.f32 %v2913_v42, %v668_v10 }
 0x156   :  { %2410 = vmatmul.mubr.f32.gmra.mrb[60].mxu1 %v738_v6  ;;  %v740_v12 = vmax.f32 %v674_v9, 0.0 }
 0x157   :  { %v739_v13 = vmax.f32 %v669_v11, 0.0 }
 0x159   :  { %2412 = vmatprep.mubr.f32.mxu1 %v739_v13 }
 0x15a   :  { %2413 = vmatmul.mubr.f32.gmra.mrb[62].mxu1 %v740_v12 }
 0x15b   :  { %1537 = vmatprep.mubr.f32.mxu1 %v2523_v27 }
 0x1b1   :  { %v2321_v15 = vpop.f32.mrb[0].mxu1 }
 0x1b2   :  { %v830_v16 = vpop.f32.mrb[1].mxu1  ;;  %v836_v18 = vadd.f32 %v2321_v15, %v3048_v14 }
 0x1b3   :  { %v831_v17 = vadd.f32 %v3048_v14, %v830_v16 }
 0x1b4   :  { %v1150_v21 = vmax.f32 %v836_v18, 0.0 }
 0x1b5   :  { %v1149_v19 = vmax.f32 %v831_v17, 0.0  ;;  %v2324_v42 = vpop.f32.mrb[2].mxu1 }
 0x1b6   :  { %v840_v20 = vpop.f32.mrb[3].mxu1  ;;  %v846_v25 = vadd.f32 %v2324_v42, %v3048_v14 }
 0x1b7   :  { %1322 = vmatmul.mubr.f32.vlgmr.msra.gmra.mrb[64].mxu0 %v1149_v19  ;;  %v841_v22 = vadd.f32 %v3048_v14, %v840_v20 }
 0x1b8   :  { %1327 = vmatprep.mubr.f32.mxu0 %v2523_v27  ;;  %v1152_v30 = vmax.f32 %v846_v25, 0.0 }
 0x1b9   :  { %v2327_v23 = vpop.f32.mrb[4].mxu1  ;;  %v1151_v26 = vmax.f32 %v841_v22, 0.0 }
 0x1ba   :  { %v850_v24 = vpop.f32.mrb[5].mxu1  ;;  %v856_v34 = vadd.f32 %v2327_v23, %v3048_v14 }
 0x1bb   :  { %1328 = vmatmul.mubr.f32.gmra.mrb[66].mxu0 %v1150_v21  ;;  %v851_v31 = vadd.f32 %v3048_v14, %v850_v24 }
 0x1bc   :  { %1333 = vmatprep.mubr.f32.mxu0 %v2523_v27  ;;  %v1154_v38 = vmax.f32 %v856_v34, 0.0 }
 0x1bd   :  { %v2330_v28 = vpop.f32.mrb[6].mxu1  ;;  %v1153_v35 = vmax.f32 %v851_v31, 0.0 }
 0x1be   :  { %v860_v29 = vpop.f32.mrb[7].mxu1  ;;  %v866_v43 = vadd.f32 %v2330_v28, %v3048_v14 }
 0x1bf   :  { %1334 = vmatmul.mubr.f32.gmra.mrb[68].mxu0 %v1151_v26  ;;  %v861_v39 = vadd.f32 %v3048_v14, %v860_v29 }
 0x1c0   :  { %1339 = vmatprep.mubr.f32.mxu0 %v2523_v27  ;;  %v1156_v47 = vmax.f32 %v866_v43, 0.0 }
 0x1c1   :  { %v2333_v32 = vpop.f32.mrb[8].mxu1  ;;  %v1155_v44 = vmax.f32 %v861_v39, 0.0 }
 0x1c2   :  { %v870_v33 = vpop.f32.mrb[9].mxu1  ;;  %v876_v51 = vadd.f32 %v2333_v32, %v3048_v14 }
 0x1c3   :  { %1340 = vmatmul.mubr.f32.gmra.mrb[70].mxu0 %v1152_v30  ;;  %v871_v48 = vadd.f32 %v3048_v14, %v870_v33 }
 0x1c4   :  { %1345 = vmatprep.mubr.f32.mxu0 %v2523_v27  ;;  %v1158_v55 = vmax.f32 %v876_v51, 0.0 }
 0x1c5   :  { %v2336_v36 = vpop.f32.mrb[10].mxu1  ;;  %v1157_v52 = vmax.f32 %v871_v48, 0.0 }
 0x1c6   :  { %v880_v37 = vpop.f32.mrb[11].mxu1  ;;  %v886_v59 = vadd.f32 %v2336_v36, %v3048_v14 }
 0x1c7   :  { %1346 = vmatmul.mubr.f32.gmra.mrb[72].mxu0 %v1153_v35  ;;  %v881_v56 = vadd.f32 %v3048_v14, %v880_v37 }
 0x1c8   :  { %1351 = vmatprep.mubr.f32.mxu0 %v2523_v27  ;;  %v1160_v63 = vmax.f32 %v886_v59, 0.0 }
 0x1c9   :  { %v2339_v40 = vpop.f32.mrb[12].mxu1  ;;  %v1159_v60 = vmax.f32 %v881_v56, 0.0 }
 0x1ca   :  { %v890_v41 = vpop.f32.mrb[13].mxu1  ;;  %v896_v3 = vadd.f32 %v2339_v40, %v3048_v14 }
 0x1cb   :  { %1352 = vmatmul.mubr.f32.gmra.mrb[74].mxu0 %v1154_v38  ;;  %v891_v0 = vadd.f32 %v3048_v14, %v890_v41 }
 0x1cc   :  { %1357 = vmatprep.mubr.f32.mxu0 %v2523_v27  ;;  %v1162_v7 = vmax.f32 %v896_v3, 0.0 }
 0x1cd   :  { %v2342_v45 = vpop.f32.mrb[14].mxu1  ;;  %v1161_v4 = vmax.f32 %v891_v0, 0.0 }
 0x1ce   :  { %v900_v46 = vpop.f32.mrb[15].mxu1  ;;  %v906_v11 = vadd.f32 %v2342_v45, %v3048_v14 }
 0x1cf   :  { %1358 = vmatmul.mubr.f32.gmra.mrb[76].mxu0 %v1155_v44  ;;  %v901_v8 = vadd.f32 %v3048_v14, %v900_v46 }
 0x1d0   :  { %1363 = vmatprep.mubr.f32.mxu0 %v2523_v27  ;;  %v1164_v16 = vmax.f32 %v906_v11, 0.0 }
 0x1d1   :  { %v2345_v49 = vpop.f32.mrb[16].mxu1  ;;  %v1163_v12 = vmax.f32 %v901_v8, 0.0 }
 0x1d2   :  { %v910_v50 = vpop.f32.mrb[17].mxu1  ;;  %v916_v42 = vadd.f32 %v2345_v49, %v3048_v14 }
 0x1d3   :  { %1364 = vmatmul.mubr.f32.gmra.mrb[78].mxu0 %v1156_v47  ;;  %v911_v17 = vadd.f32 %v3048_v14, %v910_v50 }
 0x1d4   :  { %1369 = vmatprep.mubr.f32.mxu0 %v2523_v27  ;;  %v1166_v23 = vmax.f32 %v916_v42, 0.0 }
 0x1d5   :  { %v2348_v53 = vpop.f32.mrb[18].mxu1  ;;  %v1165_v20 = vmax.f32 %v911_v17, 0.0 }
 0x1d6   :  { %v920_v54 = vpop.f32.mrb[19].mxu1  ;;  %v926_v29 = vadd.f32 %v2348_v53, %v3048_v14 }
 0x1d7   :  { %1370 = vmatmul.mubr.f32.gmra.mrb[80].mxu0 %v1157_v52  ;;  %v921_v24 = vadd.f32 %v3048_v14, %v920_v54 }
 0x1d8   :  { %1375 = vmatprep.mubr.f32.mxu0 %v2523_v27  ;;  %v1168_v35 = vmax.f32 %v926_v29, 0.0 }
 0x1d9   :  { %v3070_v57 = vpop.f32.mrb[20].mxu1  ;;  %v1167_v30 = vmax.f32 %v921_v24, 0.0 }
 0x1da   :  { %v3072_v58 = vpop.f32.mrb[21].mxu1  ;;  %v936_v41 = vadd.f32 %v3070_v57, %v3048_v14 }
 0x1db   :  { %1376 = vmatmul.mubr.f32.gmra.mrb[82].mxu0 %v1158_v55  ;;  %v931_v36 = vadd.f32 %v3048_v14, %v3072_v58 }
 0x1dc   :  { %1381 = vmatprep.mubr.f32.mxu0 %v2523_v27  ;;  %v1170_v48 = vmax.f32 %v936_v41, 0.0 }
 0x1dd   :  { %v3076_v61 = vpop.f32.mrb[22].mxu1  ;;  %v1169_v43 = vmax.f32 %v931_v36, 0.0 }
 0x1de   :  { %v3078_v62 = vpop.f32.mrb[23].mxu1  ;;  %v946_v54 = vadd.f32 %v3076_v61, %v3048_v14 }
 0x1df   :  { %1382 = vmatmul.mubr.f32.gmra.mrb[84].mxu0 %v1159_v60  ;;  %v941_v49 = vadd.f32 %v3048_v14, %v3078_v62 }
 0x1e0   :  { %1387 = vmatprep.mubr.f32.mxu0 %v2523_v27  ;;  %v1172_v60 = vmax.f32 %v946_v54, 0.0 }
 0x1e1   :  { %v3082_v1 = vpop.f32.mrb[24].mxu1  ;;  %v1171_v55 = vmax.f32 %v941_v49, 0.0 }
 0x1e2   :  { %v3084_v2 = vpop.f32.mrb[25].mxu1 }
 0x1e3   :  { %1388 = vmatmul.mubr.f32.gmra.mrb[86].mxu0 %v1160_v63  ;;  %v951_v62 = vadd.f32 %v3048_v14, %v3084_v2 }
 0x1e4   :  { %1393 = vmatprep.mubr.f32.mxu0 %v2523_v27 }
 0x1e5   :  { %v3088_v5 = vpop.f32.mrb[26].mxu1 }
 0x1e6   :  { %v3090_v6 = vpop.f32.mrb[27].mxu1  ;;  %v966_v24 = vadd.f32 %v3088_v5, %v3048_v14 }
 0x1e7   :  { %1394 = vmatmul.mubr.f32.gmra.mrb[88].mxu0 %v1161_v4  ;;  %v956_v4 = vadd.f32 %v3082_v1, %v3048_v14  ;;  %v961_v17 = vadd.f32 %v3048_v14, %v3090_v6 }
 0x1e8   :  { %1399 = vmatprep.mubr.f32.mxu0 %v2523_v27 }
 0x1e9   :  { %v3094_v9 = vpop.f32.mrb[28].mxu1 }
 0x1ea   :  { %v3096_v10 = vpop.f32.mrb[29].mxu1 }
 0x1eb   :  { %1400 = vmatmul.mubr.f32.gmra.mrb[90].mxu0 %v1162_v7  ;;  %v1173_v7 = vmax.f32 %v951_v62, 0.0 }
 0x1ec   :  { %1405 = vmatprep.mubr.f32.mxu0 %v2523_v27 }
 0x1ed   :  { %v3100_v13 = vpop.f32.mrb[30].mxu1 }
 0x1ee   :  { %v3102_v15 = vpop.f32.mrb[31].mxu1 }
 0x1ef   :  { %1406 = vmatmul.mubr.f32.gmra.mrb[92].mxu0 %v1163_v12  ;;  %v981_v41 = vadd.f32 %v3048_v14, %v3102_v15 }
 0x1f0   :  { %1411 = vmatprep.mubr.f32.mxu0 %v2523_v27 }
 0x1f1   :  { %v3106_v18 = vpop.f32.mrb[32].mxu1 }
 0x1f2   :  { %v3108_v19 = vpop.f32.mrb[33].mxu1  ;;  %v996_v54 = vadd.f32 %v3106_v18, %v3048_v14 }
 0x1f3   :  { %1412 = vmatmul.mubr.f32.gmra.mrb[94].mxu0 %v1164_v16  ;;  %v1174_v16 = vmax.f32 %v956_v4, 0.0 }
 0x1f4   :  { %1417 = vmatprep.mubr.f32.mxu0 %v2523_v27 }
 0x1f5   :  { %v3112_v21 = vpop.f32.mrb[34].mxu1 }
 0x1f6   :  { %v3114_v22 = vpop.f32.mrb[35].mxu1  ;;  %v1006_v18 = vadd.f32 %v3112_v21, %v3048_v14 }
 0x1f7   :  { %1418 = vmatmul.mubr.f32.gmra.mrb[96].mxu0 %v1165_v20 }
 0x1f8   :  { %1423 = vmatprep.mubr.f32.mxu0 %v2523_v27 }
 0x1f9   :  { %v2375_v25 = vpop.f32.mrb[36].mxu1 }
 0x1fa   :  { %v1010_v26 = vpop.f32.mrb[37].mxu1  ;;  %v1016_v31 = vadd.f32 %v2375_v25, %v3048_v14  ;;  %v1175_v25 = vmax.f32 %v961_v17, 0.0 }
 0x1fb   :  { %v1011_v28 = vadd.f32 %v3048_v14, %v1010_v26  ;;  %1424 = vmatmul.mubr.f32.gmra.mrb[98].mxu0 %v1166_v23 }
 0x1fc   :  { %1429 = vmatprep.mubr.f32.mxu0 %v2523_v27  ;;  %v1186_v37 = vmax.f32 %v1016_v31, 0.0  ;;  %v971_v31 = vadd.f32 %v3048_v14, %v3096_v10 }
 0x1fd   :  { %v1185_v32 = vmax.f32 %v1011_v28, 0.0  ;;  %v2378_v33 = vpop.f32.mrb[38].mxu1 }
 0x1fe   :  { %v1020_v34 = vpop.f32.mrb[39].mxu1  ;;  %v1026_v44 = vadd.f32 %v2378_v33, %v3048_v14  ;;  %v1177_v36 = vmax.f32 %v971_v31, 0.0 }
 0x1ff   :  { %1430 = vmatmul.mubr.f32.gmra.mrb[100].mxu0 %v1167_v30  ;;  %1538 = vmatmul.mubr.f32.vlgmr.msra.gmra.mrb[64].mxu1 %v1185_v32  ;;  %v1021_v38 = vadd.f32 %v3048_v14, %v1020_v34  ;;  %v1176_v30 = vmax.f32 %v966_v24, 0.0 }
 0x200   :  { %1435 = vmatprep.mubr.f32.mxu0 %v2523_v27  ;;  %1543 = vmatprep.mubr.f32.mxu1 %v2523_v27  ;;  %v1188_v50 = vmax.f32 %v1026_v44, 0.0 }
 0x201   :  { %v2381_v39 = vpop.f32.mrb[40].mxu1  ;;  %v1187_v45 = vmax.f32 %v1021_v38, 0.0 }
 0x202   :  { %v1030_v40 = vpop.f32.mrb[41].mxu1  ;;  %v1036_v56 = vadd.f32 %v2381_v39, %v3048_v14 }
 0x203   :  { %1436 = vmatmul.mubr.f32.gmra.mrb[102].mxu0 %v1168_v35  ;;  %1544 = vmatmul.mubr.f32.gmra.mrb[66].mxu1 %v1186_v37  ;;  %v1031_v51 = vadd.f32 %v3048_v14, %v1030_v40  ;;  %v976_v35 = vadd.f32 %v3094_v9, %v3048_v14 }
 0x204   :  { %1441 = vmatprep.mubr.f32.mxu0 %v2523_v27  ;;  %1549 = vmatprep.mubr.f32.mxu1 %v2523_v27  ;;  %v1190_v63 = vmax.f32 %v1036_v56, 0.0 }
 0x205   :  { %v2384_v46 = vpop.f32.mrb[42].mxu1  ;;  %v1189_v57 = vmax.f32 %v1031_v51, 0.0  ;;  %v1178_v40 = vmax.f32 %v976_v35, 0.0 }
 0x206   :  { %v1040_v47 = vpop.f32.mrb[43].mxu1  ;;  %v1046_v8 = vadd.f32 %v2384_v46, %v3048_v14  ;;  %v986_v46 = vadd.f32 %v3100_v13, %v3048_v14 }
 0x207   :  { %1442 = vmatmul.mubr.f32.gmra.mrb[104].mxu0 %v1169_v43  ;;  %1550 = vmatmul.mubr.f32.gmra.mrb[68].mxu1 %v1187_v45  ;;  %v1041_v0 = vadd.f32 %v3048_v14, %v1040_v47  ;;  %v1179_v47 = vmax.f32 %v981_v41, 0.0 }
 0x208   :  { %1447 = vmatprep.mubr.f32.mxu0 %v2523_v27  ;;  %1555 = vmatprep.mubr.f32.mxu1 %v2523_v27  ;;  %v1192_v42 = vmax.f32 %v1046_v8, 0.0  ;;  %v1180_v51 = vmax.f32 %v986_v46, 0.0 }
 0x209   :  { %v2387_v52 = vpop.f32.mrb[44].mxu1  ;;  %v1191_v11 = vmax.f32 %v1041_v0, 0.0 }
 0x20a   :  { %v1050_v53 = vpop.f32.mrb[45].mxu1  ;;  %v1056_v26 = vadd.f32 %v2387_v52, %v3048_v14  ;;  %v991_v52 = vadd.f32 %v3048_v14, %v3108_v19  ;;  %v1182_v19 = vmax.f32 %v996_v54, 0.0 }
 0x20b   :  { %1448 = vmatmul.mubr.f32.gmra.mrb[106].mxu0 %v1170_v48  ;;  %1556 = vmatmul.mubr.f32.gmra.mrb[70].mxu1 %v1188_v50  ;;  %v1051_v1 = vadd.f32 %v3048_v14, %v1050_v53 }
 0x20c   :  { %1453 = vmatprep.mubr.f32.mxu0 %v2523_v27  ;;  %1561 = vmatprep.mubr.f32.mxu1 %v2523_v27  ;;  %v1194_v32 = vmax.f32 %v1056_v26, 0.0 }
 0x20d   :  { %v2390_v58 = vpop.f32.mrb[46].mxu1  ;;  %v1193_v6 = vmax.f32 %v1051_v1, 0.0 }
 0x20e   :  { %v1060_v59 = vpop.f32.mrb[47].mxu1  ;;  %v1066_v37 = vadd.f32 %v2390_v58, %v3048_v14  ;;  %v1001_v58 = vadd.f32 %v3048_v14, %v3114_v22  ;;  %v1184_v22 = vmax.f32 %v1006_v18, 0.0 }
 0x20f   :  { %1454 = vmatmul.mubr.f32.gmra.mrb[108].mxu0 %v1171_v55  ;;  %1562 = vmatmul.mubr.f32.gmra.mrb[72].mxu1 %v1189_v57  ;;  %v1061_v5 = vadd.f32 %v3048_v14, %v1060_v59  ;;  %v1181_v55 = vmax.f32 %v991_v52, 0.0 }
 0x210   :  { %1459 = vmatprep.mubr.f32.mxu0 %v2523_v27  ;;  %1567 = vmatprep.mubr.f32.mxu1 %v2523_v27  ;;  %v1196_v43 = vmax.f32 %v1066_v37, 0.0  ;;  %v1183_v62 = vmax.f32 %v1001_v58, 0.0 }
 0x211   :  { %v3147_v61 = vpop.f32.mrb[48].mxu1  ;;  %v1195_v10 = vmax.f32 %v1061_v5, 0.0  ;;  %v1245_v5 = vld [vmem:[%s3422_s6] sm:$0x3]  ;;  %s2524_s6 = smov [#allocation2]  }
 0x212   :  { %v1070_v3 = vpop.f32.mrb[49].mxu1  ;;  %v1076_v15 = vadd.f32 %v3147_v61, %v3048_v14  ;;  %s1967_s29 = sshll.u32 %s2524_s6, 4  ;;  %s1968_s29 = int_to_ptr.vmem [resolvable:$true] %s1967_s29 }
 0x213   :  { %1460 = vmatmul.mubr.f32.gmra.mrb[110].mxu0 %v1172_v60  ;;  %1568 = vmatmul.mubr.f32.gmra.mrb[74].mxu1 %v1190_v63  ;;  %v1071_v9 = vadd.f32 %v3048_v14, %v1070_v3  ;;  %s2499_s30 = scalar_lea.vmem %s1968_s29, 16384  ;;  %p2504_p1 = scmp.lt.s32.totalorder %s1968_s29, %s1968_s29 }
 0x214   :  { %1465 = vmatprep.mubr.f32.mxu0 %v2523_v27  ;;  %1573 = vmatprep.mubr.f32.mxu1 %v2523_v27  ;;  %v1198_v13 = vmax.f32 %v1076_v15, 0.0  ;;  %p2500_p0 = scmp.ne.s32.totalorder %s1968_s29, %s2499_s30  ;;  %p2505_p2 = scmp.lt.s32.totalorder %s2499_s30, %s2499_s30 }
 0x215   :  { %v3154_v2 = vpop.f32.mrb[50].mxu1  ;;  %v1197_v48 = vmax.f32 %v1071_v9, 0.0 }
 0x216   :  { %v3156_v12 = vpop.f32.mrb[51].mxu1  ;;  %v1086_v56 = vadd.f32 %v3154_v2, %v3048_v14  ;;  %p2506_p3 = por %p2505_p2, %p2504_p1 }
 0x217   :  { %1466 = vmatmul.mubr.f32.gmra.mrb[112].mxu0 %v1173_v7  ;;  %1574 = vmatmul.mubr.f32.gmra.mrb[76].mxu1 %v1191_v11  ;;  %v1081_v53 = vadd.f32 %v3048_v14, %v3156_v12 }
 0x218   :  { %1471 = vmatprep.mubr.f32.mxu0 %v2523_v27  ;;  %1579 = vmatprep.mubr.f32.mxu1 %v2523_v27  ;;  %v1200_v59 = vmax.f32 %v1086_v56, 0.0  ;;  %p2507_p4 = pnand %p2506_p3, %p2500_p0 }
 0x219   :  { %v3163_v20 = vpop.f32.mrb[52].mxu1  ;;  %v1199_v57 = vmax.f32 %v1081_v53, 0.0 }
 0x21a   :  { %v3165_v23 = vpop.f32.mrb[53].mxu1  ;;  %v1096_v63 = vadd.f32 %v3163_v20, %v3048_v14 }
 0x21b   :  { %1472 = vmatmul.mubr.f32.gmra.mrb[114].mxu0 %v1174_v16  ;;  %1580 = vmatmul.mubr.f32.gmra.mrb[78].mxu1 %v1192_v42  ;;  %v1091_v60 = vadd.f32 %v3048_v14, %v3165_v23 }
 0x21c   :  { %1477 = vmatprep.mubr.f32.mxu0 %v2523_v27  ;;  %1585 = vmatprep.mubr.f32.mxu1 %v2523_v27  ;;  %v1202_v61 = vmax.f32 %v1096_v63, 0.0 }
 0x21d   :  { %v3172_v28 = vpop.f32.mrb[54].mxu1  ;;  %v1201_v0 = vmax.f32 %v1091_v60, 0.0 }
 0x21e   :  { %v3174_v29 = vpop.f32.mrb[55].mxu1  ;;  %v1106_v21 = vadd.f32 %v3172_v28, %v3048_v14 }
 0x21f   :  { %1478 = vmatmul.mubr.f32.gmra.mrb[116].mxu0 %v1175_v25  ;;  %1586 = vmatmul.mubr.f32.gmra.mrb[80].mxu1 %v1193_v6  ;;  %v1101_v3 = vadd.f32 %v3048_v14, %v3174_v29 }
 0x220   :  { %1483 = vmatprep.mubr.f32.mxu0 %v2523_v27  ;;  %1591 = vmatprep.mubr.f32.mxu1 %v2523_v27  ;;  %v1204_v7 = vmax.f32 %v1106_v21, 0.0 }
 0x221   :  { %v3181_v33 = vpop.f32.mrb[56].mxu1  ;;  %v1203_v4 = vmax.f32 %v1101_v3, 0.0 }
 0x222   :  { %v3183_v34 = vpop.f32.mrb[57].mxu1  ;;  %v1116_v11 = vadd.f32 %v3181_v33, %v3048_v14 }
 0x223   :  { %1484 = vmatmul.mubr.f32.gmra.mrb[118].mxu0 %v1176_v30  ;;  %1592 = vmatmul.mubr.f32.gmra.mrb[82].mxu1 %v1194_v32  ;;  %v1111_v8 = vadd.f32 %v3048_v14, %v3183_v34  ;;  %v1247_v30 = vlaneseq }
 0x224   :  { %1489 = vmatprep.mubr.f32.mxu0 %v2523_v27  ;;  %1597 = vmatprep.mubr.f32.mxu1 %v2523_v27  ;;  %v1206_v12 = vmax.f32 %v1116_v11, 0.0 }
 0x225   :  { %v3190_v38 = vpop.f32.mrb[58].mxu1  ;;  %v1205_v2 = vmax.f32 %v1111_v8, 0.0  ;;  %v1248_v31 = vshrl.u32 %v1247_v30, 7 }
 0x226   :  { %v3192_v39 = vpop.f32.mrb[59].mxu1  ;;  %v1126_v17 = vadd.f32 %v3190_v38, %v3048_v14 }
 0x227   :  { %1490 = vmatmul.mubr.f32.gmra.mrb[120].mxu0 %v1177_v36  ;;  %1598 = vmatmul.mubr.f32.gmra.mrb[84].mxu1 %v1195_v10  ;;  %v1121_v16 = vadd.f32 %v3048_v14, %v3192_v39  ;;  %v1249_v32 = vsub.s32 0, %v1248_v31  ;;  %v1253_v33 = vsub.s32 1, %v1248_v31 }
 0x228   :  { %1495 = vmatprep.mubr.f32.mxu0 %v2523_v27  ;;  %1603 = vmatprep.mubr.f32.mxu1 %v2523_v27  ;;  %v1208_v1 = vmax.f32 %v1126_v17, 0.0 }
 0x229   :  { %v3199_v44 = vpop.f32.mrb[60].mxu1  ;;  %v1207_v42 = vmax.f32 %v1121_v16, 0.0  ;;  %v3272_v34 = vrot.slane %v1245_v5, %v1249_v32  ;;  %v3274_v35 = vrot.slane %v1245_v5, %v1253_v33 }
 0x22a   :  { %v3201_v45 = vpop.f32.mrb[61].mxu1  ;;  %v1136_v23 = vadd.f32 %v3199_v44, %v3048_v14 }
 0x22b   :  { %1496 = vmatmul.mubr.f32.gmra.mrb[122].mxu0 %v1178_v40  ;;  %1604 = vmatmul.mubr.f32.gmra.mrb[86].mxu1 %v1196_v43  ;;  %v1131_v20 = vadd.f32 %v3048_v14, %v3201_v45 }
 0x22c   :  { %1501 = vmatprep.mubr.f32.mxu0 %v2523_v27  ;;  %1609 = vmatprep.mubr.f32.mxu1 %v2523_v27  ;;  %v1210_v25 = vmax.f32 %v1136_v23, 0.0 }
 0x22d   :  { %v3209_v49 = vpop.f32.mrb[62].mxu1  ;;  %v1209_v24 = vmax.f32 %v1131_v20, 0.0 }
 0x22e   :  { %v3211_v50 = vpop.f32.mrb[63].mxu1  ;;  %v1146_v6 = vadd.f32 %v3209_v49, %v3048_v14 }
 0x22f   :  { %1502 = vmatmul.mubr.f32.gmra.mrb[124].mxu0 %v1179_v47  ;;  %1610 = vmatmul.mubr.f32.gmra.mrb[88].mxu1 %v1197_v48  ;;  %v1141_v26 = vadd.f32 %v3048_v14, %v3211_v50 }
 0x230   :  { %1507 = vmatprep.mubr.f32.mxu0 %v2523_v27  ;;  %1615 = vmatprep.mubr.f32.mxu1 %v2523_v27  ;;  %v1212_v29 = vmax.f32 %v1146_v6, 0.0 }
 0x231   :  { %v1211_v28 = vmax.f32 %v1141_v26, 0.0 }
 0x233   :  { %1508 = vmatmul.mubr.f32.gmra.mrb[126].mxu0 %v1180_v51  ;;  %1616 = vmatmul.mubr.f32.gmra.mrb[90].mxu1 %v1198_v13 }
 0x234   :  { %1513 = vmatprep.mubr.f32.mxu0 %v2523_v27  ;;  %1621 = vmatprep.mubr.f32.mxu1 %v2523_v27 }
 0x237   :  { %1514 = vmatmul.mubr.f32.gmra.mrb[128].mxu0 %v1181_v55  ;;  %1622 = vmatmul.mubr.f32.gmra.mrb[92].mxu1 %v1199_v57 }
 0x238   :  { %1519 = vmatprep.mubr.f32.mxu0 %v2523_v27  ;;  %1627 = vmatprep.mubr.f32.mxu1 %v2523_v27 }
 0x23b   :  { %1520 = vmatmul.mubr.f32.gmra.mrb[130].mxu0 %v1182_v19  ;;  %1628 = vmatmul.mubr.f32.gmra.mrb[94].mxu1 %v1200_v59 }
 0x23c   :  { %1525 = vmatprep.mubr.f32.mxu0 %v2523_v27  ;;  %1633 = vmatprep.mubr.f32.mxu1 %v2523_v27 }
 0x23f   :  { %1526 = vmatmul.mubr.f32.gmra.mrb[132].mxu0 %v1183_v62  ;;  %1634 = vmatmul.mubr.f32.gmra.mrb[96].mxu1 %v1201_v0 }
 0x240   :  { %1531 = vmatprep.mubr.f32.mxu0 %v2523_v27  ;;  %1639 = vmatprep.mubr.f32.mxu1 %v2523_v27 }
 0x243   :  { %1532 = vmatmul.mubr.f32.gmra.mrb[134].mxu0 %v1184_v22  ;;  %1640 = vmatmul.mubr.f32.gmra.mrb[98].mxu1 %v1202_v61 }
 0x244   :  { %1645 = vmatprep.mubr.f32.mxu1 %v2523_v27 }
 0x247   :  { %1646 = vmatmul.mubr.f32.gmra.mrb[100].mxu1 %v1203_v4 }
 0x248   :  { %1651 = vmatprep.mubr.f32.mxu1 %v2523_v27 }
 0x24b   :  { %1652 = vmatmul.mubr.f32.gmra.mrb[102].mxu1 %v1204_v7 }
 0x24c   :  { %1657 = vmatprep.mubr.f32.mxu1 %v2523_v27 }
 0x24f   :  { %1658 = vmatmul.mubr.f32.gmra.mrb[104].mxu1 %v1205_v2 }
 0x250   :  { %1663 = vmatprep.mubr.f32.mxu1 %v2523_v27 }
 0x253   :  { %1664 = vmatmul.mubr.f32.gmra.mrb[106].mxu1 %v1206_v12 }
 0x254   :  { %1669 = vmatprep.mubr.f32.mxu1 %v2523_v27 }
 0x257   :  { %1670 = vmatmul.mubr.f32.gmra.mrb[108].mxu1 %v1207_v42 }
 0x258   :  { %1675 = vmatprep.mubr.f32.mxu1 %v2523_v27 }
 0x25b   :  { %1676 = vmatmul.mubr.f32.gmra.mrb[110].mxu1 %v1208_v1 }
 0x25c   :  { %1681 = vmatprep.mubr.f32.mxu1 %v2523_v27 }
 0x25f   :  { %1682 = vmatmul.mubr.f32.gmra.mrb[112].mxu1 %v1209_v24 }
 0x260   :  { %1687 = vmatprep.mubr.f32.mxu1 %v2523_v27 }
 0x263   :  { %1688 = vmatmul.mubr.f32.gmra.mrb[114].mxu1 %v1210_v25 }
 0x264   :  { %1693 = vmatprep.mubr.f32.mxu1 %v2523_v27 }
 0x267   :  { %1694 = vmatmul.mubr.f32.gmra.mrb[116].mxu1 %v1211_v28 }
 0x268   :  { %1699 = vmatprep.mubr.f32.mxu1 %v2523_v27 }
 0x26b   :  { %1700 = vmatmul.mubr.f32.gmra.mrb[118].mxu1 %v1212_v29 }
 0x28a   :  { %v1323_v36 = vpop.f32.mrb[64].mxu0 }
 0x28b   :  { %v1324_v14 = vadd.f32 %v1323_v36, %v3272_v34  ;;  %v1325_v37 = vpop.f32.mrb[65].mxu0 }
 0x28c   :  { %v1326_v27 = vadd.f32 %v1325_v37, %v3274_v35 }
 0x28d   :  { %v1706_v10 = vmax.f32 %v1324_v14, 0.0 }
 0x28e   :  { %v1707_v38 = vmax.f32 %v1326_v27, 0.0  ;;  %v1329_v39 = vpop.f32.mrb[66].mxu0 }
 0x28f   :  { %1834 = vst [vmem:[#allocation2] sm:$0xff] %v1706_v10  ;;  %v1330_v40 = vadd.f32 %v1329_v39, %v3272_v34  ;;  %v1331_v41 = vpop.f32.mrb[67].mxu0 }
 0x290   :  { %1835 = vst [vmem:[#allocation2 + $0x8] sm:$0xff] %v1707_v38  ;;  %v1332_v43 = vadd.f32 %v1331_v41, %v3274_v35 }
 0x291   :  { %v1708_v9 = vmax.f32 %v1330_v40, 0.0 }
 0x292   :  { %v1709_v44 = vmax.f32 %v1332_v43, 0.0  ;;  %v1335_v45 = vpop.f32.mrb[68].mxu0 }
 0x293   :  { %1836 = vst [vmem:[#allocation2 + $0x10] sm:$0xff] %v1708_v9  ;;  %v1336_v46 = vadd.f32 %v1335_v45, %v3272_v34  ;;  %v1337_v47 = vpop.f32.mrb[69].mxu0 }
 0x294   :  { %1837 = vst [vmem:[#allocation2 + $0x18] sm:$0xff] %v1709_v44  ;;  %v1338_v15 = vadd.f32 %v1337_v47, %v3274_v35 }
 0x295   :  { %v1710_v48 = vmax.f32 %v1336_v46, 0.0 }
 0x296   :  { %v1711_v49 = vmax.f32 %v1338_v15, 0.0  ;;  %v1341_v50 = vpop.f32.mrb[70].mxu0 }
 0x297   :  { %1838 = vst [vmem:[#allocation2 + $0x20] sm:$0xff] %v1710_v48  ;;  %v1342_v51 = vadd.f32 %v1341_v50, %v3272_v34  ;;  %v1343_v52 = vpop.f32.mrb[71].mxu0 }
 0x298   :  { %1839 = vst [vmem:[#allocation2 + $0x28] sm:$0xff] %v1711_v49  ;;  %v1344_v13 = vadd.f32 %v1343_v52, %v3274_v35 }
 0x299   :  { %v1712_v53 = vmax.f32 %v1342_v51, 0.0 }
 0x29a   :  { %v1713_v54 = vmax.f32 %v1344_v13, 0.0  ;;  %v1347_v55 = vpop.f32.mrb[72].mxu0 }
 0x29b   :  { %1840 = vst [vmem:[#allocation2 + $0x30] sm:$0xff] %v1712_v53  ;;  %v1348_v56 = vadd.f32 %v1347_v55, %v3272_v34  ;;  %v1349_v57 = vpop.f32.mrb[73].mxu0 }
 0x29c   :  { %1841 = vst [vmem:[#allocation2 + $0x38] sm:$0xff] %v1713_v54  ;;  %v1350_v19 = vadd.f32 %v1349_v57, %v3274_v35 }
 0x29d   :  { %v1714_v58 = vmax.f32 %v1348_v56, 0.0 }
 0x29e   :  { %v1715_v59 = vmax.f32 %v1350_v19, 0.0  ;;  %v1353_v60 = vpop.f32.mrb[74].mxu0 }
 0x29f   :  { %1842 = vst [vmem:[#allocation2 + $0x40] sm:$0xff] %v1714_v58  ;;  %v1354_v18 = vadd.f32 %v1353_v60, %v3272_v34  ;;  %v1355_v62 = vpop.f32.mrb[75].mxu0 }
 0x2a0   :  { %1843 = vst [vmem:[#allocation2 + $0x48] sm:$0xff] %v1715_v59  ;;  %v1356_v63 = vadd.f32 %v1355_v62, %v3274_v35 }
 0x2a1   :  { %v1716_v0 = vmax.f32 %v1354_v18, 0.0 }
 0x2a2   :  { %v1717_v22 = vmax.f32 %v1356_v63, 0.0  ;;  %v1359_v61 = vpop.f32.mrb[76].mxu0 }
 0x2a3   :  { %1844 = vst [vmem:[#allocation2 + $0x50] sm:$0xff] %v1716_v0  ;;  %v1360_v3 = vadd.f32 %v1359_v61, %v3272_v34  ;;  %v1361_v21 = vpop.f32.mrb[77].mxu0 }
 0x2a4   :  { %1845 = vst [vmem:[#allocation2 + $0x58] sm:$0xff] %v1717_v22  ;;  %v1362_v4 = vadd.f32 %v1361_v21, %v3274_v35 }
 0x2a5   :  { %v1718_v7 = vmax.f32 %v1360_v3, 0.0 }
 0x2a6   :  { %v1719_v8 = vmax.f32 %v1362_v4, 0.0  ;;  %v1365_v11 = vpop.f32.mrb[78].mxu0 }
 0x2a7   :  { %1846 = vst [vmem:[#allocation2 + $0x60] sm:$0xff] %v1718_v7  ;;  %v1366_v2 = vadd.f32 %v1365_v11, %v3272_v34  ;;  %v1367_v12 = vpop.f32.mrb[79].mxu0 }
 0x2a8   :  { %1847 = vst [vmem:[#allocation2 + $0x68] sm:$0xff] %v1719_v8  ;;  %v1368_v16 = vadd.f32 %v1367_v12, %v3274_v35 }
 0x2a9   :  { %v1720_v17 = vmax.f32 %v1366_v2, 0.0 }
 0x2aa   :  { %v1721_v42 = vmax.f32 %v1368_v16, 0.0  ;;  %v1371_v1 = vpop.f32.mrb[80].mxu0 }
 0x2ab   :  { %1848 = vst [vmem:[#allocation2 + $0x70] sm:$0xff] %v1720_v17  ;;  %v1372_v20 = vadd.f32 %v1371_v1, %v3272_v34  ;;  %v1373_v23 = vpop.f32.mrb[81].mxu0 }
 0x2ac   :  { %1849 = vst [vmem:[#allocation2 + $0x78] sm:$0xff] %v1721_v42  ;;  %v1374_v24 = vadd.f32 %v1373_v23, %v3274_v35 }
 0x2ad   :  { %v1722_v25 = vmax.f32 %v1372_v20, 0.0 }
 0x2ae   :  { %v1723_v26 = vmax.f32 %v1374_v24, 0.0  ;;  %v1377_v6 = vpop.f32.mrb[82].mxu0 }
 0x2af   :  { %1850 = vst [vmem:[#allocation2 + $0x80] sm:$0xff] %v1722_v25  ;;  %v1378_v28 = vadd.f32 %v1377_v6, %v3272_v34  ;;  %v1379_v29 = vpop.f32.mrb[83].mxu0 }
 0x2b0   :  { %1851 = vst [vmem:[#allocation2 + $0x88] sm:$0xff] %v1723_v26  ;;  %v1380_v30 = vadd.f32 %v1379_v29, %v3274_v35 }
 0x2b1   :  { %v1724_v31 = vmax.f32 %v1378_v28, 0.0 }
 0x2b2   :  { %v1725_v32 = vmax.f32 %v1380_v30, 0.0  ;;  %v1383_v5 = vpop.f32.mrb[84].mxu0 }
 0x2b3   :  { %1852 = vst [vmem:[#allocation2 + $0x90] sm:$0xff] %v1724_v31  ;;  %v1384_v33 = vadd.f32 %v1383_v5, %v3272_v34  ;;  %v1385_v36 = vpop.f32.mrb[85].mxu0 }
 0x2b4   :  { %1853 = vst [vmem:[#allocation2 + $0x98] sm:$0xff] %v1725_v32  ;;  %v1386_v14 = vadd.f32 %v1385_v36, %v3274_v35 }
 0x2b5   :  { %v1726_v37 = vmax.f32 %v1384_v33, 0.0 }
 0x2b6   :  { %v1727_v27 = vmax.f32 %v1386_v14, 0.0  ;;  %v1389_v10 = vpop.f32.mrb[86].mxu0 }
 0x2b7   :  { %1854 = vst [vmem:[#allocation2 + $0xa0] sm:$0xff] %v1726_v37  ;;  %v1390_v38 = vadd.f32 %v1389_v10, %v3272_v34  ;;  %v1391_v39 = vpop.f32.mrb[87].mxu0 }
 0x2b8   :  { %1855 = vst [vmem:[#allocation2 + $0xa8] sm:$0xff] %v1727_v27  ;;  %v1392_v40 = vadd.f32 %v1391_v39, %v3274_v35 }
 0x2b9   :  { %v1728_v41 = vmax.f32 %v1390_v38, 0.0 }
 0x2ba   :  { %v1729_v43 = vmax.f32 %v1392_v40, 0.0  ;;  %v1395_v9 = vpop.f32.mrb[88].mxu0 }
 0x2bb   :  { %1856 = vst [vmem:[#allocation2 + $0xb0] sm:$0xff] %v1728_v41  ;;  %v1396_v44 = vadd.f32 %v1395_v9, %v3272_v34  ;;  %v1397_v45 = vpop.f32.mrb[89].mxu0 }
 0x2bc   :  { %1857 = vst [vmem:[#allocation2 + $0xb8] sm:$0xff] %v1729_v43  ;;  %v1398_v46 = vadd.f32 %v1397_v45, %v3274_v35 }
 0x2bd   :  { %v1730_v47 = vmax.f32 %v1396_v44, 0.0 }
 0x2be   :  { %v1731_v15 = vmax.f32 %v1398_v46, 0.0  ;;  %v1401_v48 = vpop.f32.mrb[90].mxu0 }
 0x2bf   :  { %1858 = vst [vmem:[#allocation2 + $0xc0] sm:$0xff] %v1730_v47  ;;  %v1402_v49 = vadd.f32 %v1401_v48, %v3272_v34  ;;  %v1403_v50 = vpop.f32.mrb[91].mxu0 }
 0x2c0   :  { %1859 = vst [vmem:[#allocation2 + $0xc8] sm:$0xff] %v1731_v15  ;;  %v1404_v51 = vadd.f32 %v1403_v50, %v3274_v35 }
 0x2c1   :  { %v1732_v52 = vmax.f32 %v1402_v49, 0.0 }
 0x2c2   :  { %v1733_v13 = vmax.f32 %v1404_v51, 0.0  ;;  %v1407_v53 = vpop.f32.mrb[92].mxu0 }
 0x2c3   :  { %1860 = vst [vmem:[#allocation2 + $0xd0] sm:$0xff] %v1732_v52  ;;  %v1408_v54 = vadd.f32 %v1407_v53, %v3272_v34  ;;  %v1409_v55 = vpop.f32.mrb[93].mxu0 }
 0x2c4   :  { %1861 = vst [vmem:[#allocation2 + $0xd8] sm:$0xff] %v1733_v13  ;;  %v1410_v56 = vadd.f32 %v1409_v55, %v3274_v35 }
 0x2c5   :  { %v1734_v57 = vmax.f32 %v1408_v54, 0.0 }
 0x2c6   :  { %v1735_v19 = vmax.f32 %v1410_v56, 0.0  ;;  %v1413_v58 = vpop.f32.mrb[94].mxu0 }
 0x2c7   :  { %1862 = vst [vmem:[#allocation2 + $0xe0] sm:$0xff] %v1734_v57  ;;  %v1414_v59 = vadd.f32 %v1413_v58, %v3272_v34  ;;  %v1415_v60 = vpop.f32.mrb[95].mxu0 }
 0x2c8   :  { %1863 = vst [vmem:[#allocation2 + $0xe8] sm:$0xff] %v1735_v19  ;;  %v1416_v18 = vadd.f32 %v1415_v60, %v3274_v35 }
 0x2c9   :  { %v1736_v62 = vmax.f32 %v1414_v59, 0.0 }
 0x2ca   :  { %v1737_v63 = vmax.f32 %v1416_v18, 0.0  ;;  %v1419_v0 = vpop.f32.mrb[96].mxu0 }
 0x2cb   :  { %1864 = vst [vmem:[#allocation2 + $0xf0] sm:$0xff] %v1736_v62  ;;  %v1420_v22 = vadd.f32 %v1419_v0, %v3272_v34  ;;  %v1421_v61 = vpop.f32.mrb[97].mxu0 }
 0x2cc   :  { %1865 = vst [vmem:[#allocation2 + $0xf8] sm:$0xff] %v1737_v63  ;;  %v1422_v3 = vadd.f32 %v1421_v61, %v3274_v35 }
 0x2cd   :  { %v1738_v21 = vmax.f32 %v1420_v22, 0.0 }
 0x2ce   :  { %v1739_v4 = vmax.f32 %v1422_v3, 0.0  ;;  %v1425_v7 = vpop.f32.mrb[98].mxu0 }
 0x2cf   :  { %1866 = vst [vmem:[#allocation2 + $0x100] sm:$0xff] %v1738_v21  ;;  %v1426_v8 = vadd.f32 %v1425_v7, %v3272_v34  ;;  %v1427_v11 = vpop.f32.mrb[99].mxu0 }
 0x2d0   :  { %1867 = vst [vmem:[#allocation2 + $0x108] sm:$0xff] %v1739_v4  ;;  %v1428_v2 = vadd.f32 %v1427_v11, %v3274_v35 }
 0x2d1   :  { %v1740_v12 = vmax.f32 %v1426_v8, 0.0 }
 0x2d2   :  { %v1741_v16 = vmax.f32 %v1428_v2, 0.0  ;;  %v1431_v17 = vpop.f32.mrb[100].mxu0  ;;  %v1539_v42 = vpop.f32.mrb[64].mxu1 }
 0x2d3   :  { %1868 = vst [vmem:[#allocation2 + $0x110] sm:$0xff] %v1740_v12  ;;  %v1432_v1 = vadd.f32 %v1431_v17, %v3272_v34  ;;  %v1540_v20 = vadd.f32 %v1539_v42, %v3272_v34  ;;  %v1433_v23 = vpop.f32.mrb[101].mxu0  ;;  %v1541_v24 = vpop.f32.mrb[65].mxu1 }
 0x2d4   :  { %1869 = vst [vmem:[#allocation2 + $0x118] sm:$0xff] %v1741_v16  ;;  %v1434_v25 = vadd.f32 %v1433_v23, %v3274_v35  ;;  %v1542_v26 = vadd.f32 %v1541_v24, %v3274_v35 }
 0x2d5   :  { %v1742_v6 = vmax.f32 %v1432_v1, 0.0  ;;  %v1778_v28 = vmax.f32 %v1540_v20, 0.0 }
 0x2d6   :  { %v1743_v29 = vmax.f32 %v1434_v25, 0.0  ;;  %v1779_v30 = vmax.f32 %v1542_v26, 0.0  ;;  %v1437_v31 = vpop.f32.mrb[102].mxu0  ;;  %v1545_v32 = vpop.f32.mrb[66].mxu1 }
 0x2d7   :  { %1870 = vst [vmem:[#allocation2 + $0x120] sm:$0xff] %v1742_v6  ;;  %1906 = vst [vmem:[#allocation2 + $0x240] sm:$0xff] %v1778_v28  ;;  %v1438_v5 = vadd.f32 %v1437_v31, %v3272_v34  ;;  %v1546_v33 = vadd.f32 %v1545_v32, %v3272_v34  ;;  %v1439_v36 = vpop.f32.mrb[103].mxu0  ;;  %v1547_v14 = vpop.f32.mrb[67].mxu1 }
 0x2d8   :  { %1871 = vst [vmem:[#allocation2 + $0x128] sm:$0xff] %v1743_v29  ;;  %1907 = vst [vmem:[#allocation2 + $0x248] sm:$0xff] %v1779_v30  ;;  %v1440_v37 = vadd.f32 %v1439_v36, %v3274_v35  ;;  %v1548_v27 = vadd.f32 %v1547_v14, %v3274_v35 }
 0x2d9   :  { %v1744_v10 = vmax.f32 %v1438_v5, 0.0  ;;  %v1780_v38 = vmax.f32 %v1546_v33, 0.0 }
 0x2da   :  { %v1745_v39 = vmax.f32 %v1440_v37, 0.0  ;;  %v1781_v40 = vmax.f32 %v1548_v27, 0.0  ;;  %v1443_v41 = vpop.f32.mrb[104].mxu0  ;;  %v1551_v43 = vpop.f32.mrb[68].mxu1 }
 0x2db   :  { %1872 = vst [vmem:[#allocation2 + $0x130] sm:$0xff] %v1744_v10  ;;  %1908 = vst [vmem:[#allocation2 + $0x250] sm:$0xff] %v1780_v38  ;;  %v1444_v9 = vadd.f32 %v1443_v41, %v3272_v34  ;;  %v1552_v44 = vadd.f32 %v1551_v43, %v3272_v34  ;;  %v1445_v45 = vpop.f32.mrb[105].mxu0  ;;  %v1553_v46 = vpop.f32.mrb[69].mxu1 }
 0x2dc   :  { %1873 = vst [vmem:[#allocation2 + $0x138] sm:$0xff] %v1745_v39  ;;  %1909 = vst [vmem:[#allocation2 + $0x258] sm:$0xff] %v1781_v40  ;;  %v1446_v47 = vadd.f32 %v1445_v45, %v3274_v35  ;;  %v1554_v15 = vadd.f32 %v1553_v46, %v3274_v35 }
 0x2dd   :  { %v1746_v48 = vmax.f32 %v1444_v9, 0.0  ;;  %v1782_v49 = vmax.f32 %v1552_v44, 0.0 }
 0x2de   :  { %v1747_v50 = vmax.f32 %v1446_v47, 0.0  ;;  %v1783_v51 = vmax.f32 %v1554_v15, 0.0  ;;  %v1449_v52 = vpop.f32.mrb[106].mxu0  ;;  %v1557_v13 = vpop.f32.mrb[70].mxu1 }
 0x2df   :  { %1874 = vst [vmem:[#allocation2 + $0x140] sm:$0xff] %v1746_v48  ;;  %1910 = vst [vmem:[#allocation2 + $0x260] sm:$0xff] %v1782_v49  ;;  %v1450_v53 = vadd.f32 %v1449_v52, %v3272_v34  ;;  %v1558_v54 = vadd.f32 %v1557_v13, %v3272_v34  ;;  %v1451_v55 = vpop.f32.mrb[107].mxu0  ;;  %v1559_v56 = vpop.f32.mrb[71].mxu1 }
 0x2e0   :  { %1875 = vst [vmem:[#allocation2 + $0x148] sm:$0xff] %v1747_v50  ;;  %1911 = vst [vmem:[#allocation2 + $0x268] sm:$0xff] %v1783_v51  ;;  %v1452_v57 = vadd.f32 %v1451_v55, %v3274_v35  ;;  %v1560_v19 = vadd.f32 %v1559_v56, %v3274_v35 }
 0x2e1   :  { %v1748_v58 = vmax.f32 %v1450_v53, 0.0  ;;  %v1784_v59 = vmax.f32 %v1558_v54, 0.0 }
 0x2e2   :  { %v1749_v60 = vmax.f32 %v1452_v57, 0.0  ;;  %v1785_v18 = vmax.f32 %v1560_v19, 0.0  ;;  %v1455_v62 = vpop.f32.mrb[108].mxu0  ;;  %v1563_v63 = vpop.f32.mrb[72].mxu1 }
 0x2e3   :  { %1876 = vst [vmem:[#allocation2 + $0x150] sm:$0xff] %v1748_v58  ;;  %1912 = vst [vmem:[#allocation2 + $0x270] sm:$0xff] %v1784_v59  ;;  %v1456_v0 = vadd.f32 %v1455_v62, %v3272_v34  ;;  %v1564_v22 = vadd.f32 %v1563_v63, %v3272_v34  ;;  %v1457_v61 = vpop.f32.mrb[109].mxu0  ;;  %v1565_v3 = vpop.f32.mrb[73].mxu1 }
 0x2e4   :  { %1877 = vst [vmem:[#allocation2 + $0x158] sm:$0xff] %v1749_v60  ;;  %1913 = vst [vmem:[#allocation2 + $0x278] sm:$0xff] %v1785_v18  ;;  %v1458_v21 = vadd.f32 %v1457_v61, %v3274_v35  ;;  %v1566_v4 = vadd.f32 %v1565_v3, %v3274_v35 }
 0x2e5   :  { %v1750_v7 = vmax.f32 %v1456_v0, 0.0  ;;  %v1786_v8 = vmax.f32 %v1564_v22, 0.0 }
 0x2e6   :  { %v1751_v11 = vmax.f32 %v1458_v21, 0.0  ;;  %v1787_v2 = vmax.f32 %v1566_v4, 0.0  ;;  %v1461_v12 = vpop.f32.mrb[110].mxu0  ;;  %v1569_v16 = vpop.f32.mrb[74].mxu1 }
 0x2e7   :  { %1878 = vst [vmem:[#allocation2 + $0x160] sm:$0xff] %v1750_v7  ;;  %1914 = vst [vmem:[#allocation2 + $0x280] sm:$0xff] %v1786_v8  ;;  %v1462_v17 = vadd.f32 %v1461_v12, %v3272_v34  ;;  %v1570_v42 = vadd.f32 %v1569_v16, %v3272_v34  ;;  %v1463_v1 = vpop.f32.mrb[111].mxu0  ;;  %v1571_v20 = vpop.f32.mrb[75].mxu1 }
 0x2e8   :  { %1879 = vst [vmem:[#allocation2 + $0x168] sm:$0xff] %v1751_v11  ;;  %1915 = vst [vmem:[#allocation2 + $0x288] sm:$0xff] %v1787_v2  ;;  %v1464_v23 = vadd.f32 %v1463_v1, %v3274_v35  ;;  %v1572_v24 = vadd.f32 %v1571_v20, %v3274_v35 }
 0x2e9   :  { %v1752_v25 = vmax.f32 %v1462_v17, 0.0  ;;  %v1788_v26 = vmax.f32 %v1570_v42, 0.0 }
 0x2ea   :  { %v1753_v6 = vmax.f32 %v1464_v23, 0.0  ;;  %v1789_v28 = vmax.f32 %v1572_v24, 0.0  ;;  %v1467_v29 = vpop.f32.mrb[112].mxu0  ;;  %v1575_v30 = vpop.f32.mrb[76].mxu1 }
 0x2eb   :  { %1880 = vst [vmem:[#allocation2 + $0x170] sm:$0xff] %v1752_v25  ;;  %1916 = vst [vmem:[#allocation2 + $0x290] sm:$0xff] %v1788_v26  ;;  %v1468_v31 = vadd.f32 %v1467_v29, %v3272_v34  ;;  %v1576_v32 = vadd.f32 %v1575_v30, %v3272_v34  ;;  %v1469_v5 = vpop.f32.mrb[113].mxu0  ;;  %v1577_v33 = vpop.f32.mrb[77].mxu1 }
 0x2ec   :  { %1881 = vst [vmem:[#allocation2 + $0x178] sm:$0xff] %v1753_v6  ;;  %1917 = vst [vmem:[#allocation2 + $0x298] sm:$0xff] %v1789_v28  ;;  %v1470_v36 = vadd.f32 %v1469_v5, %v3274_v35  ;;  %v1578_v14 = vadd.f32 %v1577_v33, %v3274_v35 }
 0x2ed   :  { %v1754_v37 = vmax.f32 %v1468_v31, 0.0  ;;  %v1790_v27 = vmax.f32 %v1576_v32, 0.0 }
 0x2ee   :  { %v1755_v10 = vmax.f32 %v1470_v36, 0.0  ;;  %v1791_v38 = vmax.f32 %v1578_v14, 0.0  ;;  %v1473_v39 = vpop.f32.mrb[114].mxu0  ;;  %v1581_v40 = vpop.f32.mrb[78].mxu1 }
 0x2ef   :  { %1882 = vst [vmem:[#allocation2 + $0x180] sm:$0xff] %v1754_v37  ;;  %1918 = vst [vmem:[#allocation2 + $0x2a0] sm:$0xff] %v1790_v27  ;;  %v1474_v41 = vadd.f32 %v1473_v39, %v3272_v34  ;;  %v1582_v43 = vadd.f32 %v1581_v40, %v3272_v34  ;;  %v1475_v9 = vpop.f32.mrb[115].mxu0  ;;  %v1583_v44 = vpop.f32.mrb[79].mxu1 }
 0x2f0   :  { %1883 = vst [vmem:[#allocation2 + $0x188] sm:$0xff] %v1755_v10  ;;  %1919 = vst [vmem:[#allocation2 + $0x2a8] sm:$0xff] %v1791_v38  ;;  %v1476_v45 = vadd.f32 %v1475_v9, %v3274_v35  ;;  %v1584_v46 = vadd.f32 %v1583_v44, %v3274_v35 }
 0x2f1   :  { %v1756_v47 = vmax.f32 %v1474_v41, 0.0  ;;  %v1792_v15 = vmax.f32 %v1582_v43, 0.0 }
 0x2f2   :  { %v1757_v48 = vmax.f32 %v1476_v45, 0.0  ;;  %v1793_v49 = vmax.f32 %v1584_v46, 0.0  ;;  %v1479_v50 = vpop.f32.mrb[116].mxu0  ;;  %v1587_v51 = vpop.f32.mrb[80].mxu1 }
 0x2f3   :  { %1884 = vst [vmem:[#allocation2 + $0x190] sm:$0xff] %v1756_v47  ;;  %1920 = vst [vmem:[#allocation2 + $0x2b0] sm:$0xff] %v1792_v15  ;;  %v1480_v52 = vadd.f32 %v1479_v50, %v3272_v34  ;;  %v1588_v13 = vadd.f32 %v1587_v51, %v3272_v34  ;;  %v1481_v53 = vpop.f32.mrb[117].mxu0  ;;  %v1589_v54 = vpop.f32.mrb[81].mxu1 }
 0x2f4   :  { %1885 = vst [vmem:[#allocation2 + $0x198] sm:$0xff] %v1757_v48  ;;  %1921 = vst [vmem:[#allocation2 + $0x2b8] sm:$0xff] %v1793_v49  ;;  %v1482_v55 = vadd.f32 %v1481_v53, %v3274_v35  ;;  %v1590_v56 = vadd.f32 %v1589_v54, %v3274_v35 }
 0x2f5   :  { %v1758_v57 = vmax.f32 %v1480_v52, 0.0  ;;  %v1794_v19 = vmax.f32 %v1588_v13, 0.0 }
 0x2f6   :  { %v1759_v58 = vmax.f32 %v1482_v55, 0.0  ;;  %v1795_v59 = vmax.f32 %v1590_v56, 0.0  ;;  %v1485_v60 = vpop.f32.mrb[118].mxu0  ;;  %v1593_v18 = vpop.f32.mrb[82].mxu1 }
 0x2f7   :  { %1886 = vst [vmem:[#allocation2 + $0x1a0] sm:$0xff] %v1758_v57  ;;  %1922 = vst [vmem:[#allocation2 + $0x2c0] sm:$0xff] %v1794_v19  ;;  %v1486_v62 = vadd.f32 %v1485_v60, %v3272_v34  ;;  %v1594_v63 = vadd.f32 %v1593_v18, %v3272_v34  ;;  %v1487_v0 = vpop.f32.mrb[119].mxu0  ;;  %v1595_v22 = vpop.f32.mrb[83].mxu1 }
 0x2f8   :  { %1887 = vst [vmem:[#allocation2 + $0x1a8] sm:$0xff] %v1759_v58  ;;  %1923 = vst [vmem:[#allocation2 + $0x2c8] sm:$0xff] %v1795_v59  ;;  %v1488_v61 = vadd.f32 %v1487_v0, %v3274_v35  ;;  %v1596_v3 = vadd.f32 %v1595_v22, %v3274_v35 }
 0x2f9   :  { %v1760_v21 = vmax.f32 %v1486_v62, 0.0  ;;  %v1796_v4 = vmax.f32 %v1594_v63, 0.0 }
 0x2fa   :  { %v1761_v7 = vmax.f32 %v1488_v61, 0.0  ;;  %v1797_v8 = vmax.f32 %v1596_v3, 0.0  ;;  %v1491_v11 = vpop.f32.mrb[120].mxu0  ;;  %v1599_v2 = vpop.f32.mrb[84].mxu1 }
 0x2fb   :  { %1888 = vst [vmem:[#allocation2 + $0x1b0] sm:$0xff] %v1760_v21  ;;  %1924 = vst [vmem:[#allocation2 + $0x2d0] sm:$0xff] %v1796_v4  ;;  %v1492_v12 = vadd.f32 %v1491_v11, %v3272_v34  ;;  %v1600_v16 = vadd.f32 %v1599_v2, %v3272_v34  ;;  %v1493_v17 = vpop.f32.mrb[121].mxu0  ;;  %v1601_v42 = vpop.f32.mrb[85].mxu1 }
 0x2fc   :  { %1889 = vst [vmem:[#allocation2 + $0x1b8] sm:$0xff] %v1761_v7  ;;  %1925 = vst [vmem:[#allocation2 + $0x2d8] sm:$0xff] %v1797_v8  ;;  %v1494_v1 = vadd.f32 %v1493_v17, %v3274_v35  ;;  %v1602_v20 = vadd.f32 %v1601_v42, %v3274_v35 }
 0x2fd   :  { %v1762_v23 = vmax.f32 %v1492_v12, 0.0  ;;  %v1798_v24 = vmax.f32 %v1600_v16, 0.0 }
 0x2fe   :  { %v1763_v25 = vmax.f32 %v1494_v1, 0.0  ;;  %v1799_v26 = vmax.f32 %v1602_v20, 0.0  ;;  %v1497_v6 = vpop.f32.mrb[122].mxu0  ;;  %v1605_v28 = vpop.f32.mrb[86].mxu1 }
 0x2ff   :  { %1890 = vst [vmem:[#allocation2 + $0x1c0] sm:$0xff] %v1762_v23  ;;  %1926 = vst [vmem:[#allocation2 + $0x2e0] sm:$0xff] %v1798_v24  ;;  %v1498_v29 = vadd.f32 %v1497_v6, %v3272_v34  ;;  %v1606_v30 = vadd.f32 %v1605_v28, %v3272_v34  ;;  %v1499_v31 = vpop.f32.mrb[123].mxu0  ;;  %v1607_v32 = vpop.f32.mrb[87].mxu1 }
 0x300   :  { %1891 = vst [vmem:[#allocation2 + $0x1c8] sm:$0xff] %v1763_v25  ;;  %1927 = vst [vmem:[#allocation2 + $0x2e8] sm:$0xff] %v1799_v26  ;;  %v1500_v5 = vadd.f32 %v1499_v31, %v3274_v35  ;;  %v1608_v33 = vadd.f32 %v1607_v32, %v3274_v35 }
 0x301   :  { %v1764_v36 = vmax.f32 %v1498_v29, 0.0  ;;  %v1800_v14 = vmax.f32 %v1606_v30, 0.0 }
 0x302   :  { %v1765_v37 = vmax.f32 %v1500_v5, 0.0  ;;  %v1801_v27 = vmax.f32 %v1608_v33, 0.0  ;;  %v1503_v10 = vpop.f32.mrb[124].mxu0  ;;  %v1611_v38 = vpop.f32.mrb[88].mxu1 }
 0x303   :  { %1892 = vst [vmem:[#allocation2 + $0x1d0] sm:$0xff] %v1764_v36  ;;  %1928 = vst [vmem:[#allocation2 + $0x2f0] sm:$0xff] %v1800_v14  ;;  %v1504_v39 = vadd.f32 %v1503_v10, %v3272_v34  ;;  %v1612_v40 = vadd.f32 %v1611_v38, %v3272_v34  ;;  %v1505_v41 = vpop.f32.mrb[125].mxu0  ;;  %v1613_v43 = vpop.f32.mrb[89].mxu1 }
 0x304   :  { %1893 = vst [vmem:[#allocation2 + $0x1d8] sm:$0xff] %v1765_v37  ;;  %1929 = vst [vmem:[#allocation2 + $0x2f8] sm:$0xff] %v1801_v27  ;;  %v1506_v9 = vadd.f32 %v1505_v41, %v3274_v35  ;;  %v1614_v44 = vadd.f32 %v1613_v43, %v3274_v35 }
 0x305   :  { %v1766_v45 = vmax.f32 %v1504_v39, 0.0  ;;  %v1802_v46 = vmax.f32 %v1612_v40, 0.0 }
 0x306   :  { %v1767_v47 = vmax.f32 %v1506_v9, 0.0  ;;  %v1803_v15 = vmax.f32 %v1614_v44, 0.0  ;;  %v1509_v48 = vpop.f32.mrb[126].mxu0  ;;  %v1617_v49 = vpop.f32.mrb[90].mxu1 }
 0x307   :  { %1894 = vst [vmem:[#allocation2 + $0x1e0] sm:$0xff] %v1766_v45  ;;  %1930 = vst [vmem:[#allocation2 + $0x300] sm:$0xff] %v1802_v46  ;;  %v1510_v50 = vadd.f32 %v1509_v48, %v3272_v34  ;;  %v1618_v51 = vadd.f32 %v1617_v49, %v3272_v34  ;;  %v1511_v52 = vpop.f32.mrb[127].mxu0  ;;  %v1619_v13 = vpop.f32.mrb[91].mxu1 }
 0x308   :  { %1895 = vst [vmem:[#allocation2 + $0x1e8] sm:$0xff] %v1767_v47  ;;  %1931 = vst [vmem:[#allocation2 + $0x308] sm:$0xff] %v1803_v15  ;;  %v1512_v53 = vadd.f32 %v1511_v52, %v3274_v35  ;;  %v1620_v54 = vadd.f32 %v1619_v13, %v3274_v35 }
 0x309   :  { %v1768_v55 = vmax.f32 %v1510_v50, 0.0  ;;  %v1804_v56 = vmax.f32 %v1618_v51, 0.0 }
 0x30a   :  { %v1769_v57 = vmax.f32 %v1512_v53, 0.0  ;;  %v1805_v19 = vmax.f32 %v1620_v54, 0.0  ;;  %v1515_v58 = vpop.f32.mrb[128].mxu0  ;;  %v1623_v59 = vpop.f32.mrb[92].mxu1 }
 0x30b   :  { %1896 = vst [vmem:[#allocation2 + $0x1f0] sm:$0xff] %v1768_v55  ;;  %1932 = vst [vmem:[#allocation2 + $0x310] sm:$0xff] %v1804_v56  ;;  %v1516_v60 = vadd.f32 %v1515_v58, %v3272_v34  ;;  %v1624_v18 = vadd.f32 %v1623_v59, %v3272_v34  ;;  %v1517_v62 = vpop.f32.mrb[129].mxu0  ;;  %v1625_v63 = vpop.f32.mrb[93].mxu1 }
 0x30c   :  { %1897 = vst [vmem:[#allocation2 + $0x1f8] sm:$0xff] %v1769_v57  ;;  %1933 = vst [vmem:[#allocation2 + $0x318] sm:$0xff] %v1805_v19  ;;  %v1518_v0 = vadd.f32 %v1517_v62, %v3274_v35  ;;  %v1626_v22 = vadd.f32 %v1625_v63, %v3274_v35 }
 0x30d   :  { %v1770_v61 = vmax.f32 %v1516_v60, 0.0  ;;  %v1806_v3 = vmax.f32 %v1624_v18, 0.0 }
 0x30e   :  { %v1771_v21 = vmax.f32 %v1518_v0, 0.0  ;;  %v1807_v4 = vmax.f32 %v1626_v22, 0.0  ;;  %v1521_v7 = vpop.f32.mrb[130].mxu0  ;;  %v1629_v8 = vpop.f32.mrb[94].mxu1 }
 0x30f   :  { %1898 = vst [vmem:[#allocation2 + $0x200] sm:$0xff] %v1770_v61  ;;  %1934 = vst [vmem:[#allocation2 + $0x320] sm:$0xff] %v1806_v3  ;;  %v1522_v11 = vadd.f32 %v1521_v7, %v3272_v34  ;;  %v1630_v2 = vadd.f32 %v1629_v8, %v3272_v34  ;;  %v1523_v12 = vpop.f32.mrb[131].mxu0  ;;  %v1631_v16 = vpop.f32.mrb[95].mxu1 }
 0x310   :  { %1899 = vst [vmem:[#allocation2 + $0x208] sm:$0xff] %v1771_v21  ;;  %1935 = vst [vmem:[#allocation2 + $0x328] sm:$0xff] %v1807_v4  ;;  %v1524_v17 = vadd.f32 %v1523_v12, %v3274_v35  ;;  %v1632_v42 = vadd.f32 %v1631_v16, %v3274_v35 }
 0x311   :  { %v1772_v1 = vmax.f32 %v1522_v11, 0.0  ;;  %v1808_v20 = vmax.f32 %v1630_v2, 0.0 }
 0x312   :  { %v1773_v23 = vmax.f32 %v1524_v17, 0.0  ;;  %v1809_v24 = vmax.f32 %v1632_v42, 0.0  ;;  %v1527_v25 = vpop.f32.mrb[132].mxu0  ;;  %v1635_v26 = vpop.f32.mrb[96].mxu1 }
 0x313   :  { %1900 = vst [vmem:[#allocation2 + $0x210] sm:$0xff] %v1772_v1  ;;  %1936 = vst [vmem:[#allocation2 + $0x330] sm:$0xff] %v1808_v20  ;;  %v1528_v6 = vadd.f32 %v1527_v25, %v3272_v34  ;;  %v1636_v28 = vadd.f32 %v1635_v26, %v3272_v34  ;;  %v1529_v29 = vpop.f32.mrb[133].mxu0  ;;  %v1637_v30 = vpop.f32.mrb[97].mxu1 }
 0x314   :  { %1901 = vst [vmem:[#allocation2 + $0x218] sm:$0xff] %v1773_v23  ;;  %1937 = vst [vmem:[#allocation2 + $0x338] sm:$0xff] %v1809_v24  ;;  %v1530_v31 = vadd.f32 %v1529_v29, %v3274_v35  ;;  %v1638_v32 = vadd.f32 %v1637_v30, %v3274_v35 }
 0x315   :  { %v1774_v5 = vmax.f32 %v1528_v6, 0.0  ;;  %v1810_v33 = vmax.f32 %v1636_v28, 0.0 }
 0x316   :  { %v1775_v36 = vmax.f32 %v1530_v31, 0.0  ;;  %v1811_v14 = vmax.f32 %v1638_v32, 0.0  ;;  %v1533_v37 = vpop.f32.mrb[134].mxu0  ;;  %v1641_v27 = vpop.f32.mrb[98].mxu1 }
 0x317   :  { %1902 = vst [vmem:[#allocation2 + $0x220] sm:$0xff] %v1774_v5  ;;  %1938 = vst [vmem:[#allocation2 + $0x340] sm:$0xff] %v1810_v33  ;;  %v1534_v10 = vadd.f32 %v1533_v37, %v3272_v34  ;;  %v1642_v38 = vadd.f32 %v1641_v27, %v3272_v34  ;;  %v1535_v39 = vpop.f32.mrb[135].mxu0  ;;  %v1643_v40 = vpop.f32.mrb[99].mxu1 }
 0x318   :  { %1903 = vst [vmem:[#allocation2 + $0x228] sm:$0xff] %v1775_v36  ;;  %1939 = vst [vmem:[#allocation2 + $0x348] sm:$0xff] %v1811_v14  ;;  %v1536_v41 = vadd.f32 %v1535_v39, %v3274_v35  ;;  %v1644_v43 = vadd.f32 %v1643_v40, %v3274_v35 }
 0x319   :  { %v1776_v9 = vmax.f32 %v1534_v10, 0.0  ;;  %v1812_v44 = vmax.f32 %v1642_v38, 0.0 }
 0x31a   :  { %v1777_v45 = vmax.f32 %v1536_v41, 0.0  ;;  %v1813_v46 = vmax.f32 %v1644_v43, 0.0  ;;  %v1647_v47 = vpop.f32.mrb[100].mxu1 }
 0x31b   :  { %1904 = vst [vmem:[#allocation2 + $0x230] sm:$0xff] %v1776_v9  ;;  %1940 = vst [vmem:[#allocation2 + $0x350] sm:$0xff] %v1812_v44  ;;  %v1648_v15 = vadd.f32 %v1647_v47, %v3272_v34  ;;  %v1649_v48 = vpop.f32.mrb[101].mxu1 }
 0x31c   :  { %1905 = vst [vmem:[#allocation2 + $0x238] sm:$0xff] %v1777_v45  ;;  %1941 = vst [vmem:[#allocation2 + $0x358] sm:$0xff] %v1813_v46  ;;  %v1650_v49 = vadd.f32 %v1649_v48, %v3274_v35 }
 0x31d   :  { %v1814_v50 = vmax.f32 %v1648_v15, 0.0 }
 0x31e   :  { %v1815_v51 = vmax.f32 %v1650_v49, 0.0  ;;  %v1653_v52 = vpop.f32.mrb[102].mxu1 }
 0x31f   :  { %1942 = vst [vmem:[#allocation2 + $0x360] sm:$0xff] %v1814_v50  ;;  %v1654_v13 = vadd.f32 %v1653_v52, %v3272_v34  ;;  %v1655_v53 = vpop.f32.mrb[103].mxu1 }
 0x320   :  { %1943 = vst [vmem:[#allocation2 + $0x368] sm:$0xff] %v1815_v51  ;;  %v1656_v54 = vadd.f32 %v1655_v53, %v3274_v35 }
 0x321   :  { %v1816_v55 = vmax.f32 %v1654_v13, 0.0 }
 0x322   :  { %v1817_v56 = vmax.f32 %v1656_v54, 0.0  ;;  %v1659_v57 = vpop.f32.mrb[104].mxu1 }
 0x323   :  { %1944 = vst [vmem:[#allocation2 + $0x370] sm:$0xff] %v1816_v55  ;;  %v1660_v19 = vadd.f32 %v1659_v57, %v3272_v34  ;;  %v1661_v58 = vpop.f32.mrb[105].mxu1 }
 0x324   :  { %1945 = vst [vmem:[#allocation2 + $0x378] sm:$0xff] %v1817_v56  ;;  %v1662_v59 = vadd.f32 %v1661_v58, %v3274_v35 }
 0x325   :  { %v1818_v60 = vmax.f32 %v1660_v19, 0.0 }
 0x326   :  { %v1819_v18 = vmax.f32 %v1662_v59, 0.0  ;;  %v1665_v62 = vpop.f32.mrb[106].mxu1 }
 0x327   :  { %1946 = vst [vmem:[#allocation2 + $0x380] sm:$0xff] %v1818_v60  ;;  %v1666_v63 = vadd.f32 %v1665_v62, %v3272_v34  ;;  %v1667_v0 = vpop.f32.mrb[107].mxu1 }
 0x328   :  { %1947 = vst [vmem:[#allocation2 + $0x388] sm:$0xff] %v1819_v18  ;;  %v1668_v22 = vadd.f32 %v1667_v0, %v3274_v35 }
 0x329   :  { %v1820_v61 = vmax.f32 %v1666_v63, 0.0 }
 0x32a   :  { %v1821_v3 = vmax.f32 %v1668_v22, 0.0  ;;  %v1671_v21 = vpop.f32.mrb[108].mxu1 }
 0x32b   :  { %1948 = vst [vmem:[#allocation2 + $0x390] sm:$0xff] %v1820_v61  ;;  %v1672_v4 = vadd.f32 %v1671_v21, %v3272_v34  ;;  %v1673_v7 = vpop.f32.mrb[109].mxu1 }
 0x32c   :  { %1949 = vst [vmem:[#allocation2 + $0x398] sm:$0xff] %v1821_v3  ;;  %v1674_v8 = vadd.f32 %v1673_v7, %v3274_v35 }
 0x32d   :  { %v1822_v11 = vmax.f32 %v1672_v4, 0.0 }
 0x32e   :  { %v1823_v2 = vmax.f32 %v1674_v8, 0.0  ;;  %v1677_v12 = vpop.f32.mrb[110].mxu1 }
 0x32f   :  { %1950 = vst [vmem:[#allocation2 + $0x3a0] sm:$0xff] %v1822_v11  ;;  %v1678_v16 = vadd.f32 %v1677_v12, %v3272_v34  ;;  %v1679_v17 = vpop.f32.mrb[111].mxu1 }
 0x330   :  { %1951 = vst [vmem:[#allocation2 + $0x3a8] sm:$0xff] %v1823_v2  ;;  %v1680_v42 = vadd.f32 %v1679_v17, %v3274_v35 }
 0x331   :  { %v1824_v1 = vmax.f32 %v1678_v16, 0.0 }
 0x332   :  { %v1825_v20 = vmax.f32 %v1680_v42, 0.0  ;;  %v1683_v23 = vpop.f32.mrb[112].mxu1 }
 0x333   :  { %1952 = vst [vmem:[#allocation2 + $0x3b0] sm:$0xff] %v1824_v1  ;;  %v1684_v24 = vadd.f32 %v1683_v23, %v3272_v34  ;;  %v1685_v25 = vpop.f32.mrb[113].mxu1 }
 0x334   :  { %1953 = vst [vmem:[#allocation2 + $0x3b8] sm:$0xff] %v1825_v20  ;;  %v1686_v26 = vadd.f32 %v1685_v25, %v3274_v35 }
 0x335   :  { %v1826_v6 = vmax.f32 %v1684_v24, 0.0 }
 0x336   :  { %v1827_v28 = vmax.f32 %v1686_v26, 0.0  ;;  %v1689_v29 = vpop.f32.mrb[114].mxu1 }
 0x337   :  { %1954 = vst [vmem:[#allocation2 + $0x3c0] sm:$0xff] %v1826_v6  ;;  %v1690_v30 = vadd.f32 %v1689_v29, %v3272_v34  ;;  %v1691_v31 = vpop.f32.mrb[115].mxu1 }
 0x338   :  { %1955 = vst [vmem:[#allocation2 + $0x3c8] sm:$0xff] %v1827_v28  ;;  %v1692_v32 = vadd.f32 %v1691_v31, %v3274_v35 }
 0x339   :  { %v1828_v5 = vmax.f32 %v1690_v30, 0.0 }
 0x33a   :  { %v1829_v33 = vmax.f32 %v1692_v32, 0.0  ;;  %v1695_v36 = vpop.f32.mrb[116].mxu1 }
 0x33b   :  { %1956 = vst [vmem:[#allocation2 + $0x3d0] sm:$0xff] %v1828_v5  ;;  %v1696_v14 = vadd.f32 %v1695_v36, %v3272_v34  ;;  %v1697_v37 = vpop.f32.mrb[117].mxu1 }
 0x33c   :  { %1957 = vst [vmem:[#allocation2 + $0x3d8] sm:$0xff] %v1829_v33  ;;  %v1698_v27 = vadd.f32 %v1697_v37, %v3274_v35 }
 0x33d   :  { %v1830_v10 = vmax.f32 %v1696_v14, 0.0 }
 0x33e   :  { %v1831_v38 = vmax.f32 %v1698_v27, 0.0  ;;  %v1701_v39 = vpop.f32.mrb[118].mxu1 }
 0x33f   :  { %1958 = vst [vmem:[#allocation2 + $0x3e0] sm:$0xff] %v1830_v10  ;;  %v1702_v40 = vadd.f32 %v1701_v39, %v3272_v34  ;;  %v1703_v41 = vpop.f32.mrb[119].mxu1 }
 0x340   :  { %1959 = vst [vmem:[#allocation2 + $0x3e8] sm:$0xff] %v1831_v38  ;;  %v1704_v43 = vadd.f32 %v1703_v41, %v3274_v35 }
 0x341   :  { %v1832_v9 = vmax.f32 %v1702_v40, 0.0 }
 0x342   :  { %v1833_v44 = vmax.f32 %v1704_v43, 0.0 }
 0x343   :  { %1960 = vst [vmem:[#allocation2 + $0x3f0] sm:$0xff] %v1832_v9 }
 0x344   :  { %1961 = vst [vmem:[#allocation2 + $0x3f8] sm:$0xff] %v1833_v44 }
 0x345   :  { %2510 = shalt.err (!%p2507_p4)
}
 0x346   :  { %s2511_s1 = scalar_lea.hbm %s3423_s7, 16384 }
 0x347   :  { %p2512_p5 = scmp.ne.s32.totalorder %s3423_s7, %s2511_s1  ;;  %p2515_p6 = scmp.lt.u32.totalorder %s2511_s1, %s3423_s7 }
 0x349   :  { %p2517_p7 = pnand %p2515_p6, %p2512_p5 }
 0x34b   :  { %2520 = shalt.err (!%p2517_p7)
}
 0x34c   :  { %s2525_s13 = smov 256   ;;  %s2526_s14 = smov 16  }
 0x34d   :  { %1973 = dma.vmem_to_hbm [thread:$0]  %s1968_s29, 16384, %s3423_s7, [#allocation3], %s2525_s13, %s2525_s13, %s2526_s14  }
 0x34e   :  { %2521 = dma.done.wait [#allocation3], 16384  }
 0x34f   :  { %2522 = vsyncadd [#allocation3], 4294950912 }
 0x350   :  { %1977 = vsyncpa [#allocation3], 1 }

// kernel: tpu_custom_call.1
= control target key start
LH: loop header
LB: loop body
LE: loop exit
PB: predicated region body
PF: predicated region fallthrough
CT: control target
= control target key end

     0   :  { %vm99_vm0 = vcmask 64512   ;;  %s3416_s0 = inlined_call_operand.vmem [shape: f32[512,8], index: 0, kind: input, shape index: {}]   ;;  %s3417_s1 = inlined_call_operand.vmem [shape: f32[8,128], index: 1, kind: input, shape index: {}]   ;;  %s3418_s2 = inlined_call_operand.vmem [shape: f32[1,128], index: 2, kind: input, shape index: {}]   ;;  %s3419_s3 = inlined_call_operand.vmem [shape: f32[128,128], index: 3, kind: input, shape index: {}]   ;;  %s3420_s4 = inlined_call_operand.vmem [shape: f32[1,128], index: 4, kind: input, shape index: {}]   ;;  %s3421_s5 = inlined_call_operand.vmem [shape: f32[128,256], index: 5, kind: input, shape index: {}]   ;;  %s3422_s6 = inlined_call_operand.vmem [shape: f32[1,256], index: 6, kind: input, shape index: {}]   ;;  %s3423_s7 = inlined_call_operand.hbm [shape: f32[512,256], index: 7, kind: output, shape index: {}]  }
   0x1   :  { %v91_v0 = vld [vmem:[%s3417_s1] sm:$0xff]  ;;  %v28_v2 = vld [vmem:[%s3416_s0 + $0x8] sm:$0xff]  ;;  %v29_v3 = vld [vmem:[%s3416_s0 + $0x10] sm:$0xff] }
   0x2   :  { %v27_v1 = vld [vmem:[%s3416_s0] sm:$0xff]  ;;  %2189 = vmatprep.subr.mxu0 %v91_v0  ;;  %v30_v4 = vld [vmem:[%s3416_s0 + $0x18] sm:$0xff]  ;;  %v32_v6 = vld [vmem:[%s3416_s0 + $0x28] sm:$0xff] }
   0x3   :  { %2191 = vmatprep.mubr.msk.f32.mxu0 %vm99_vm0, %v27_v1  ;;  %2190 = vmatpush3.msra.mxu0 %v91_v0  ;;  %v31_v5 = vld [vmem:[%s3416_s0 + $0x20] sm:$0xff]  ;;  %v33_v7 = vld [vmem:[%s3416_s0 + $0x30] sm:$0xff]  ;;  %v34_v8 = vld [vmem:[%s3416_s0 + $0x38] sm:$0xff] }
   0x4   :  { %2192 = vmatmul.mubr.msk.f32.vlgmr.msra.gmra.mrb[0].mxu0 %vm99_vm0, %v28_v2  ;;  %v35_v9 = vld [vmem:[%s3416_s0 + $0x40] sm:$0xff]  ;;  %v36_v10 = vld [vmem:[%s3416_s0 + $0x48] sm:$0xff]  ;;  %v37_v11 = vld [vmem:[%s3416_s0 + $0x50] sm:$0xff] }
   0x5   :  { %2194 = vmatprep.mubr.msk.f32.mxu0 %vm99_vm0, %v29_v3  ;;  %v38_v12 = vld [vmem:[%s3416_s0 + $0x58] sm:$0xff]  ;;  %v39_v13 = vld [vmem:[%s3416_s0 + $0x60] sm:$0xff]  ;;  %v742_v15 = vld [vmem:[%s3419_s3 + $0x8] sm:$0xff] }
   0x6   :  { %v741_v14 = vld [vmem:[%s3419_s3] sm:$0xff]  ;;  %v743_v16 = vld [vmem:[%s3419_s3 + $0x10] sm:$0xff]  ;;  %v744_v17 = vld [vmem:[%s3419_s3 + $0x18] sm:$0xff] }
   0x7   :  { %v2415_v18 = vpack.c.bf16 %v742_v15, %v741_v14  ;;  %v2419_v19 = vpack.c.bf16 %v744_v17, %v743_v16  ;;  %v40_v20 = vld [vmem:[%s3416_s0 + $0x68] sm:$0xff]  ;;  %v745_v21 = vld [vmem:[%s3419_s3 + $0x20] sm:$0xff]  ;;  %v41_v23 = vld [vmem:[%s3416_s0 + $0x70] sm:$0xff] }
   0x8   :  { %2195 = vmatmul.mubr.msk.f32.gmra.mrb[2].mxu0 %vm99_vm0, %v30_v4  ;;  %v746_v22 = vld [vmem:[%s3419_s3 + $0x28] sm:$0xff] }
   0x9   :  { %2197 = vmatprep.mubr.msk.f32.mxu0 %vm99_vm0, %v31_v5  ;;  %2416 = vmatprep.subr.bf16.mxu1 %v2415_v18 }
   0xa   :  { %2418 = vmatpush3.bf16.msra.mxu1 %v2415_v18 }
   0xc   :  { %2198 = vmatmul.mubr.msk.f32.gmra.mrb[4].mxu0 %vm99_vm0, %v32_v6 }
   0xd   :  { %2200 = vmatprep.mubr.msk.f32.mxu0 %vm99_vm0, %v33_v7 }
  0x10   :  { %2201 = vmatmul.mubr.msk.f32.gmra.mrb[6].mxu0 %vm99_vm0, %v34_v8 }
  0x11   :  { %2203 = vmatprep.mubr.msk.f32.mxu0 %vm99_vm0, %v35_v9 }
  0x14   :  { %2204 = vmatmul.mubr.msk.f32.gmra.mrb[8].mxu0 %vm99_vm0, %v36_v10 }
  0x15   :  { %2206 = vmatprep.mubr.msk.f32.mxu0 %vm99_vm0, %v37_v11 }
  0x18   :  { %2207 = vmatmul.mubr.msk.f32.gmra.mrb[10].mxu0 %vm99_vm0, %v38_v12 }
  0x19   :  { %2209 = vmatprep.mubr.msk.f32.mxu0 %vm99_vm0, %v39_v13 }
  0x1a   :  { %12 = vsyncpa [#allocation3], 0  ;;  %2420 = vmatprep.subr.bf16.mxu1 %v2419_v19  ;;  %v2423_v24 = vpack.c.bf16 %v746_v22, %v745_v21  ;;  %v42_v25 = vld [vmem:[%s3416_s0 + $0x78] sm:$0xff]  ;;  %v747_v26 = vld [vmem:[%s3419_s3 + $0x30] sm:$0xff] }
  0x1b   :  { %v748_v27 = vld [vmem:[%s3419_s3 + $0x38] sm:$0xff]  ;;  %v43_v28 = vld [vmem:[%s3416_s0 + $0x80] sm:$0xff]  ;;  %2422 = vmatpush3.bf16.msra.mxu1 %v2419_v19  ;;  %v44_v30 = vld [vmem:[%s3416_s0 + $0x88] sm:$0xff] }
  0x1c   :  { %2210 = vmatmul.mubr.msk.f32.gmra.mrb[12].mxu0 %vm99_vm0, %v40_v20  ;;  %2424 = vmatprep.subr.bf16.mxu1 %v2423_v24  ;;  %v2427_v29 = vpack.c.bf16 %v748_v27, %v747_v26  ;;  %v749_v31 = vld [vmem:[%s3419_s3 + $0x40] sm:$0xff]  ;;  %v750_v32 = vld [vmem:[%s3419_s3 + $0x48] sm:$0xff]  ;;  %v45_v33 = vld [vmem:[%s3416_s0 + $0x90] sm:$0xff] }
  0x1d   :  { %2212 = vmatprep.mubr.msk.f32.mxu0 %vm99_vm0, %v41_v23  ;;  %v2431_v34 = vpack.c.bf16 %v750_v32, %v749_v31  ;;  %v46_v35 = vld [vmem:[%s3416_s0 + $0x98] sm:$0xff]  ;;  %v751_v36 = vld [vmem:[%s3419_s3 + $0x50] sm:$0xff]  ;;  %v47_v38 = vld [vmem:[%s3416_s0 + $0xa0] sm:$0xff] }
  0x1e   :  { %v752_v37 = vld [vmem:[%s3419_s3 + $0x58] sm:$0xff]  ;;  %v48_v40 = vld [vmem:[%s3416_s0 + $0xa8] sm:$0xff]  ;;  %v753_v41 = vld [vmem:[%s3419_s3 + $0x60] sm:$0xff] }
  0x1f   :  { %2426 = vmatpush3.bf16.msra.mxu1 %v2423_v24  ;;  %v2435_v39 = vpack.c.bf16 %v752_v37, %v751_v36  ;;  %v754_v42 = vld [vmem:[%s3419_s3 + $0x68] sm:$0xff]  ;;  %v49_v43 = vld [vmem:[%s3416_s0 + $0xb0] sm:$0xff]  ;;  %v50_v45 = vld [vmem:[%s3416_s0 + $0xb8] sm:$0xff] }
  0x20   :  { %2213 = vmatmul.mubr.msk.f32.gmra.mrb[14].mxu0 %vm99_vm0, %v42_v25  ;;  %2428 = vmatprep.subr.bf16.mxu1 %v2427_v29  ;;  %v2439_v44 = vpack.c.bf16 %v754_v42, %v753_v41  ;;  %v51_v46 = vld [vmem:[%s3416_s0 + $0xc0] sm:$0xff]  ;;  %v52_v47 = vld [vmem:[%s3416_s0 + $0xc8] sm:$0xff]  ;;  %v53_v48 = vld [vmem:[%s3416_s0 + $0xd0] sm:$0xff] }
  0x21   :  { %2215 = vmatprep.mubr.msk.f32.mxu0 %vm99_vm0, %v43_v28  ;;  %v54_v49 = vld [vmem:[%s3416_s0 + $0xd8] sm:$0xff]  ;;  %v55_v50 = vld [vmem:[%s3416_s0 + $0xe0] sm:$0xff]  ;;  %v56_v51 = vld [vmem:[%s3416_s0 + $0xe8] sm:$0xff] }
  0x22   :  { %v57_v52 = vld [vmem:[%s3416_s0 + $0xf0] sm:$0xff]  ;;  %v58_v53 = vld [vmem:[%s3416_s0 + $0xf8] sm:$0xff]  ;;  %v59_v54 = vld [vmem:[%s3416_s0 + $0x100] sm:$0xff] }
  0x23   :  { %2430 = vmatpush3.bf16.msra.mxu1 %v2427_v29  ;;  %v60_v55 = vld [vmem:[%s3416_s0 + $0x108] sm:$0xff]  ;;  %v61_v56 = vld [vmem:[%s3416_s0 + $0x110] sm:$0xff]  ;;  %v62_v57 = vld [vmem:[%s3416_s0 + $0x118] sm:$0xff] }
  0x24   :  { %2216 = vmatmul.mubr.msk.f32.gmra.mrb[16].mxu0 %vm99_vm0, %v44_v30  ;;  %2432 = vmatprep.subr.bf16.mxu1 %v2431_v34  ;;  %v63_v58 = vld [vmem:[%s3416_s0 + $0x120] sm:$0xff]  ;;  %v64_v59 = vld [vmem:[%s3416_s0 + $0x128] sm:$0xff]  ;;  %v65_v60 = vld [vmem:[%s3416_s0 + $0x130] sm:$0xff] }
  0x25   :  { %2218 = vmatprep.mubr.msk.f32.mxu0 %vm99_vm0, %v45_v33  ;;  %v66_v61 = vld [vmem:[%s3416_s0 + $0x138] sm:$0xff]  ;;  %v67_v62 = vld [vmem:[%s3416_s0 + $0x140] sm:$0xff]  ;;  %v68_v63 = vld [vmem:[%s3416_s0 + $0x148] sm:$0xff] }
  0x26   :  { %v69_v0 = vld [vmem:[%s3416_s0 + $0x150] sm:$0xff]  ;;  %v70_v1 = vld [vmem:[%s3416_s0 + $0x158] sm:$0xff]  ;;  %v71_v2 = vld [vmem:[%s3416_s0 + $0x160] sm:$0xff] }
  0x27   :  { %2434 = vmatpush3.bf16.msra.mxu1 %v2431_v34  ;;  %v755_v3 = vld [vmem:[%s3419_s3 + $0x70] sm:$0xff]  ;;  %v756_v4 = vld [vmem:[%s3419_s3 + $0x78] sm:$0xff]  ;;  %v72_v6 = vld [vmem:[%s3416_s0 + $0x168] sm:$0xff] }
  0x28   :  { %2219 = vmatmul.mubr.msk.f32.gmra.mrb[18].mxu0 %vm99_vm0, %v46_v35  ;;  %2436 = vmatprep.subr.bf16.mxu1 %v2435_v39  ;;  %v2443_v5 = vpack.c.bf16 %v756_v4, %v755_v3  ;;  %v73_v7 = vld [vmem:[%s3416_s0 + $0x170] sm:$0xff]  ;;  %v74_v8 = vld [vmem:[%s3416_s0 + $0x178] sm:$0xff]  ;;  %v75_v9 = vld [vmem:[%s3416_s0 + $0x180] sm:$0xff] }
  0x29   :  { %2221 = vmatprep.mubr.msk.f32.mxu0 %vm99_vm0, %v47_v38  ;;  %v76_v10 = vld [vmem:[%s3416_s0 + $0x188] sm:$0xff]  ;;  %v77_v11 = vld [vmem:[%s3416_s0 + $0x190] sm:$0xff]  ;;  %v78_v12 = vld [vmem:[%s3416_s0 + $0x198] sm:$0xff] }
  0x2a   :  { %v79_v13 = vld [vmem:[%s3416_s0 + $0x1a0] sm:$0xff]  ;;  %v80_v14 = vld [vmem:[%s3416_s0 + $0x1a8] sm:$0xff]  ;;  %v81_v15 = vld [vmem:[%s3416_s0 + $0x1b0] sm:$0xff] }
  0x2b   :  { %2438 = vmatpush3.bf16.msra.mxu1 %v2435_v39  ;;  %v82_v16 = vld [vmem:[%s3416_s0 + $0x1b8] sm:$0xff]  ;;  %v83_v17 = vld [vmem:[%s3416_s0 + $0x1c0] sm:$0xff]  ;;  %v84_v18 = vld [vmem:[%s3416_s0 + $0x1c8] sm:$0xff] }
  0x2c   :  { %2222 = vmatmul.mubr.msk.f32.gmra.mrb[20].mxu0 %vm99_vm0, %v48_v40  ;;  %2440 = vmatprep.subr.bf16.mxu1 %v2439_v44  ;;  %v85_v19 = vld [vmem:[%s3416_s0 + $0x1d0] sm:$0xff]  ;;  %v86_v20 = vld [vmem:[%s3416_s0 + $0x1d8] sm:$0xff]  ;;  %v87_v21 = vld [vmem:[%s3416_s0 + $0x1e0] sm:$0xff] }
  0x2d   :  { %2224 = vmatprep.mubr.msk.f32.mxu0 %vm99_vm0, %v49_v43  ;;  %v88_v22 = vld [vmem:[%s3416_s0 + $0x1e8] sm:$0xff]  ;;  %v89_v23 = vld [vmem:[%s3416_s0 + $0x1f0] sm:$0xff]  ;;  %v90_v24 = vld [vmem:[%s3416_s0 + $0x1f8] sm:$0xff] }
  0x2e   :  { %v1214_v25 = vld [vmem:[%s3421_s5 + $0x8] sm:$0xff]  ;;  %v1216_v26 = vld [vmem:[%s3421_s5 + $0x18] sm:$0xff]  ;;  %v1213_v27 = vld [vmem:[%s3421_s5] sm:$0xff] }
  0x2f   :  { %2442 = vmatpush3.bf16.msra.mxu1 %v2439_v44  ;;  %v2447_v28 = vpack.c.bf16 %v1216_v26, %v1214_v25  ;;  %v1215_v29 = vld [vmem:[%s3421_s5 + $0x10] sm:$0xff]  ;;  %v1218_v31 = vld [vmem:[%s3421_s5 + $0x28] sm:$0xff]  ;;  %v1220_v32 = vld [vmem:[%s3421_s5 + $0x38] sm:$0xff] }
  0x30   :  { %2225 = vmatmul.mubr.msk.f32.gmra.mrb[22].mxu0 %vm99_vm0, %v50_v45  ;;  %2444 = vmatprep.subr.bf16.mxu1 %v2443_v5  ;;  %v2449_v30 = vpack.c.bf16 %v1215_v29, %v1213_v27  ;;  %v1217_v33 = vld [vmem:[%s3421_s5 + $0x20] sm:$0xff]  ;;  %v2451_v34 = vpack.c.bf16 %v1220_v32, %v1218_v31  ;;  %v1219_v35 = vld [vmem:[%s3421_s5 + $0x30] sm:$0xff]  ;;  %v1222_v37 = vld [vmem:[%s3421_s5 + $0x48] sm:$0xff] }
  0x31   :  { %2227 = vmatprep.mubr.msk.f32.mxu0 %vm99_vm0, %v51_v46  ;;  %2448 = vmatprep.subr.bf16.mxu0 %v2447_v28  ;;  %v2453_v36 = vpack.c.bf16 %v1219_v35, %v1217_v33  ;;  %v1224_v38 = vld [vmem:[%s3421_s5 + $0x58] sm:$0xff]  ;;  %v1221_v39 = vld [vmem:[%s3421_s5 + $0x40] sm:$0xff]  ;;  %v1223_v41 = vld [vmem:[%s3421_s5 + $0x50] sm:$0xff] }
  0x32   :  { %2450 = vmatpush1.bf16.msra.mxu0 %v2449_v30  ;;  %v2455_v40 = vpack.c.bf16 %v1224_v38, %v1222_v37  ;;  %v2913_v42 = vld [vmem:[%s3418_s2] ss:$0 sm:$0xff]  ;;  %v2915_v43 = vpack.c.bf16 %v1223_v41, %v1221_v39 }
  0x33   :  { %2446 = vmatpush3.bf16.msra.mxu1 %v2443_v5  ;;  %2452 = vmatprep.subr.bf16.mxu0 %v2451_v34 }
  0x34   :  { %2228 = vmatmul.mubr.msk.f32.gmra.mrb[24].mxu0 %vm99_vm0, %v52_v47  ;;  %2479 = vmatprep.subr.bf16.mxu1 %v2447_v28 }
  0x35   :  { %2230 = vmatprep.mubr.msk.f32.mxu0 %vm99_vm0, %v53_v48  ;;  %v1226_v48 = vld [vmem:[%s3421_s5 + $0x68] sm:$0xff] }
  0x36   :  { %2454 = vmatpush1.bf16.msra.mxu0 %v2453_v36 }
  0x37   :  { %2456 = vmatprep.subr.bf16.mxu0 %v2455_v40 }
  0x38   :  { %2231 = vmatmul.mubr.msk.f32.gmra.mrb[26].mxu0 %vm99_vm0, %v54_v49  ;;  %v1228_v49 = vld [vmem:[%s3421_s5 + $0x78] sm:$0xff] }
  0x39   :  { %2233 = vmatprep.mubr.msk.f32.mxu0 %vm99_vm0, %v55_v50  ;;  %v1225_v50 = vld [vmem:[%s3421_s5 + $0x60] sm:$0xff] }
  0x3a   :  { %2458 = vmatpush1.bf16.msra.mxu0 %v2915_v43 }
  0x3c   :  { %2234 = vmatmul.mubr.msk.f32.gmra.mrb[28].mxu0 %vm99_vm0, %v56_v51 }
  0x3d   :  { %2236 = vmatprep.mubr.msk.f32.mxu0 %vm99_vm0, %v57_v52 }
  0x40   :  { %2237 = vmatmul.mubr.msk.f32.gmra.mrb[30].mxu0 %vm99_vm0, %v58_v53  ;;  %v2459_v53 = vpack.c.bf16 %v1228_v49, %v1226_v48 }
  0x41   :  { %2239 = vmatprep.mubr.msk.f32.mxu0 %vm99_vm0, %v59_v54  ;;  %v1227_v54 = vld [vmem:[%s3421_s5 + $0x70] sm:$0xff] }
  0x42   :  { %2460 = vmatprep.subr.bf16.mxu0 %v2459_v53 }
  0x44   :  { %2240 = vmatmul.mubr.msk.f32.gmra.mrb[32].mxu0 %vm99_vm0, %v60_v55  ;;  %v1230_v55 = vld [vmem:[%s3421_s5 + $0x88] sm:$0xff] }
  0x45   :  { %2242 = vmatprep.mubr.msk.f32.mxu0 %vm99_vm0, %v61_v56  ;;  %v1232_v56 = vld [vmem:[%s3421_s5 + $0x98] sm:$0xff] }
  0x48   :  { %2243 = vmatmul.mubr.msk.f32.gmra.mrb[34].mxu0 %vm99_vm0, %v62_v57 }
  0x49   :  { %2245 = vmatprep.mubr.msk.f32.mxu0 %vm99_vm0, %v63_v58 }
  0x4c   :  { %2246 = vmatmul.mubr.msk.f32.gmra.mrb[36].mxu0 %vm99_vm0, %v64_v59 }
  0x4d   :  { %2248 = vmatprep.mubr.msk.f32.mxu0 %vm99_vm0, %v65_v60  ;;  %v2461_v60 = vpack.c.bf16 %v1227_v54, %v1225_v50 }
  0x4f   :  { %2462 = vmatpush1.bf16.msra.mxu0 %v2461_v60 }
  0x50   :  { %2249 = vmatmul.mubr.msk.f32.gmra.mrb[38].mxu0 %vm99_vm0, %v66_v61  ;;  %v2463_v61 = vpack.c.bf16 %v1232_v56, %v1230_v55 }
  0x51   :  { %2251 = vmatprep.mubr.msk.f32.mxu0 %vm99_vm0, %v67_v62  ;;  %v1229_v62 = vld [vmem:[%s3421_s5 + $0x80] sm:$0xff] }
  0x52   :  { %2464 = vmatprep.subr.bf16.mxu0 %v2463_v61 }
  0x54   :  { %2252 = vmatmul.mubr.msk.f32.gmra.mrb[40].mxu0 %vm99_vm0, %v68_v63  ;;  %v1231_v63 = vld [vmem:[%s3421_s5 + $0x90] sm:$0xff] }
  0x55   :  { %2254 = vmatprep.mubr.msk.f32.mxu0 %vm99_vm0, %v69_v0  ;;  %v1234_v0 = vld [vmem:[%s3421_s5 + $0xa8] sm:$0xff]  ;;  %v2465_v3 = vpack.c.bf16 %v1231_v63, %v1229_v62 }
  0x57   :  { %2466 = vmatpush1.bf16.msra.mxu0 %v2465_v3 }
  0x58   :  { %2255 = vmatmul.mubr.msk.f32.gmra.mrb[42].mxu0 %vm99_vm0, %v70_v1 }
  0x59   :  { %2257 = vmatprep.mubr.msk.f32.mxu0 %vm99_vm0, %v71_v2  ;;  %v1236_v2 = vld [vmem:[%s3421_s5 + $0xb8] sm:$0xff] }
  0x5c   :  { %2258 = vmatmul.mubr.msk.f32.gmra.mrb[44].mxu0 %vm99_vm0, %v72_v6  ;;  %v2467_v6 = vpack.c.bf16 %v1236_v2, %v1234_v0 }
  0x5d   :  { %2260 = vmatprep.mubr.msk.f32.mxu0 %vm99_vm0, %v73_v7  ;;  %v1233_v7 = vld [vmem:[%s3421_s5 + $0xa0] sm:$0xff] }
  0x5e   :  { %2468 = vmatprep.subr.bf16.mxu0 %v2467_v6 }
  0x60   :  { %2261 = vmatmul.mubr.msk.f32.gmra.mrb[46].mxu0 %vm99_vm0, %v74_v8  ;;  %v1235_v8 = vld [vmem:[%s3421_s5 + $0xb0] sm:$0xff] }
  0x61   :  { %2263 = vmatprep.mubr.msk.f32.mxu0 %vm99_vm0, %v75_v9 }
  0x64   :  { %2264 = vmatmul.mubr.msk.f32.gmra.mrb[48].mxu0 %vm99_vm0, %v76_v10 }
  0x65   :  { %2266 = vmatprep.mubr.msk.f32.mxu0 %vm99_vm0, %v77_v11 }
  0x68   :  { %2267 = vmatmul.mubr.msk.f32.gmra.mrb[50].mxu0 %vm99_vm0, %v78_v12  ;;  %v1238_v12 = vld [vmem:[%s3421_s5 + $0xc8] sm:$0xff] }
  0x69   :  { %2269 = vmatprep.mubr.msk.f32.mxu0 %vm99_vm0, %v79_v13  ;;  %v1240_v13 = vld [vmem:[%s3421_s5 + $0xd8] sm:$0xff] }
  0x6c   :  { %2270 = vmatmul.mubr.msk.f32.gmra.mrb[52].mxu0 %vm99_vm0, %v80_v14 }
  0x6d   :  { %2272 = vmatprep.mubr.msk.f32.mxu0 %vm99_vm0, %v81_v15  ;;  %v2469_v15 = vpack.c.bf16 %v1235_v8, %v1233_v7 }
  0x6f   :  { %2470 = vmatpush1.bf16.msra.mxu0 %v2469_v15 }
  0x70   :  { %2273 = vmatmul.mubr.msk.f32.gmra.mrb[54].mxu0 %vm99_vm0, %v82_v16 }
  0x71   :  { %2275 = vmatprep.mubr.msk.f32.mxu0 %vm99_vm0, %v83_v17 }
  0x74   :  { %2276 = vmatmul.mubr.msk.f32.gmra.mrb[56].mxu0 %vm99_vm0, %v84_v18  ;;  %v2471_v18 = vpack.c.bf16 %v1240_v13, %v1238_v12 }
  0x75   :  { %2278 = vmatprep.mubr.msk.f32.mxu0 %vm99_vm0, %v85_v19  ;;  %v1237_v19 = vld [vmem:[%s3421_s5 + $0xc0] sm:$0xff] }
  0x76   :  { %2472 = vmatprep.subr.bf16.mxu0 %v2471_v18 }
  0x78   :  { %2279 = vmatmul.mubr.msk.f32.gmra.mrb[58].mxu0 %vm99_vm0, %v86_v20  ;;  %v1239_v20 = vld [vmem:[%s3421_s5 + $0xd0] sm:$0xff] }
  0x79   :  { %2281 = vmatprep.mubr.msk.f32.mxu0 %vm99_vm0, %v87_v21  ;;  %v2473_v25 = vpack.c.bf16 %v1239_v20, %v1237_v19 }
  0x7b   :  { %2474 = vmatpush1.bf16.msra.mxu0 %v2473_v25 }
  0x7c   :  { %2282 = vmatmul.mubr.msk.f32.gmra.mrb[60].mxu0 %vm99_vm0, %v88_v22 }
  0x7d   :  { %2284 = vmatprep.mubr.msk.f32.mxu0 %vm99_vm0, %v89_v23 }
  0x80   :  { %2285 = vmatmul.mubr.msk.f32.gmra.mrb[62].mxu0 %vm99_vm0, %v90_v24 }
  0xd7   :  { %v2193_v44 = vpop.f32.mrb[0].mxu0 }
  0xd8   :  { %v364_v45 = vadd.f32 %v2193_v44, %v2913_v42  ;;  %v358_v46 = vpop.f32.mrb[1].mxu0 }
  0xd9   :  { %v359_v47 = vadd.f32 %v2913_v42, %v358_v46 }
  0xda   :  { %v678_v57 = vmax.f32 %v364_v45, 0.0 }
  0xdb   :  { %v2196_v51 = vpop.f32.mrb[2].mxu0  ;;  %v677_v52 = vmax.f32 %v359_v47, 0.0 }
  0xdc   :  { %v374_v58 = vadd.f32 %v2196_v51, %v2913_v42  ;;  %v368_v59 = vpop.f32.mrb[3].mxu0 }
  0xdd   :  { %v369_v1 = vadd.f32 %v2913_v42, %v368_v59  ;;  %2319 = vmatprep.mubr.f32.mxu1 %v677_v52 }
  0xde   :  { %2320 = vmatmul.mubr.f32.vlgmr.msra.gmra.mrb[0].mxu1 %v678_v57  ;;  %v680_v9 = vmax.f32 %v374_v58, 0.0 }
  0xdf   :  { %v679_v4 = vmax.f32 %v369_v1, 0.0  ;;  %v2199_v5 = vpop.f32.mrb[4].mxu0  ;;  %2487 = vmatpush1.bf16.msra.mxu1 %v2449_v30 }
  0xe0   :  { %v384_v10 = vadd.f32 %v2199_v5, %v2913_v42  ;;  %v378_v11 = vpop.f32.mrb[5].mxu0  ;;  %2480 = vmatprep.subr.bf16.mxu1 %v2451_v34 }
  0xe1   :  { %v379_v14 = vadd.f32 %v2913_v42, %v378_v11  ;;  %2322 = vmatprep.mubr.f32.mxu1 %v679_v4 }
  0xe2   :  { %2323 = vmatmul.mubr.f32.gmra.mrb[2].mxu1 %v680_v9  ;;  %v682_v21 = vmax.f32 %v384_v10, 0.0 }
  0xe3   :  { %v681_v16 = vmax.f32 %v379_v14, 0.0  ;;  %v2202_v17 = vpop.f32.mrb[6].mxu0  ;;  %2488 = vmatpush1.bf16.msra.mxu1 %v2453_v36 }
  0xe4   :  { %v394_v22 = vadd.f32 %v2202_v17, %v2913_v42  ;;  %v388_v23 = vpop.f32.mrb[7].mxu0  ;;  %2481 = vmatprep.subr.bf16.mxu1 %v2455_v40 }
  0xe5   :  { %v389_v24 = vadd.f32 %v2913_v42, %v388_v23  ;;  %2325 = vmatprep.mubr.f32.mxu1 %v681_v16 }
  0xe6   :  { %2326 = vmatmul.mubr.f32.gmra.mrb[4].mxu1 %v682_v21  ;;  %v684_v28 = vmax.f32 %v394_v22, 0.0 }
  0xe7   :  { %v683_v26 = vmax.f32 %v389_v24, 0.0  ;;  %v2205_v27 = vpop.f32.mrb[8].mxu0  ;;  %2489 = vmatpush1.bf16.msra.mxu1 %v2915_v43 }
  0xe8   :  { %v404_v29 = vadd.f32 %v2205_v27, %v2913_v42  ;;  %v398_v30 = vpop.f32.mrb[9].mxu0  ;;  %2482 = vmatprep.subr.bf16.mxu1 %v2459_v53 }
  0xe9   :  { %v399_v31 = vadd.f32 %v2913_v42, %v398_v30  ;;  %2328 = vmatprep.mubr.f32.mxu1 %v683_v26 }
  0xea   :  { %2329 = vmatmul.mubr.f32.gmra.mrb[6].mxu1 %v684_v28  ;;  %v686_v34 = vmax.f32 %v404_v29, 0.0 }
  0xeb   :  { %v685_v32 = vmax.f32 %v399_v31, 0.0  ;;  %v2208_v33 = vpop.f32.mrb[10].mxu0  ;;  %2490 = vmatpush1.bf16.msra.mxu1 %v2461_v60 }
  0xec   :  { %v414_v35 = vadd.f32 %v2208_v33, %v2913_v42  ;;  %v408_v36 = vpop.f32.mrb[11].mxu0  ;;  %2483 = vmatprep.subr.bf16.mxu1 %v2463_v61 }
  0xed   :  { %v409_v37 = vadd.f32 %v2913_v42, %v408_v36  ;;  %2331 = vmatprep.mubr.f32.mxu1 %v685_v32 }
  0xee   :  { %2332 = vmatmul.mubr.f32.gmra.mrb[8].mxu1 %v686_v34  ;;  %v688_v40 = vmax.f32 %v414_v35, 0.0 }
  0xef   :  { %v687_v38 = vmax.f32 %v409_v37, 0.0  ;;  %v2211_v39 = vpop.f32.mrb[12].mxu0  ;;  %2491 = vmatpush1.bf16.msra.mxu1 %v2465_v3 }
  0xf0   :  { %v424_v41 = vadd.f32 %v2211_v39, %v2913_v42  ;;  %v418_v43 = vpop.f32.mrb[13].mxu0  ;;  %2484 = vmatprep.subr.bf16.mxu1 %v2467_v6 }
  0xf1   :  { %v419_v44 = vadd.f32 %v2913_v42, %v418_v43  ;;  %2334 = vmatprep.mubr.f32.mxu1 %v687_v38 }
  0xf2   :  { %2335 = vmatmul.mubr.f32.gmra.mrb[10].mxu1 %v688_v40  ;;  %v690_v47 = vmax.f32 %v424_v41, 0.0 }
  0xf3   :  { %v689_v45 = vmax.f32 %v419_v44, 0.0  ;;  %v2214_v46 = vpop.f32.mrb[14].mxu0  ;;  %2492 = vmatpush1.bf16.msra.mxu1 %v2469_v15 }
  0xf4   :  { %v434_v48 = vadd.f32 %v2214_v46, %v2913_v42  ;;  %v428_v49 = vpop.f32.mrb[15].mxu0  ;;  %2485 = vmatprep.subr.bf16.mxu1 %v2471_v18 }
  0xf5   :  { %v429_v50 = vadd.f32 %v2913_v42, %v428_v49  ;;  %2337 = vmatprep.mubr.f32.mxu1 %v689_v45 }
  0xf6   :  { %2338 = vmatmul.mubr.f32.gmra.mrb[12].mxu1 %v690_v47  ;;  %v692_v53 = vmax.f32 %v434_v48, 0.0 }
  0xf7   :  { %v691_v51 = vmax.f32 %v429_v50, 0.0  ;;  %v2217_v52 = vpop.f32.mrb[16].mxu0  ;;  %2493 = vmatpush1.bf16.msra.mxu1 %v2473_v25 }
  0xf8   :  { %v444_v54 = vadd.f32 %v2217_v52, %v2913_v42  ;;  %v438_v55 = vpop.f32.mrb[17].mxu0 }
  0xf9   :  { %v439_v56 = vadd.f32 %v2913_v42, %v438_v55  ;;  %2340 = vmatprep.mubr.f32.mxu1 %v691_v51 }
  0xfa   :  { %2341 = vmatmul.mubr.f32.gmra.mrb[14].mxu1 %v692_v53  ;;  %v694_v59 = vmax.f32 %v444_v54, 0.0 }
  0xfb   :  { %v693_v57 = vmax.f32 %v439_v56, 0.0  ;;  %v2220_v58 = vpop.f32.mrb[18].mxu0 }
  0xfc   :  { %v454_v60 = vadd.f32 %v2220_v58, %v2913_v42  ;;  %v448_v61 = vpop.f32.mrb[19].mxu0 }
  0xfd   :  { %v449_v62 = vadd.f32 %v2913_v42, %v448_v61  ;;  %2343 = vmatprep.mubr.f32.mxu1 %v693_v57 }
  0xfe   :  { %2344 = vmatmul.mubr.f32.gmra.mrb[16].mxu1 %v694_v59  ;;  %v696_v1 = vmax.f32 %v454_v60, 0.0 }
  0xff   :  { %v695_v63 = vmax.f32 %v449_v62, 0.0  ;;  %v2223_v0 = vpop.f32.mrb[20].mxu0 }
 0x100   :  { %v464_v2 = vadd.f32 %v2223_v0, %v2913_v42  ;;  %v458_v3 = vpop.f32.mrb[21].mxu0 }
 0x101   :  { %v459_v4 = vadd.f32 %v2913_v42, %v458_v3  ;;  %2346 = vmatprep.mubr.f32.mxu1 %v695_v63 }
 0x102   :  { %2347 = vmatmul.mubr.f32.gmra.mrb[18].mxu1 %v696_v1  ;;  %v698_v7 = vmax.f32 %v464_v2, 0.0 }
 0x103   :  { %v697_v5 = vmax.f32 %v459_v4, 0.0  ;;  %v2226_v6 = vpop.f32.mrb[22].mxu0 }
 0x104   :  { %v474_v8 = vadd.f32 %v2226_v6, %v2913_v42  ;;  %v468_v9 = vpop.f32.mrb[23].mxu0 }
 0x105   :  { %v469_v10 = vadd.f32 %v2913_v42, %v468_v9  ;;  %2349 = vmatprep.mubr.f32.mxu1 %v697_v5 }
 0x106   :  { %2350 = vmatmul.mubr.f32.gmra.mrb[20].mxu1 %v698_v7  ;;  %v700_v13 = vmax.f32 %v474_v8, 0.0 }
 0x107   :  { %v699_v11 = vmax.f32 %v469_v10, 0.0  ;;  %v2229_v12 = vpop.f32.mrb[24].mxu0 }
 0x108   :  { %v484_v14 = vadd.f32 %v2229_v12, %v2913_v42  ;;  %v478_v15 = vpop.f32.mrb[25].mxu0 }
 0x109   :  { %v479_v16 = vadd.f32 %v2913_v42, %v478_v15  ;;  %2352 = vmatprep.mubr.f32.mxu1 %v699_v11 }
 0x10a   :  { %2353 = vmatmul.mubr.f32.gmra.mrb[22].mxu1 %v700_v13  ;;  %v702_v19 = vmax.f32 %v484_v14, 0.0  ;;  %v1242_v13 = vld [vmem:[%s3421_s5 + $0xe8] sm:$0xff]  ;;  %v1244_v14 = vld [vmem:[%s3421_s5 + $0xf8] sm:$0xff] }
 0x10b   :  { %v701_v17 = vmax.f32 %v479_v16, 0.0  ;;  %v2232_v18 = vpop.f32.mrb[26].mxu0  ;;  %v2475_v16 = vpack.c.bf16 %v1244_v14, %v1242_v13  ;;  %v3048_v14 = vld [vmem:[%s3420_s4] ss:$0 sm:$0xff] }
 0x10c   :  { %v494_v20 = vadd.f32 %v2232_v18, %v2913_v42  ;;  %v488_v21 = vpop.f32.mrb[27].mxu0  ;;  %v1243_v18 = vld [vmem:[%s3421_s5 + $0xf0] sm:$0xff] }
 0x10d   :  { %v489_v22 = vadd.f32 %v2913_v42, %v488_v21  ;;  %2355 = vmatprep.mubr.f32.mxu1 %v701_v17  ;;  %v1241_v17 = vld [vmem:[%s3421_s5 + $0xe0] sm:$0xff]  ;;  %2476 = vmatprep.subr.bf16.mxu0 %v2475_v16 }
 0x10e   :  { %2356 = vmatmul.mubr.f32.gmra.mrb[24].mxu1 %v702_v19  ;;  %v704_v25 = vmax.f32 %v494_v20, 0.0  ;;  %v2477_v20 = vpack.c.bf16 %v1243_v18, %v1241_v17  ;;  %2486 = vmatprep.subr.bf16.mxu1 %v2475_v16 }
 0x10f   :  { %v703_v23 = vmax.f32 %v489_v22, 0.0  ;;  %v2235_v24 = vpop.f32.mrb[28].mxu0 }
 0x110   :  { %v504_v26 = vadd.f32 %v2235_v24, %v2913_v42  ;;  %v498_v27 = vpop.f32.mrb[29].mxu0  ;;  %2478 = vmatpush1.bf16.msra.mxu0 %v2477_v20  ;;  %2494 = vmatpush1.bf16.msra.mxu1 %v2477_v20 }
 0x111   :  { %v499_v28 = vadd.f32 %v2913_v42, %v498_v27  ;;  %2358 = vmatprep.mubr.f32.mxu1 %v703_v23  ;;  %v2523_v27 = vmov 0.0  }
 0x112   :  { %2359 = vmatmul.mubr.f32.gmra.mrb[26].mxu1 %v704_v25  ;;  %v706_v31 = vmax.f32 %v504_v26, 0.0  ;;  %1321 = vmatprep.mubr.f32.mxu0 %v2523_v27 }
 0x113   :  { %v705_v29 = vmax.f32 %v499_v28, 0.0  ;;  %v2238_v30 = vpop.f32.mrb[30].mxu0 }
 0x114   :  { %v514_v32 = vadd.f32 %v2238_v30, %v2913_v42  ;;  %v508_v33 = vpop.f32.mrb[31].mxu0 }
 0x115   :  { %v509_v34 = vadd.f32 %v2913_v42, %v508_v33  ;;  %2361 = vmatprep.mubr.f32.mxu1 %v705_v29 }
 0x116   :  { %2362 = vmatmul.mubr.f32.gmra.mrb[28].mxu1 %v706_v31  ;;  %v708_v37 = vmax.f32 %v514_v32, 0.0 }
 0x117   :  { %v707_v35 = vmax.f32 %v509_v34, 0.0  ;;  %v2241_v36 = vpop.f32.mrb[32].mxu0 }
 0x118   :  { %v524_v38 = vadd.f32 %v2241_v36, %v2913_v42  ;;  %v518_v39 = vpop.f32.mrb[33].mxu0 }
 0x119   :  { %v519_v40 = vadd.f32 %v2913_v42, %v518_v39  ;;  %2364 = vmatprep.mubr.f32.mxu1 %v707_v35 }
 0x11a   :  { %2365 = vmatmul.mubr.f32.gmra.mrb[30].mxu1 %v708_v37  ;;  %v710_v44 = vmax.f32 %v524_v38, 0.0 }
 0x11b   :  { %v709_v41 = vmax.f32 %v519_v40, 0.0  ;;  %v2244_v43 = vpop.f32.mrb[34].mxu0 }
 0x11c   :  { %v534_v45 = vadd.f32 %v2244_v43, %v2913_v42  ;;  %v528_v46 = vpop.f32.mrb[35].mxu0 }
 0x11d   :  { %v529_v47 = vadd.f32 %v2913_v42, %v528_v46  ;;  %2367 = vmatprep.mubr.f32.mxu1 %v709_v41 }
 0x11e   :  { %2368 = vmatmul.mubr.f32.gmra.mrb[32].mxu1 %v710_v44  ;;  %v712_v50 = vmax.f32 %v534_v45, 0.0 }
 0x11f   :  { %v711_v48 = vmax.f32 %v529_v47, 0.0  ;;  %v2247_v49 = vpop.f32.mrb[36].mxu0 }
 0x120   :  { %v544_v51 = vadd.f32 %v2247_v49, %v2913_v42  ;;  %v538_v52 = vpop.f32.mrb[37].mxu0 }
 0x121   :  { %v539_v53 = vadd.f32 %v2913_v42, %v538_v52  ;;  %2370 = vmatprep.mubr.f32.mxu1 %v711_v48 }
 0x122   :  { %2371 = vmatmul.mubr.f32.gmra.mrb[34].mxu1 %v712_v50  ;;  %v714_v56 = vmax.f32 %v544_v51, 0.0 }
 0x123   :  { %v713_v54 = vmax.f32 %v539_v53, 0.0  ;;  %v2250_v55 = vpop.f32.mrb[38].mxu0 }
 0x124   :  { %v554_v57 = vadd.f32 %v2250_v55, %v2913_v42  ;;  %v548_v58 = vpop.f32.mrb[39].mxu0 }
 0x125   :  { %v549_v59 = vadd.f32 %v2913_v42, %v548_v58  ;;  %2373 = vmatprep.mubr.f32.mxu1 %v713_v54 }
 0x126   :  { %v716_v60 = vmax.f32 %v554_v57, 0.0  ;;  %2374 = vmatmul.mubr.f32.gmra.mrb[36].mxu1 %v714_v56 }
 0x127   :  { %v715_v61 = vmax.f32 %v549_v59, 0.0  ;;  %v2253_v62 = vpop.f32.mrb[40].mxu0 }
 0x128   :  { %v564_v63 = vadd.f32 %v2253_v62, %v2913_v42  ;;  %v558_v0 = vpop.f32.mrb[41].mxu0 }
 0x129   :  { %2376 = vmatprep.mubr.f32.mxu1 %v715_v61  ;;  %v559_v1 = vadd.f32 %v2913_v42, %v558_v0 }
 0x12a   :  { %2377 = vmatmul.mubr.f32.gmra.mrb[38].mxu1 %v716_v60  ;;  %v718_v2 = vmax.f32 %v564_v63, 0.0 }
 0x12b   :  { %v717_v3 = vmax.f32 %v559_v1, 0.0  ;;  %v2256_v4 = vpop.f32.mrb[42].mxu0 }
 0x12c   :  { %v574_v5 = vadd.f32 %v2256_v4, %v2913_v42  ;;  %v568_v6 = vpop.f32.mrb[43].mxu0 }
 0x12d   :  { %2379 = vmatprep.mubr.f32.mxu1 %v717_v3  ;;  %v569_v7 = vadd.f32 %v2913_v42, %v568_v6 }
 0x12e   :  { %2380 = vmatmul.mubr.f32.gmra.mrb[40].mxu1 %v718_v2  ;;  %v720_v8 = vmax.f32 %v574_v5, 0.0 }
 0x12f   :  { %v719_v9 = vmax.f32 %v569_v7, 0.0  ;;  %v2259_v10 = vpop.f32.mrb[44].mxu0 }
 0x130   :  { %v584_v11 = vadd.f32 %v2259_v10, %v2913_v42  ;;  %v578_v12 = vpop.f32.mrb[45].mxu0 }
 0x131   :  { %2382 = vmatprep.mubr.f32.mxu1 %v719_v9  ;;  %v579_v15 = vadd.f32 %v2913_v42, %v578_v12 }
 0x132   :  { %2383 = vmatmul.mubr.f32.gmra.mrb[42].mxu1 %v720_v8  ;;  %v722_v19 = vmax.f32 %v584_v11, 0.0 }
 0x133   :  { %v721_v21 = vmax.f32 %v579_v15, 0.0  ;;  %v2262_v22 = vpop.f32.mrb[46].mxu0 }
 0x134   :  { %v594_v23 = vadd.f32 %v2262_v22, %v2913_v42  ;;  %v588_v24 = vpop.f32.mrb[47].mxu0 }
 0x135   :  { %2385 = vmatprep.mubr.f32.mxu1 %v721_v21  ;;  %v589_v25 = vadd.f32 %v2913_v42, %v588_v24 }
 0x136   :  { %2386 = vmatmul.mubr.f32.gmra.mrb[44].mxu1 %v722_v19  ;;  %v724_v26 = vmax.f32 %v594_v23, 0.0 }
 0x137   :  { %v723_v28 = vmax.f32 %v589_v25, 0.0  ;;  %v2265_v29 = vpop.f32.mrb[48].mxu0 }
 0x138   :  { %v604_v30 = vadd.f32 %v2265_v29, %v2913_v42  ;;  %v598_v31 = vpop.f32.mrb[49].mxu0 }
 0x139   :  { %2388 = vmatprep.mubr.f32.mxu1 %v723_v28  ;;  %v599_v32 = vadd.f32 %v2913_v42, %v598_v31 }
 0x13a   :  { %2389 = vmatmul.mubr.f32.gmra.mrb[46].mxu1 %v724_v26  ;;  %v726_v33 = vmax.f32 %v604_v30, 0.0 }
 0x13b   :  { %v725_v34 = vmax.f32 %v599_v32, 0.0  ;;  %v2268_v35 = vpop.f32.mrb[50].mxu0 }
 0x13c   :  { %v614_v36 = vadd.f32 %v2268_v35, %v2913_v42  ;;  %v608_v37 = vpop.f32.mrb[51].mxu0 }
 0x13d   :  { %2391 = vmatprep.mubr.f32.mxu1 %v725_v34  ;;  %v609_v38 = vadd.f32 %v2913_v42, %v608_v37 }
 0x13e   :  { %2392 = vmatmul.mubr.f32.gmra.mrb[48].mxu1 %v726_v33  ;;  %v728_v39 = vmax.f32 %v614_v36, 0.0 }
 0x13f   :  { %v727_v40 = vmax.f32 %v609_v38, 0.0  ;;  %v2271_v41 = vpop.f32.mrb[52].mxu0 }
 0x140   :  { %v624_v43 = vadd.f32 %v2271_v41, %v2913_v42  ;;  %v618_v44 = vpop.f32.mrb[53].mxu0 }
 0x141   :  { %2394 = vmatprep.mubr.f32.mxu1 %v727_v40  ;;  %v619_v45 = vadd.f32 %v2913_v42, %v618_v44 }
 0x142   :  { %2395 = vmatmul.mubr.f32.gmra.mrb[50].mxu1 %v728_v39  ;;  %v730_v46 = vmax.f32 %v624_v43, 0.0 }
 0x143   :  { %v729_v47 = vmax.f32 %v619_v45, 0.0  ;;  %v2274_v48 = vpop.f32.mrb[54].mxu0 }
 0x144   :  { %v634_v49 = vadd.f32 %v2274_v48, %v2913_v42  ;;  %v628_v50 = vpop.f32.mrb[55].mxu0 }
 0x145   :  { %2397 = vmatprep.mubr.f32.mxu1 %v729_v47  ;;  %v629_v51 = vadd.f32 %v2913_v42, %v628_v50 }
 0x146   :  { %2398 = vmatmul.mubr.f32.gmra.mrb[52].mxu1 %v730_v46  ;;  %v732_v52 = vmax.f32 %v634_v49, 0.0 }
 0x147   :  { %v731_v53 = vmax.f32 %v629_v51, 0.0  ;;  %v2277_v54 = vpop.f32.mrb[56].mxu0 }
 0x148   :  { %v644_v55 = vadd.f32 %v2277_v54, %v2913_v42  ;;  %v638_v56 = vpop.f32.mrb[57].mxu0 }
 0x149   :  { %2400 = vmatprep.mubr.f32.mxu1 %v731_v53  ;;  %v639_v57 = vadd.f32 %v2913_v42, %v638_v56 }
 0x14a   :  { %2401 = vmatmul.mubr.f32.gmra.mrb[54].mxu1 %v732_v52  ;;  %v734_v58 = vmax.f32 %v644_v55, 0.0 }
 0x14b   :  { %v733_v59 = vmax.f32 %v639_v57, 0.0  ;;  %v2280_v60 = vpop.f32.mrb[58].mxu0 }
 0x14c   :  { %v654_v61 = vadd.f32 %v2280_v60, %v2913_v42  ;;  %v648_v62 = vpop.f32.mrb[59].mxu0 }
 0x14d   :  { %2403 = vmatprep.mubr.f32.mxu1 %v733_v59  ;;  %v649_v63 = vadd.f32 %v2913_v42, %v648_v62 }
 0x14e   :  { %2404 = vmatmul.mubr.f32.gmra.mrb[56].mxu1 %v734_v58  ;;  %v736_v0 = vmax.f32 %v654_v61, 0.0 }
 0x14f   :  { %v735_v1 = vmax.f32 %v649_v63, 0.0  ;;  %v2283_v2 = vpop.f32.mrb[60].mxu0 }
 0x150   :  { %v664_v3 = vadd.f32 %v2283_v2, %v2913_v42  ;;  %v658_v4 = vpop.f32.mrb[61].mxu0 }
 0x151   :  { %2406 = vmatprep.mubr.f32.mxu1 %v735_v1  ;;  %v659_v5 = vadd.f32 %v2913_v42, %v658_v4 }
 0x152   :  { %2407 = vmatmul.mubr.f32.gmra.mrb[58].mxu1 %v736_v0  ;;  %v738_v6 = vmax.f32 %v664_v3, 0.0 }
 0x153   :  { %v737_v7 = vmax.f32 %v659_v5, 0.0  ;;  %v2286_v8 = vpop.f32.mrb[62].mxu0 }
 0x154   :  { %v674_v9 = vadd.f32 %v2286_v8, %v2913_v42  ;;  %v668_v10 = vpop.f32.mrb[63].mxu0 }
 0x155   :  { %2409 = vmatprep.mubr.f32.mxu1 %v737_v7  ;;  %v669_v11 = vadd.f32 %v2913_v42, %v668_v10 }
 0x156   :  { %2410 = vmatmul.mubr.f32.gmra.mrb[60].mxu1 %v738_v6  ;;  %v740_v12 = vmax.f32 %v674_v9, 0.0 }
 0x157   :  { %v739_v13 = vmax.f32 %v669_v11, 0.0 }
 0x159   :  { %2412 = vmatprep.mubr.f32.mxu1 %v739_v13 }
 0x15a   :  { %2413 = vmatmul.mubr.f32.gmra.mrb[62].mxu1 %v740_v12 }
 0x15b   :  { %1537 = vmatprep.mubr.f32.mxu1 %v2523_v27 }
 0x1b1   :  { %v2321_v15 = vpop.f32.mrb[0].mxu1 }
 0x1b2   :  { %v830_v16 = vpop.f32.mrb[1].mxu1  ;;  %v836_v18 = vadd.f32 %v2321_v15, %v3048_v14 }
 0x1b3   :  { %v831_v17 = vadd.f32 %v3048_v14, %v830_v16 }
 0x1b4   :  { %v1150_v21 = vmax.f32 %v836_v18, 0.0 }
 0x1b5   :  { %v1149_v19 = vmax.f32 %v831_v17, 0.0  ;;  %v2324_v42 = vpop.f32.mrb[2].mxu1 }
 0x1b6   :  { %v840_v20 = vpop.f32.mrb[3].mxu1  ;;  %v846_v25 = vadd.f32 %v2324_v42, %v3048_v14 }
 0x1b7   :  { %1322 = vmatmul.mubr.f32.vlgmr.msra.gmra.mrb[64].mxu0 %v1149_v19  ;;  %v841_v22 = vadd.f32 %v3048_v14, %v840_v20 }
 0x1b8   :  { %1327 = vmatprep.mubr.f32.mxu0 %v2523_v27  ;;  %v1152_v30 = vmax.f32 %v846_v25, 0.0 }
 0x1b9   :  { %v2327_v23 = vpop.f32.mrb[4].mxu1  ;;  %v1151_v26 = vmax.f32 %v841_v22, 0.0 }
 0x1ba   :  { %v850_v24 = vpop.f32.mrb[5].mxu1  ;;  %v856_v34 = vadd.f32 %v2327_v23, %v3048_v14 }
 0x1bb   :  { %1328 = vmatmul.mubr.f32.gmra.mrb[66].mxu0 %v1150_v21  ;;  %v851_v31 = vadd.f32 %v3048_v14, %v850_v24 }
 0x1bc   :  { %1333 = vmatprep.mubr.f32.mxu0 %v2523_v27  ;;  %v1154_v38 = vmax.f32 %v856_v34, 0.0 }
 0x1bd   :  { %v2330_v28 = vpop.f32.mrb[6].mxu1  ;;  %v1153_v35 = vmax.f32 %v851_v31, 0.0 }
 0x1be   :  { %v860_v29 = vpop.f32.mrb[7].mxu1  ;;  %v866_v43 = vadd.f32 %v2330_v28, %v3048_v14 }
 0x1bf   :  { %1334 = vmatmul.mubr.f32.gmra.mrb[68].mxu0 %v1151_v26  ;;  %v861_v39 = vadd.f32 %v3048_v14, %v860_v29 }
 0x1c0   :  { %1339 = vmatprep.mubr.f32.mxu0 %v2523_v27  ;;  %v1156_v47 = vmax.f32 %v866_v43, 0.0 }
 0x1c1   :  { %v2333_v32 = vpop.f32.mrb[8].mxu1  ;;  %v1155_v44 = vmax.f32 %v861_v39, 0.0 }
 0x1c2   :  { %v870_v33 = vpop.f32.mrb[9].mxu1  ;;  %v876_v51 = vadd.f32 %v2333_v32, %v3048_v14 }
 0x1c3   :  { %1340 = vmatmul.mubr.f32.gmra.mrb[70].mxu0 %v1152_v30  ;;  %v871_v48 = vadd.f32 %v3048_v14, %v870_v33 }
 0x1c4   :  { %1345 = vmatprep.mubr.f32.mxu0 %v2523_v27  ;;  %v1158_v55 = vmax.f32 %v876_v51, 0.0 }
 0x1c5   :  { %v2336_v36 = vpop.f32.mrb[10].mxu1  ;;  %v1157_v52 = vmax.f32 %v871_v48, 0.0 }
 0x1c6   :  { %v880_v37 = vpop.f32.mrb[11].mxu1  ;;  %v886_v59 = vadd.f32 %v2336_v36, %v3048_v14 }
 0x1c7   :  { %1346 = vmatmul.mubr.f32.gmra.mrb[72].mxu0 %v1153_v35  ;;  %v881_v56 = vadd.f32 %v3048_v14, %v880_v37 }
 0x1c8   :  { %1351 = vmatprep.mubr.f32.mxu0 %v2523_v27  ;;  %v1160_v63 = vmax.f32 %v886_v59, 0.0 }
 0x1c9   :  { %v2339_v40 = vpop.f32.mrb[12].mxu1  ;;  %v1159_v60 = vmax.f32 %v881_v56, 0.0 }
 0x1ca   :  { %v890_v41 = vpop.f32.mrb[13].mxu1  ;;  %v896_v3 = vadd.f32 %v2339_v40, %v3048_v14 }
 0x1cb   :  { %1352 = vmatmul.mubr.f32.gmra.mrb[74].mxu0 %v1154_v38  ;;  %v891_v0 = vadd.f32 %v3048_v14, %v890_v41 }
 0x1cc   :  { %1357 = vmatprep.mubr.f32.mxu0 %v2523_v27  ;;  %v1162_v7 = vmax.f32 %v896_v3, 0.0 }
 0x1cd   :  { %v2342_v45 = vpop.f32.mrb[14].mxu1  ;;  %v1161_v4 = vmax.f32 %v891_v0, 0.0 }
 0x1ce   :  { %v900_v46 = vpop.f32.mrb[15].mxu1  ;;  %v906_v11 = vadd.f32 %v2342_v45, %v3048_v14 }
 0x1cf   :  { %1358 = vmatmul.mubr.f32.gmra.mrb[76].mxu0 %v1155_v44  ;;  %v901_v8 = vadd.f32 %v3048_v14, %v900_v46 }
 0x1d0   :  { %1363 = vmatprep.mubr.f32.mxu0 %v2523_v27  ;;  %v1164_v16 = vmax.f32 %v906_v11, 0.0 }
 0x1d1   :  { %v2345_v49 = vpop.f32.mrb[16].mxu1  ;;  %v1163_v12 = vmax.f32 %v901_v8, 0.0 }
 0x1d2   :  { %v910_v50 = vpop.f32.mrb[17].mxu1  ;;  %v916_v42 = vadd.f32 %v2345_v49, %v3048_v14 }
 0x1d3   :  { %1364 = vmatmul.mubr.f32.gmra.mrb[78].mxu0 %v1156_v47  ;;  %v911_v17 = vadd.f32 %v3048_v14, %v910_v50 }
 0x1d4   :  { %1369 = vmatprep.mubr.f32.mxu0 %v2523_v27  ;;  %v1166_v23 = vmax.f32 %v916_v42, 0.0 }
 0x1d5   :  { %v2348_v53 = vpop.f32.mrb[18].mxu1  ;;  %v1165_v20 = vmax.f32 %v911_v17, 0.0 }
 0x1d6   :  { %v920_v54 = vpop.f32.mrb[19].mxu1  ;;  %v926_v29 = vadd.f32 %v2348_v53, %v3048_v14 }
 0x1d7   :  { %1370 = vmatmul.mubr.f32.gmra.mrb[80].mxu0 %v1157_v52  ;;  %v921_v24 = vadd.f32 %v3048_v14, %v920_v54 }
 0x1d8   :  { %1375 = vmatprep.mubr.f32.mxu0 %v2523_v27  ;;  %v1168_v35 = vmax.f32 %v926_v29, 0.0 }
 0x1d9   :  { %v3070_v57 = vpop.f32.mrb[20].mxu1  ;;  %v1167_v30 = vmax.f32 %v921_v24, 0.0 }
 0x1da   :  { %v3072_v58 = vpop.f32.mrb[21].mxu1  ;;  %v936_v41 = vadd.f32 %v3070_v57, %v3048_v14 }
 0x1db   :  { %1376 = vmatmul.mubr.f32.gmra.mrb[82].mxu0 %v1158_v55  ;;  %v931_v36 = vadd.f32 %v3048_v14, %v3072_v58 }
 0x1dc   :  { %1381 = vmatprep.mubr.f32.mxu0 %v2523_v27  ;;  %v1170_v48 = vmax.f32 %v936_v41, 0.0 }
 0x1dd   :  { %v3076_v61 = vpop.f32.mrb[22].mxu1  ;;  %v1169_v43 = vmax.f32 %v931_v36, 0.0 }
 0x1de   :  { %v3078_v62 = vpop.f32.mrb[23].mxu1  ;;  %v946_v54 = vadd.f32 %v3076_v61, %v3048_v14 }
 0x1df   :  { %1382 = vmatmul.mubr.f32.gmra.mrb[84].mxu0 %v1159_v60  ;;  %v941_v49 = vadd.f32 %v3048_v14, %v3078_v62 }
 0x1e0   :  { %1387 = vmatprep.mubr.f32.mxu0 %v2523_v27  ;;  %v1172_v60 = vmax.f32 %v946_v54, 0.0 }
 0x1e1   :  { %v3082_v1 = vpop.f32.mrb[24].mxu1  ;;  %v1171_v55 = vmax.f32 %v941_v49, 0.0 }
 0x1e2   :  { %v3084_v2 = vpop.f32.mrb[25].mxu1 }
 0x1e3   :  { %1388 = vmatmul.mubr.f32.gmra.mrb[86].mxu0 %v1160_v63  ;;  %v951_v62 = vadd.f32 %v3048_v14, %v3084_v2 }
 0x1e4   :  { %1393 = vmatprep.mubr.f32.mxu0 %v2523_v27 }
 0x1e5   :  { %v3088_v5 = vpop.f32.mrb[26].mxu1 }
 0x1e6   :  { %v3090_v6 = vpop.f32.mrb[27].mxu1  ;;  %v966_v24 = vadd.f32 %v3088_v5, %v3048_v14 }
 0x1e7   :  { %1394 = vmatmul.mubr.f32.gmra.mrb[88].mxu0 %v1161_v4  ;;  %v956_v4 = vadd.f32 %v3082_v1, %v3048_v14  ;;  %v961_v17 = vadd.f32 %v3048_v14, %v3090_v6 }
 0x1e8   :  { %1399 = vmatprep.mubr.f32.mxu0 %v2523_v27 }
 0x1e9   :  { %v3094_v9 = vpop.f32.mrb[28].mxu1 }
 0x1ea   :  { %v3096_v10 = vpop.f32.mrb[29].mxu1 }
 0x1eb   :  { %1400 = vmatmul.mubr.f32.gmra.mrb[90].mxu0 %v1162_v7  ;;  %v1173_v7 = vmax.f32 %v951_v62, 0.0 }
 0x1ec   :  { %1405 = vmatprep.mubr.f32.mxu0 %v2523_v27 }
 0x1ed   :  { %v3100_v13 = vpop.f32.mrb[30].mxu1 }
 0x1ee   :  { %v3102_v15 = vpop.f32.mrb[31].mxu1 }
 0x1ef   :  { %1406 = vmatmul.mubr.f32.gmra.mrb[92].mxu0 %v1163_v12  ;;  %v981_v41 = vadd.f32 %v3048_v14, %v3102_v15 }
 0x1f0   :  { %1411 = vmatprep.mubr.f32.mxu0 %v2523_v27 }
 0x1f1   :  { %v3106_v18 = vpop.f32.mrb[32].mxu1 }
 0x1f2   :  { %v3108_v19 = vpop.f32.mrb[33].mxu1  ;;  %v996_v54 = vadd.f32 %v3106_v18, %v3048_v14 }
 0x1f3   :  { %1412 = vmatmul.mubr.f32.gmra.mrb[94].mxu0 %v1164_v16  ;;  %v1174_v16 = vmax.f32 %v956_v4, 0.0 }
 0x1f4   :  { %1417 = vmatprep.mubr.f32.mxu0 %v2523_v27 }
 0x1f5   :  { %v3112_v21 = vpop.f32.mrb[34].mxu1 }
 0x1f6   :  { %v3114_v22 = vpop.f32.mrb[35].mxu1  ;;  %v1006_v18 = vadd.f32 %v3112_v21, %v3048_v14 }
 0x1f7   :  { %1418 = vmatmul.mubr.f32.gmra.mrb[96].mxu0 %v1165_v20 }
 0x1f8   :  { %1423 = vmatprep.mubr.f32.mxu0 %v2523_v27 }
 0x1f9   :  { %v2375_v25 = vpop.f32.mrb[36].mxu1 }
 0x1fa   :  { %v1010_v26 = vpop.f32.mrb[37].mxu1  ;;  %v1016_v31 = vadd.f32 %v2375_v25, %v3048_v14  ;;  %v1175_v25 = vmax.f32 %v961_v17, 0.0 }
 0x1fb   :  { %v1011_v28 = vadd.f32 %v3048_v14, %v1010_v26  ;;  %1424 = vmatmul.mubr.f32.gmra.mrb[98].mxu0 %v1166_v23 }
 0x1fc   :  { %1429 = vmatprep.mubr.f32.mxu0 %v2523_v27  ;;  %v1186_v37 = vmax.f32 %v1016_v31, 0.0  ;;  %v971_v31 = vadd.f32 %v3048_v14, %v3096_v10 }
 0x1fd   :  { %v1185_v32 = vmax.f32 %v1011_v28, 0.0  ;;  %v2378_v33 = vpop.f32.mrb[38].mxu1 }
 0x1fe   :  { %v1020_v34 = vpop.f32.mrb[39].mxu1  ;;  %v1026_v44 = vadd.f32 %v2378_v33, %v3048_v14  ;;  %v1177_v36 = vmax.f32 %v971_v31, 0.0 }
 0x1ff   :  { %1430 = vmatmul.mubr.f32.gmra.mrb[100].mxu0 %v1167_v30  ;;  %1538 = vmatmul.mubr.f32.vlgmr.msra.gmra.mrb[64].mxu1 %v1185_v32  ;;  %v1021_v38 = vadd.f32 %v3048_v14, %v1020_v34  ;;  %v1176_v30 = vmax.f32 %v966_v24, 0.0 }
 0x200   :  { %1435 = vmatprep.mubr.f32.mxu0 %v2523_v27  ;;  %1543 = vmatprep.mubr.f32.mxu1 %v2523_v27  ;;  %v1188_v50 = vmax.f32 %v1026_v44, 0.0 }
 0x201   :  { %v2381_v39 = vpop.f32.mrb[40].mxu1  ;;  %v1187_v45 = vmax.f32 %v1021_v38, 0.0 }
 0x202   :  { %v1030_v40 = vpop.f32.mrb[41].mxu1  ;;  %v1036_v56 = vadd.f32 %v2381_v39, %v3048_v14 }
 0x203   :  { %1436 = vmatmul.mubr.f32.gmra.mrb[102].mxu0 %v1168_v35  ;;  %1544 = vmatmul.mubr.f32.gmra.mrb[66].mxu1 %v1186_v37  ;;  %v1031_v51 = vadd.f32 %v3048_v14, %v1030_v40  ;;  %v976_v35 = vadd.f32 %v3094_v9, %v3048_v14 }
 0x204   :  { %1441 = vmatprep.mubr.f32.mxu0 %v2523_v27  ;;  %1549 = vmatprep.mubr.f32.mxu1 %v2523_v27  ;;  %v1190_v63 = vmax.f32 %v1036_v56, 0.0 }
 0x205   :  { %v2384_v46 = vpop.f32.mrb[42].mxu1  ;;  %v1189_v57 = vmax.f32 %v1031_v51, 0.0  ;;  %v1178_v40 = vmax.f32 %v976_v35, 0.0 }
 0x206   :  { %v1040_v47 = vpop.f32.mrb[43].mxu1  ;;  %v1046_v8 = vadd.f32 %v2384_v46, %v3048_v14  ;;  %v986_v46 = vadd.f32 %v3100_v13, %v3048_v14 }
 0x207   :  { %1442 = vmatmul.mubr.f32.gmra.mrb[104].mxu0 %v1169_v43  ;;  %1550 = vmatmul.mubr.f32.gmra.mrb[68].mxu1 %v1187_v45  ;;  %v1041_v0 = vadd.f32 %v3048_v14, %v1040_v47  ;;  %v1179_v47 = vmax.f32 %v981_v41, 0.0 }
 0x208   :  { %1447 = vmatprep.mubr.f32.mxu0 %v2523_v27  ;;  %1555 = vmatprep.mubr.f32.mxu1 %v2523_v27  ;;  %v1192_v42 = vmax.f32 %v1046_v8, 0.0  ;;  %v1180_v51 = vmax.f32 %v986_v46, 0.0 }
 0x209   :  { %v2387_v52 = vpop.f32.mrb[44].mxu1  ;;  %v1191_v11 = vmax.f32 %v1041_v0, 0.0 }
 0x20a   :  { %v1050_v53 = vpop.f32.mrb[45].mxu1  ;;  %v1056_v26 = vadd.f32 %v2387_v52, %v3048_v14  ;;  %v991_v52 = vadd.f32 %v3048_v14, %v3108_v19  ;;  %v1182_v19 = vmax.f32 %v996_v54, 0.0 }
 0x20b   :  { %1448 = vmatmul.mubr.f32.gmra.mrb[106].mxu0 %v1170_v48  ;;  %1556 = vmatmul.mubr.f32.gmra.mrb[70].mxu1 %v1188_v50  ;;  %v1051_v1 = vadd.f32 %v3048_v14, %v1050_v53 }
 0x20c   :  { %1453 = vmatprep.mubr.f32.mxu0 %v2523_v27  ;;  %1561 = vmatprep.mubr.f32.mxu1 %v2523_v27  ;;  %v1194_v32 = vmax.f32 %v1056_v26, 0.0 }
 0x20d   :  { %v2390_v58 = vpop.f32.mrb[46].mxu1  ;;  %v1193_v6 = vmax.f32 %v1051_v1, 0.0 }
 0x20e   :  { %v1060_v59 = vpop.f32.mrb[47].mxu1  ;;  %v1066_v37 = vadd.f32 %v2390_v58, %v3048_v14  ;;  %v1001_v58 = vadd.f32 %v3048_v14, %v3114_v22  ;;  %v1184_v22 = vmax.f32 %v1006_v18, 0.0 }
 0x20f   :  { %1454 = vmatmul.mubr.f32.gmra.mrb[108].mxu0 %v1171_v55  ;;  %1562 = vmatmul.mubr.f32.gmra.mrb[72].mxu1 %v1189_v57  ;;  %v1061_v5 = vadd.f32 %v3048_v14, %v1060_v59  ;;  %v1181_v55 = vmax.f32 %v991_v52, 0.0 }
 0x210   :  { %1459 = vmatprep.mubr.f32.mxu0 %v2523_v27  ;;  %1567 = vmatprep.mubr.f32.mxu1 %v2523_v27  ;;  %v1196_v43 = vmax.f32 %v1066_v37, 0.0  ;;  %v1183_v62 = vmax.f32 %v1001_v58, 0.0 }
 0x211   :  { %v3147_v61 = vpop.f32.mrb[48].mxu1  ;;  %v1195_v10 = vmax.f32 %v1061_v5, 0.0  ;;  %v1245_v5 = vld [vmem:[%s3422_s6] sm:$0x3]  ;;  %s2524_s6 = smov [#allocation2]  }
 0x212   :  { %v1070_v3 = vpop.f32.mrb[49].mxu1  ;;  %v1076_v15 = vadd.f32 %v3147_v61, %v3048_v14  ;;  %s1967_s29 = sshll.u32 %s2524_s6, 4  ;;  %s1968_s29 = int_to_ptr.vmem [resolvable:$true] %s1967_s29 }
 0x213   :  { %1460 = vmatmul.mubr.f32.gmra.mrb[110].mxu0 %v1172_v60  ;;  %1568 = vmatmul.mubr.f32.gmra.mrb[74].mxu1 %v1190_v63  ;;  %v1071_v9 = vadd.f32 %v3048_v14, %v1070_v3  ;;  %s2499_s30 = scalar_lea.vmem %s1968_s29, 16384  ;;  %p2504_p1 = scmp.lt.s32.totalorder %s1968_s29, %s1968_s29 }
 0x214   :  { %1465 = vmatprep.mubr.f32.mxu0 %v2523_v27  ;;  %1573 = vmatprep.mubr.f32.mxu1 %v2523_v27  ;;  %v1198_v13 = vmax.f32 %v1076_v15, 0.0  ;;  %p2500_p0 = scmp.ne.s32.totalorder %s1968_s29, %s2499_s30  ;;  %p2505_p2 = scmp.lt.s32.totalorder %s2499_s30, %s2499_s30 }
 0x215   :  { %v3154_v2 = vpop.f32.mrb[50].mxu1  ;;  %v1197_v48 = vmax.f32 %v1071_v9, 0.0 }
 0x216   :  { %v3156_v12 = vpop.f32.mrb[51].mxu1  ;;  %v1086_v56 = vadd.f32 %v3154_v2, %v3048_v14  ;;  %p2506_p3 = por %p2505_p2, %p2504_p1 }
 0x217   :  { %1466 = vmatmul.mubr.f32.gmra.mrb[112].mxu0 %v1173_v7  ;;  %1574 = vmatmul.mubr.f32.gmra.mrb[76].mxu1 %v1191_v11  ;;  %v1081_v53 = vadd.f32 %v3048_v14, %v3156_v12 }
 0x218   :  { %1471 = vmatprep.mubr.f32.mxu0 %v2523_v27  ;;  %1579 = vmatprep.mubr.f32.mxu1 %v2523_v27  ;;  %v1200_v59 = vmax.f32 %v1086_v56, 0.0  ;;  %p2507_p4 = pnand %p2506_p3, %p2500_p0 }
 0x219   :  { %v3163_v20 = vpop.f32.mrb[52].mxu1  ;;  %v1199_v57 = vmax.f32 %v1081_v53, 0.0 }
 0x21a   :  { %v3165_v23 = vpop.f32.mrb[53].mxu1  ;;  %v1096_v63 = vadd.f32 %v3163_v20, %v3048_v14 }
 0x21b   :  { %1472 = vmatmul.mubr.f32.gmra.mrb[114].mxu0 %v1174_v16  ;;  %1580 = vmatmul.mubr.f32.gmra.mrb[78].mxu1 %v1192_v42  ;;  %v1091_v60 = vadd.f32 %v3048_v14, %v3165_v23 }
 0x21c   :  { %1477 = vmatprep.mubr.f32.mxu0 %v2523_v27  ;;  %1585 = vmatprep.mubr.f32.mxu1 %v2523_v27  ;;  %v1202_v61 = vmax.f32 %v1096_v63, 0.0 }
 0x21d   :  { %v3172_v28 = vpop.f32.mrb[54].mxu1  ;;  %v1201_v0 = vmax.f32 %v1091_v60, 0.0 }
 0x21e   :  { %v3174_v29 = vpop.f32.mrb[55].mxu1  ;;  %v1106_v21 = vadd.f32 %v3172_v28, %v3048_v14 }
 0x21f   :  { %1478 = vmatmul.mubr.f32.gmra.mrb[116].mxu0 %v1175_v25  ;;  %1586 = vmatmul.mubr.f32.gmra.mrb[80].mxu1 %v1193_v6  ;;  %v1101_v3 = vadd.f32 %v3048_v14, %v3174_v29 }
 0x220   :  { %1483 = vmatprep.mubr.f32.mxu0 %v2523_v27  ;;  %1591 = vmatprep.mubr.f32.mxu1 %v2523_v27  ;;  %v1204_v7 = vmax.f32 %v1106_v21, 0.0 }
 0x221   :  { %v3181_v33 = vpop.f32.mrb[56].mxu1  ;;  %v1203_v4 = vmax.f32 %v1101_v3, 0.0 }
 0x222   :  { %v3183_v34 = vpop.f32.mrb[57].mxu1  ;;  %v1116_v11 = vadd.f32 %v3181_v33, %v3048_v14 }
 0x223   :  { %1484 = vmatmul.mubr.f32.gmra.mrb[118].mxu0 %v1176_v30  ;;  %1592 = vmatmul.mubr.f32.gmra.mrb[82].mxu1 %v1194_v32  ;;  %v1111_v8 = vadd.f32 %v3048_v14, %v3183_v34  ;;  %v1247_v30 = vlaneseq }
 0x224   :  { %1489 = vmatprep.mubr.f32.mxu0 %v2523_v27  ;;  %1597 = vmatprep.mubr.f32.mxu1 %v2523_v27  ;;  %v1206_v12 = vmax.f32 %v1116_v11, 0.0 }
 0x225   :  { %v3190_v38 = vpop.f32.mrb[58].mxu1  ;;  %v1205_v2 = vmax.f32 %v1111_v8, 0.0  ;;  %v1248_v31 = vshrl.u32 %v1247_v30, 7 }
 0x226   :  { %v3192_v39 = vpop.f32.mrb[59].mxu1  ;;  %v1126_v17 = vadd.f32 %v3190_v38, %v3048_v14 }
 0x227   :  { %1490 = vmatmul.mubr.f32.gmra.mrb[120].mxu0 %v1177_v36  ;;  %1598 = vmatmul.mubr.f32.gmra.mrb[84].mxu1 %v1195_v10  ;;  %v1121_v16 = vadd.f32 %v3048_v14, %v3192_v39  ;;  %v1249_v32 = vsub.s32 0, %v1248_v31  ;;  %v1253_v33 = vsub.s32 1, %v1248_v31 }
 0x228   :  { %1495 = vmatprep.mubr.f32.mxu0 %v2523_v27  ;;  %1603 = vmatprep.mubr.f32.mxu1 %v2523_v27  ;;  %v1208_v1 = vmax.f32 %v1126_v17, 0.0 }
 0x229   :  { %v3199_v44 = vpop.f32.mrb[60].mxu1  ;;  %v1207_v42 = vmax.f32 %v1121_v16, 0.0  ;;  %v3272_v34 = vrot.slane %v1245_v5, %v1249_v32  ;;  %v3274_v35 = vrot.slane %v1245_v5, %v1253_v33 }
 0x22a   :  { %v3201_v45 = vpop.f32.mrb[61].mxu1  ;;  %v1136_v23 = vadd.f32 %v3199_v44, %v3048_v14 }
 0x22b   :  { %1496 = vmatmul.mubr.f32.gmra.mrb[122].mxu0 %v1178_v40  ;;  %1604 = vmatmul.mubr.f32.gmra.mrb[86].mxu1 %v1196_v43  ;;  %v1131_v20 = vadd.f32 %v3048_v14, %v3201_v45 }
 0x22c   :  { %1501 = vmatprep.mubr.f32.mxu0 %v2523_v27  ;;  %1609 = vmatprep.mubr.f32.mxu1 %v2523_v27  ;;  %v1210_v25 = vmax.f32 %v1136_v23, 0.0 }
 0x22d   :  { %v3209_v49 = vpop.f32.mrb[62].mxu1  ;;  %v1209_v24 = vmax.f32 %v1131_v20, 0.0 }
 0x22e   :  { %v3211_v50 = vpop.f32.mrb[63].mxu1  ;;  %v1146_v6 = vadd.f32 %v3209_v49, %v3048_v14 }
 0x22f   :  { %1502 = vmatmul.mubr.f32.gmra.mrb[124].mxu0 %v1179_v47  ;;  %1610 = vmatmul.mubr.f32.gmra.mrb[88].mxu1 %v1197_v48  ;;  %v1141_v26 = vadd.f32 %v3048_v14, %v3211_v50 }
 0x230   :  { %1507 = vmatprep.mubr.f32.mxu0 %v2523_v27  ;;  %1615 = vmatprep.mubr.f32.mxu1 %v2523_v27  ;;  %v1212_v29 = vmax.f32 %v1146_v6, 0.0 }
 0x231   :  { %v1211_v28 = vmax.f32 %v1141_v26, 0.0 }
 0x233   :  { %1508 = vmatmul.mubr.f32.gmra.mrb[126].mxu0 %v1180_v51  ;;  %1616 = vmatmul.mubr.f32.gmra.mrb[90].mxu1 %v1198_v13 }
 0x234   :  { %1513 = vmatprep.mubr.f32.mxu0 %v2523_v27  ;;  %1621 = vmatprep.mubr.f32.mxu1 %v2523_v27 }
 0x237   :  { %1514 = vmatmul.mubr.f32.gmra.mrb[128].mxu0 %v1181_v55  ;;  %1622 = vmatmul.mubr.f32.gmra.mrb[92].mxu1 %v1199_v57 }
 0x238   :  { %1519 = vmatprep.mubr.f32.mxu0 %v2523_v27  ;;  %1627 = vmatprep.mubr.f32.mxu1 %v2523_v27 }
 0x23b   :  { %1520 = vmatmul.mubr.f32.gmra.mrb[130].mxu0 %v1182_v19  ;;  %1628 = vmatmul.mubr.f32.gmra.mrb[94].mxu1 %v1200_v59 }
 0x23c   :  { %1525 = vmatprep.mubr.f32.mxu0 %v2523_v27  ;;  %1633 = vmatprep.mubr.f32.mxu1 %v2523_v27 }
 0x23f   :  { %1526 = vmatmul.mubr.f32.gmra.mrb[132].mxu0 %v1183_v62  ;;  %1634 = vmatmul.mubr.f32.gmra.mrb[96].mxu1 %v1201_v0 }
 0x240   :  { %1531 = vmatprep.mubr.f32.mxu0 %v2523_v27  ;;  %1639 = vmatprep.mubr.f32.mxu1 %v2523_v27 }
 0x243   :  { %1532 = vmatmul.mubr.f32.gmra.mrb[134].mxu0 %v1184_v22  ;;  %1640 = vmatmul.mubr.f32.gmra.mrb[98].mxu1 %v1202_v61 }
 0x244   :  { %1645 = vmatprep.mubr.f32.mxu1 %v2523_v27 }
 0x247   :  { %1646 = vmatmul.mubr.f32.gmra.mrb[100].mxu1 %v1203_v4 }
 0x248   :  { %1651 = vmatprep.mubr.f32.mxu1 %v2523_v27 }
 0x24b   :  { %1652 = vmatmul.mubr.f32.gmra.mrb[102].mxu1 %v1204_v7 }
 0x24c   :  { %1657 = vmatprep.mubr.f32.mxu1 %v2523_v27 }
 0x24f   :  { %1658 = vmatmul.mubr.f32.gmra.mrb[104].mxu1 %v1205_v2 }
 0x250   :  { %1663 = vmatprep.mubr.f32.mxu1 %v2523_v27 }
 0x253   :  { %1664 = vmatmul.mubr.f32.gmra.mrb[106].mxu1 %v1206_v12 }
 0x254   :  { %1669 = vmatprep.mubr.f32.mxu1 %v2523_v27 }
 0x257   :  { %1670 = vmatmul.mubr.f32.gmra.mrb[108].mxu1 %v1207_v42 }
 0x258   :  { %1675 = vmatprep.mubr.f32.mxu1 %v2523_v27 }
 0x25b   :  { %1676 = vmatmul.mubr.f32.gmra.mrb[110].mxu1 %v1208_v1 }
 0x25c   :  { %1681 = vmatprep.mubr.f32.mxu1 %v2523_v27 }
 0x25f   :  { %1682 = vmatmul.mubr.f32.gmra.mrb[112].mxu1 %v1209_v24 }
 0x260   :  { %1687 = vmatprep.mubr.f32.mxu1 %v2523_v27 }
 0x263   :  { %1688 = vmatmul.mubr.f32.gmra.mrb[114].mxu1 %v1210_v25 }
 0x264   :  { %1693 = vmatprep.mubr.f32.mxu1 %v2523_v27 }
 0x267   :  { %1694 = vmatmul.mubr.f32.gmra.mrb[116].mxu1 %v1211_v28 }
 0x268   :  { %1699 = vmatprep.mubr.f32.mxu1 %v2523_v27 }
 0x26b   :  { %1700 = vmatmul.mubr.f32.gmra.mrb[118].mxu1 %v1212_v29 }
 0x28a   :  { %v1323_v36 = vpop.f32.mrb[64].mxu0 }
 0x28b   :  { %v1324_v14 = vadd.f32 %v1323_v36, %v3272_v34  ;;  %v1325_v37 = vpop.f32.mrb[65].mxu0 }
 0x28c   :  { %v1326_v27 = vadd.f32 %v1325_v37, %v3274_v35 }
 0x28d   :  { %v1706_v10 = vmax.f32 %v1324_v14, 0.0 }
 0x28e   :  { %v1707_v38 = vmax.f32 %v1326_v27, 0.0  ;;  %v1329_v39 = vpop.f32.mrb[66].mxu0 }
 0x28f   :  { %1834 = vst [vmem:[#allocation2] sm:$0xff] %v1706_v10  ;;  %v1330_v40 = vadd.f32 %v1329_v39, %v3272_v34  ;;  %v1331_v41 = vpop.f32.mrb[67].mxu0 }
 0x290   :  { %1835 = vst [vmem:[#allocation2 + $0x8] sm:$0xff] %v1707_v38  ;;  %v1332_v43 = vadd.f32 %v1331_v41, %v3274_v35 }
 0x291   :  { %v1708_v9 = vmax.f32 %v1330_v40, 0.0 }
 0x292   :  { %v1709_v44 = vmax.f32 %v1332_v43, 0.0  ;;  %v1335_v45 = vpop.f32.mrb[68].mxu0 }
 0x293   :  { %1836 = vst [vmem:[#allocation2 + $0x10] sm:$0xff] %v1708_v9  ;;  %v1336_v46 = vadd.f32 %v1335_v45, %v3272_v34  ;;  %v1337_v47 = vpop.f32.mrb[69].mxu0 }
 0x294   :  { %1837 = vst [vmem:[#allocation2 + $0x18] sm:$0xff] %v1709_v44  ;;  %v1338_v15 = vadd.f32 %v1337_v47, %v3274_v35 }
 0x295   :  { %v1710_v48 = vmax.f32 %v1336_v46, 0.0 }
 0x296   :  { %v1711_v49 = vmax.f32 %v1338_v15, 0.0  ;;  %v1341_v50 = vpop.f32.mrb[70].mxu0 }
 0x297   :  { %1838 = vst [vmem:[#allocation2 + $0x20] sm:$0xff] %v1710_v48  ;;  %v1342_v51 = vadd.f32 %v1341_v50, %v3272_v34  ;;  %v1343_v52 = vpop.f32.mrb[71].mxu0 }
 0x298   :  { %1839 = vst [vmem:[#allocation2 + $0x28] sm:$0xff] %v1711_v49  ;;  %v1344_v13 = vadd.f32 %v1343_v52, %v3274_v35 }
 0x299   :  { %v1712_v53 = vmax.f32 %v1342_v51, 0.0 }
 0x29a   :  { %v1713_v54 = vmax.f32 %v1344_v13, 0.0  ;;  %v1347_v55 = vpop.f32.mrb[72].mxu0 }
 0x29b   :  { %1840 = vst [vmem:[#allocation2 + $0x30] sm:$0xff] %v1712_v53  ;;  %v1348_v56 = vadd.f32 %v1347_v55, %v3272_v34  ;;  %v1349_v57 = vpop.f32.mrb[73].mxu0 }
 0x29c   :  { %1841 = vst [vmem:[#allocation2 + $0x38] sm:$0xff] %v1713_v54  ;;  %v1350_v19 = vadd.f32 %v1349_v57, %v3274_v35 }
 0x29d   :  { %v1714_v58 = vmax.f32 %v1348_v56, 0.0 }
 0x29e   :  { %v1715_v59 = vmax.f32 %v1350_v19, 0.0  ;;  %v1353_v60 = vpop.f32.mrb[74].mxu0 }
 0x29f   :  { %1842 = vst [vmem:[#allocation2 + $0x40] sm:$0xff] %v1714_v58  ;;  %v1354_v18 = vadd.f32 %v1353_v60, %v3272_v34  ;;  %v1355_v62 = vpop.f32.mrb[75].mxu0 }
 0x2a0   :  { %1843 = vst [vmem:[#allocation2 + $0x48] sm:$0xff] %v1715_v59  ;;  %v1356_v63 = vadd.f32 %v1355_v62, %v3274_v35 }
 0x2a1   :  { %v1716_v0 = vmax.f32 %v1354_v18, 0.0 }
 0x2a2   :  { %v1717_v22 = vmax.f32 %v1356_v63, 0.0  ;;  %v1359_v61 = vpop.f32.mrb[76].mxu0 }
 0x2a3   :  { %1844 = vst [vmem:[#allocation2 + $0x50] sm:$0xff] %v1716_v0  ;;  %v1360_v3 = vadd.f32 %v1359_v61, %v3272_v34  ;;  %v1361_v21 = vpop.f32.mrb[77].mxu0 }
 0x2a4   :  { %1845 = vst [vmem:[#allocation2 + $0x58] sm:$0xff] %v1717_v22  ;;  %v1362_v4 = vadd.f32 %v1361_v21, %v3274_v35 }
 0x2a5   :  { %v1718_v7 = vmax.f32 %v1360_v3, 0.0 }
 0x2a6   :  { %v1719_v8 = vmax.f32 %v1362_v4, 0.0  ;;  %v1365_v11 = vpop.f32.mrb[78].mxu0 }
 0x2a7   :  { %1846 = vst [vmem:[#allocation2 + $0x60] sm:$0xff] %v1718_v7  ;;  %v1366_v2 = vadd.f32 %v1365_v11, %v3272_v34  ;;  %v1367_v12 = vpop.f32.mrb[79].mxu0 }
 0x2a8   :  { %1847 = vst [vmem:[#allocation2 + $0x68] sm:$0xff] %v1719_v8  ;;  %v1368_v16 = vadd.f32 %v1367_v12, %v3274_v35 }
 0x2a9   :  { %v1720_v17 = vmax.f32 %v1366_v2, 0.0 }
 0x2aa   :  { %v1721_v42 = vmax.f32 %v1368_v16, 0.0  ;;  %v1371_v1 = vpop.f32.mrb[80].mxu0 }
 0x2ab   :  { %1848 = vst [vmem:[#allocation2 + $0x70] sm:$0xff] %v1720_v17  ;;  %v1372_v20 = vadd.f32 %v1371_v1, %v3272_v34  ;;  %v1373_v23 = vpop.f32.mrb[81].mxu0 }
 0x2ac   :  { %1849 = vst [vmem:[#allocation2 + $0x78] sm:$0xff] %v1721_v42  ;;  %v1374_v24 = vadd.f32 %v1373_v23, %v3274_v35 }
 0x2ad   :  { %v1722_v25 = vmax.f32 %v1372_v20, 0.0 }
 0x2ae   :  { %v1723_v26 = vmax.f32 %v1374_v24, 0.0  ;;  %v1377_v6 = vpop.f32.mrb[82].mxu0 }
 0x2af   :  { %1850 = vst [vmem:[#allocation2 + $0x80] sm:$0xff] %v1722_v25  ;;  %v1378_v28 = vadd.f32 %v1377_v6, %v3272_v34  ;;  %v1379_v29 = vpop.f32.mrb[83].mxu0 }
 0x2b0   :  { %1851 = vst [vmem:[#allocation2 + $0x88] sm:$0xff] %v1723_v26  ;;  %v1380_v30 = vadd.f32 %v1379_v29, %v3274_v35 }
 0x2b1   :  { %v1724_v31 = vmax.f32 %v1378_v28, 0.0 }
 0x2b2   :  { %v1725_v32 = vmax.f32 %v1380_v30, 0.0  ;;  %v1383_v5 = vpop.f32.mrb[84].mxu0 }
 0x2b3   :  { %1852 = vst [vmem:[#allocation2 + $0x90] sm:$0xff] %v1724_v31  ;;  %v1384_v33 = vadd.f32 %v1383_v5, %v3272_v34  ;;  %v1385_v36 = vpop.f32.mrb[85].mxu0 }
 0x2b4   :  { %1853 = vst [vmem:[#allocation2 + $0x98] sm:$0xff] %v1725_v32  ;;  %v1386_v14 = vadd.f32 %v1385_v36, %v3274_v35 }
 0x2b5   :  { %v1726_v37 = vmax.f32 %v1384_v33, 0.0 }
 0x2b6   :  { %v1727_v27 = vmax.f32 %v1386_v14, 0.0  ;;  %v1389_v10 = vpop.f32.mrb[86].mxu0 }
 0x2b7   :  { %1854 = vst [vmem:[#allocation2 + $0xa0] sm:$0xff] %v1726_v37  ;;  %v1390_v38 = vadd.f32 %v1389_v10, %v3272_v34  ;;  %v1391_v39 = vpop.f32.mrb[87].mxu0 }
 0x2b8   :  { %1855 = vst [vmem:[#allocation2 + $0xa8] sm:$0xff] %v1727_v27  ;;  %v1392_v40 = vadd.f32 %v1391_v39, %v3274_v35 }
 0x2b9   :  { %v1728_v41 = vmax.f32 %v1390_v38, 0.0 }
 0x2ba   :  { %v1729_v43 = vmax.f32 %v1392_v40, 0.0  ;;  %v1395_v9 = vpop.f32.mrb[88].mxu0 }
 0x2bb   :  { %1856 = vst [vmem:[#allocation2 + $0xb0] sm:$0xff] %v1728_v41  ;;  %v1396_v44 = vadd.f32 %v1395_v9, %v3272_v34  ;;  %v1397_v45 = vpop.f32.mrb[89].mxu0 }
 0x2bc   :  { %1857 = vst [vmem:[#allocation2 + $0xb8] sm:$0xff] %v1729_v43  ;;  %v1398_v46 = vadd.f32 %v1397_v45, %v3274_v35 }
 0x2bd   :  { %v1730_v47 = vmax.f32 %v1396_v44, 0.0 }
 0x2be   :  { %v1731_v15 = vmax.f32 %v1398_v46, 0.0  ;;  %v1401_v48 = vpop.f32.mrb[90].mxu0 }
 0x2bf   :  { %1858 = vst [vmem:[#allocation2 + $0xc0] sm:$0xff] %v1730_v47  ;;  %v1402_v49 = vadd.f32 %v1401_v48, %v3272_v34  ;;  %v1403_v50 = vpop.f32.mrb[91].mxu0 }
 0x2c0   :  { %1859 = vst [vmem:[#allocation2 + $0xc8] sm:$0xff] %v1731_v15  ;;  %v1404_v51 = vadd.f32 %v1403_v50, %v3274_v35 }
 0x2c1   :  { %v1732_v52 = vmax.f32 %v1402_v49, 0.0 }
 0x2c2   :  { %v1733_v13 = vmax.f32 %v1404_v51, 0.0  ;;  %v1407_v53 = vpop.f32.mrb[92].mxu0 }
 0x2c3   :  { %1860 = vst [vmem:[#allocation2 + $0xd0] sm:$0xff] %v1732_v52  ;;  %v1408_v54 = vadd.f32 %v1407_v53, %v3272_v34  ;;  %v1409_v55 = vpop.f32.mrb[93].mxu0 }
 0x2c4   :  { %1861 = vst [vmem:[#allocation2 + $0xd8] sm:$0xff] %v1733_v13  ;;  %v1410_v56 = vadd.f32 %v1409_v55, %v3274_v35 }
 0x2c5   :  { %v1734_v57 = vmax.f32 %v1408_v54, 0.0 }
 0x2c6   :  { %v1735_v19 = vmax.f32 %v1410_v56, 0.0  ;;  %v1413_v58 = vpop.f32.mrb[94].mxu0 }
 0x2c7   :  { %1862 = vst [vmem:[#allocation2 + $0xe0] sm:$0xff] %v1734_v57  ;;  %v1414_v59 = vadd.f32 %v1413_v58, %v3272_v34  ;;  %v1415_v60 = vpop.f32.mrb[95].mxu0 }
 0x2c8   :  { %1863 = vst [vmem:[#allocation2 + $0xe8] sm:$0xff] %v1735_v19  ;;  %v1416_v18 = vadd.f32 %v1415_v60, %v3274_v35 }
 0x2c9   :  { %v1736_v62 = vmax.f32 %v1414_v59, 0.0 }
 0x2ca   :  { %v1737_v63 = vmax.f32 %v1416_v18, 0.0  ;;  %v1419_v0 = vpop.f32.mrb[96].mxu0 }
 0x2cb   :  { %1864 = vst [vmem:[#allocation2 + $0xf0] sm:$0xff] %v1736_v62  ;;  %v1420_v22 = vadd.f32 %v1419_v0, %v3272_v34  ;;  %v1421_v61 = vpop.f32.mrb[97].mxu0 }
 0x2cc   :  { %1865 = vst [vmem:[#allocation2 + $0xf8] sm:$0xff] %v1737_v63  ;;  %v1422_v3 = vadd.f32 %v1421_v61, %v3274_v35 }
 0x2cd   :  { %v1738_v21 = vmax.f32 %v1420_v22, 0.0 }
 0x2ce   :  { %v1739_v4 = vmax.f32 %v1422_v3, 0.0  ;;  %v1425_v7 = vpop.f32.mrb[98].mxu0 }
 0x2cf   :  { %1866 = vst [vmem:[#allocation2 + $0x100] sm:$0xff] %v1738_v21  ;;  %v1426_v8 = vadd.f32 %v1425_v7, %v3272_v34  ;;  %v1427_v11 = vpop.f32.mrb[99].mxu0 }
 0x2d0   :  { %1867 = vst [vmem:[#allocation2 + $0x108] sm:$0xff] %v1739_v4  ;;  %v1428_v2 = vadd.f32 %v1427_v11, %v3274_v35 }
 0x2d1   :  { %v1740_v12 = vmax.f32 %v1426_v8, 0.0 }
 0x2d2   :  { %v1741_v16 = vmax.f32 %v1428_v2, 0.0  ;;  %v1431_v17 = vpop.f32.mrb[100].mxu0  ;;  %v1539_v42 = vpop.f32.mrb[64].mxu1 }
 0x2d3   :  { %1868 = vst [vmem:[#allocation2 + $0x110] sm:$0xff] %v1740_v12  ;;  %v1432_v1 = vadd.f32 %v1431_v17, %v3272_v34  ;;  %v1540_v20 = vadd.f32 %v1539_v42, %v3272_v34  ;;  %v1433_v23 = vpop.f32.mrb[101].mxu0  ;;  %v1541_v24 = vpop.f32.mrb[65].mxu1 }
 0x2d4   :  { %1869 = vst [vmem:[#allocation2 + $0x118] sm:$0xff] %v1741_v16  ;;  %v1434_v25 = vadd.f32 %v1433_v23, %v3274_v35  ;;  %v1542_v26 = vadd.f32 %v1541_v24, %v3274_v35 }
 0x2d5   :  { %v1742_v6 = vmax.f32 %v1432_v1, 0.0  ;;  %v1778_v28 = vmax.f32 %v1540_v20, 0.0 }
 0x2d6   :  { %v1743_v29 = vmax.f32 %v1434_v25, 0.0  ;;  %v1779_v30 = vmax.f32 %v1542_v26, 0.0  ;;  %v1437_v31 = vpop.f32.mrb[102].mxu0  ;;  %v1545_v32 = vpop.f32.mrb[66].mxu1 }
 0x2d7   :  { %1870 = vst [vmem:[#allocation2 + $0x120] sm:$0xff] %v1742_v6  ;;  %1906 = vst [vmem:[#allocation2 + $0x240] sm:$0xff] %v1778_v28  ;;  %v1438_v5 = vadd.f32 %v1437_v31, %v3272_v34  ;;  %v1546_v33 = vadd.f32 %v1545_v32, %v3272_v34  ;;  %v1439_v36 = vpop.f32.mrb[103].mxu0  ;;  %v1547_v14 = vpop.f32.mrb[67].mxu1 }
 0x2d8   :  { %1871 = vst [vmem:[#allocation2 + $0x128] sm:$0xff] %v1743_v29  ;;  %1907 = vst [vmem:[#allocation2 + $0x248] sm:$0xff] %v1779_v30  ;;  %v1440_v37 = vadd.f32 %v1439_v36, %v3274_v35  ;;  %v1548_v27 = vadd.f32 %v1547_v14, %v3274_v35 }
 0x2d9   :  { %v1744_v10 = vmax.f32 %v1438_v5, 0.0  ;;  %v1780_v38 = vmax.f32 %v1546_v33, 0.0 }
 0x2da   :  { %v1745_v39 = vmax.f32 %v1440_v37, 0.0  ;;  %v1781_v40 = vmax.f32 %v1548_v27, 0.0  ;;  %v1443_v41 = vpop.f32.mrb[104].mxu0  ;;  %v1551_v43 = vpop.f32.mrb[68].mxu1 }
 0x2db   :  { %1872 = vst [vmem:[#allocation2 + $0x130] sm:$0xff] %v1744_v10  ;;  %1908 = vst [vmem:[#allocation2 + $0x250] sm:$0xff] %v1780_v38  ;;  %v1444_v9 = vadd.f32 %v1443_v41, %v3272_v34  ;;  %v1552_v44 = vadd.f32 %v1551_v43, %v3272_v34  ;;  %v1445_v45 = vpop.f32.mrb[105].mxu0  ;;  %v1553_v46 = vpop.f32.mrb[69].mxu1 }
 0x2dc   :  { %1873 = vst [vmem:[#allocation2 + $0x138] sm:$0xff] %v1745_v39  ;;  %1909 = vst [vmem:[#allocation2 + $0x258] sm:$0xff] %v1781_v40  ;;  %v1446_v47 = vadd.f32 %v1445_v45, %v3274_v35  ;;  %v1554_v15 = vadd.f32 %v1553_v46, %v3274_v35 }
 0x2dd   :  { %v1746_v48 = vmax.f32 %v1444_v9, 0.0  ;;  %v1782_v49 = vmax.f32 %v1552_v44, 0.0 }
 0x2de   :  { %v1747_v50 = vmax.f32 %v1446_v47, 0.0  ;;  %v1783_v51 = vmax.f32 %v1554_v15, 0.0  ;;  %v1449_v52 = vpop.f32.mrb[106].mxu0  ;;  %v1557_v13 = vpop.f32.mrb[70].mxu1 }
 0x2df   :  { %1874 = vst [vmem:[#allocation2 + $0x140] sm:$0xff] %v1746_v48  ;;  %1910 = vst [vmem:[#allocation2 + $0x260] sm:$0xff] %v1782_v49  ;;  %v1450_v53 = vadd.f32 %v1449_v52, %v3272_v34  ;;  %v1558_v54 = vadd.f32 %v1557_v13, %v3272_v34  ;;  %v1451_v55 = vpop.f32.mrb[107].mxu0  ;;  %v1559_v56 = vpop.f32.mrb[71].mxu1 }
 0x2e0   :  { %1875 = vst [vmem:[#allocation2 + $0x148] sm:$0xff] %v1747_v50  ;;  %1911 = vst [vmem:[#allocation2 + $0x268] sm:$0xff] %v1783_v51  ;;  %v1452_v57 = vadd.f32 %v1451_v55, %v3274_v35  ;;  %v1560_v19 = vadd.f32 %v1559_v56, %v3274_v35 }
 0x2e1   :  { %v1748_v58 = vmax.f32 %v1450_v53, 0.0  ;;  %v1784_v59 = vmax.f32 %v1558_v54, 0.0 }
 0x2e2   :  { %v1749_v60 = vmax.f32 %v1452_v57, 0.0  ;;  %v1785_v18 = vmax.f32 %v1560_v19, 0.0  ;;  %v1455_v62 = vpop.f32.mrb[108].mxu0  ;;  %v1563_v63 = vpop.f32.mrb[72].mxu1 }
 0x2e3   :  { %1876 = vst [vmem:[#allocation2 + $0x150] sm:$0xff] %v1748_v58  ;;  %1912 = vst [vmem:[#allocation2 + $0x270] sm:$0xff] %v1784_v59  ;;  %v1456_v0 = vadd.f32 %v1455_v62, %v3272_v34  ;;  %v1564_v22 = vadd.f32 %v1563_v63, %v3272_v34  ;;  %v1457_v61 = vpop.f32.mrb[109].mxu0  ;;  %v1565_v3 = vpop.f32.mrb[73].mxu1 }
 0x2e4   :  { %1877 = vst [vmem:[#allocation2 + $0x158] sm:$0xff] %v1749_v60  ;;  %1913 = vst [vmem:[#allocation2 + $0x278] sm:$0xff] %v1785_v18  ;;  %v1458_v21 = vadd.f32 %v1457_v61, %v3274_v35  ;;  %v1566_v4 = vadd.f32 %v1565_v3, %v3274_v35 }
 0x2e5   :  { %v1750_v7 = vmax.f32 %v1456_v0, 0.0  ;;  %v1786_v8 = vmax.f32 %v1564_v22, 0.0 }
 0x2e6   :  { %v1751_v11 = vmax.f32 %v1458_v21, 0.0  ;;  %v1787_v2 = vmax.f32 %v1566_v4, 0.0  ;;  %v1461_v12 = vpop.f32.mrb[110].mxu0  ;;  %v1569_v16 = vpop.f32.mrb[74].mxu1 }
 0x2e7   :  { %1878 = vst [vmem:[#allocation2 + $0x160] sm:$0xff] %v1750_v7  ;;  %1914 = vst [vmem:[#allocation2 + $0x280] sm:$0xff] %v1786_v8  ;;  %v1462_v17 = vadd.f32 %v1461_v12, %v3272_v34  ;;  %v1570_v42 = vadd.f32 %v1569_v16, %v3272_v34  ;;  %v1463_v1 = vpop.f32.mrb[111].mxu0  ;;  %v1571_v20 = vpop.f32.mrb[75].mxu1 }
 0x2e8   :  { %1879 = vst [vmem:[#allocation2 + $0x168] sm:$0xff] %v1751_v11  ;;  %1915 = vst [vmem:[#allocation2 + $0x288] sm:$0xff] %v1787_v2  ;;  %v1464_v23 = vadd.f32 %v1463_v1, %v3274_v35  ;;  %v1572_v24 = vadd.f32 %v1571_v20, %v3274_v35 }
 0x2e9   :  { %v1752_v25 = vmax.f32 %v1462_v17, 0.0  ;;  %v1788_v26 = vmax.f32 %v1570_v42, 0.0 }
 0x2ea   :  { %v1753_v6 = vmax.f32 %v1464_v23, 0.0  ;;  %v1789_v28 = vmax.f32 %v1572_v24, 0.0  ;;  %v1467_v29 = vpop.f32.mrb[112].mxu0  ;;  %v1575_v30 = vpop.f32.mrb[76].mxu1 }
 0x2eb   :  { %1880 = vst [vmem:[#allocation2 + $0x170] sm:$0xff] %v1752_v25  ;;  %1916 = vst [vmem:[#allocation2 + $0x290] sm:$0xff] %v1788_v26  ;;  %v1468_v31 = vadd.f32 %v1467_v29, %v3272_v34  ;;  %v1576_v32 = vadd.f32 %v1575_v30, %v3272_v34  ;;  %v1469_v5 = vpop.f32.mrb[113].mxu0  ;;  %v1577_v33 = vpop.f32.mrb[77].mxu1 }
 0x2ec   :  { %1881 = vst [vmem:[#allocation2 + $0x178] sm:$0xff] %v1753_v6  ;;  %1917 = vst [vmem:[#allocation2 + $0x298] sm:$0xff] %v1789_v28  ;;  %v1470_v36 = vadd.f32 %v1469_v5, %v3274_v35  ;;  %v1578_v14 = vadd.f32 %v1577_v33, %v3274_v35 }
 0x2ed   :  { %v1754_v37 = vmax.f32 %v1468_v31, 0.0  ;;  %v1790_v27 = vmax.f32 %v1576_v32, 0.0 }
 0x2ee   :  { %v1755_v10 = vmax.f32 %v1470_v36, 0.0  ;;  %v1791_v38 = vmax.f32 %v1578_v14, 0.0  ;;  %v1473_v39 = vpop.f32.mrb[114].mxu0  ;;  %v1581_v40 = vpop.f32.mrb[78].mxu1 }
 0x2ef   :  { %1882 = vst [vmem:[#allocation2 + $0x180] sm:$0xff] %v1754_v37  ;;  %1918 = vst [vmem:[#allocation2 + $0x2a0] sm:$0xff] %v1790_v27  ;;  %v1474_v41 = vadd.f32 %v1473_v39, %v3272_v34  ;;  %v1582_v43 = vadd.f32 %v1581_v40, %v3272_v34  ;;  %v1475_v9 = vpop.f32.mrb[115].mxu0  ;;  %v1583_v44 = vpop.f32.mrb[79].mxu1 }
 0x2f0   :  { %1883 = vst [vmem:[#allocation2 + $0x188] sm:$0xff] %v1755_v10  ;;  %1919 = vst [vmem:[#allocation2 + $0x2a8] sm:$0xff] %v1791_v38  ;;  %v1476_v45 = vadd.f32 %v1475_v9, %v3274_v35  ;;  %v1584_v46 = vadd.f32 %v1583_v44, %v3274_v35 }
 0x2f1   :  { %v1756_v47 = vmax.f32 %v1474_v41, 0.0  ;;  %v1792_v15 = vmax.f32 %v1582_v43, 0.0 }
 0x2f2   :  { %v1757_v48 = vmax.f32 %v1476_v45, 0.0  ;;  %v1793_v49 = vmax.f32 %v1584_v46, 0.0  ;;  %v1479_v50 = vpop.f32.mrb[116].mxu0  ;;  %v1587_v51 = vpop.f32.mrb[80].mxu1 }
 0x2f3   :  { %1884 = vst [vmem:[#allocation2 + $0x190] sm:$0xff] %v1756_v47  ;;  %1920 = vst [vmem:[#allocation2 + $0x2b0] sm:$0xff] %v1792_v15  ;;  %v1480_v52 = vadd.f32 %v1479_v50, %v3272_v34  ;;  %v1588_v13 = vadd.f32 %v1587_v51, %v3272_v34  ;;  %v1481_v53 = vpop.f32.mrb[117].mxu0  ;;  %v1589_v54 = vpop.f32.mrb[81].mxu1 }
 0x2f4   :  { %1885 = vst [vmem:[#allocation2 + $0x198] sm:$0xff] %v1757_v48  ;;  %1921 = vst [vmem:[#allocation2 + $0x2b8] sm:$0xff] %v1793_v49  ;;  %v1482_v55 = vadd.f32 %v1481_v53, %v3274_v35  ;;  %v1590_v56 = vadd.f32 %v1589_v54, %v3274_v35 }
 0x2f5   :  { %v1758_v57 = vmax.f32 %v1480_v52, 0.0  ;;  %v1794_v19 = vmax.f32 %v1588_v13, 0.0 }
 0x2f6   :  { %v1759_v58 = vmax.f32 %v1482_v55, 0.0  ;;  %v1795_v59 = vmax.f32 %v1590_v56, 0.0  ;;  %v1485_v60 = vpop.f32.mrb[118].mxu0  ;;  %v1593_v18 = vpop.f32.mrb[82].mxu1 }
 0x2f7   :  { %1886 = vst [vmem:[#allocation2 + $0x1a0] sm:$0xff] %v1758_v57  ;;  %1922 = vst [vmem:[#allocation2 + $0x2c0] sm:$0xff] %v1794_v19  ;;  %v1486_v62 = vadd.f32 %v1485_v60, %v3272_v34  ;;  %v1594_v63 = vadd.f32 %v1593_v18, %v3272_v34  ;;  %v1487_v0 = vpop.f32.mrb[119].mxu0  ;;  %v1595_v22 = vpop.f32.mrb[83].mxu1 }
 0x2f8   :  { %1887 = vst [vmem:[#allocation2 + $0x1a8] sm:$0xff] %v1759_v58  ;;  %1923 = vst [vmem:[#allocation2 + $0x2c8] sm:$0xff] %v1795_v59  ;;  %v1488_v61 = vadd.f32 %v1487_v0, %v3274_v35  ;;  %v1596_v3 = vadd.f32 %v1595_v22, %v3274_v35 }
 0x2f9   :  { %v1760_v21 = vmax.f32 %v1486_v62, 0.0  ;;  %v1796_v4 = vmax.f32 %v1594_v63, 0.0 }
 0x2fa   :  { %v1761_v7 = vmax.f32 %v1488_v61, 0.0  ;;  %v1797_v8 = vmax.f32 %v1596_v3, 0.0  ;;  %v1491_v11 = vpop.f32.mrb[120].mxu0  ;;  %v1599_v2 = vpop.f32.mrb[84].mxu1 }
 0x2fb   :  { %1888 = vst [vmem:[#allocation2 + $0x1b0] sm:$0xff] %v1760_v21  ;;  %1924 = vst [vmem:[#allocation2 + $0x2d0] sm:$0xff] %v1796_v4  ;;  %v1492_v12 = vadd.f32 %v1491_v11, %v3272_v34  ;;  %v1600_v16 = vadd.f32 %v1599_v2, %v3272_v34  ;;  %v1493_v17 = vpop.f32.mrb[121].mxu0  ;;  %v1601_v42 = vpop.f32.mrb[85].mxu1 }
 0x2fc   :  { %1889 = vst [vmem:[#allocation2 + $0x1b8] sm:$0xff] %v1761_v7  ;;  %1925 = vst [vmem:[#allocation2 + $0x2d8] sm:$0xff] %v1797_v8  ;;  %v1494_v1 = vadd.f32 %v1493_v17, %v3274_v35  ;;  %v1602_v20 = vadd.f32 %v1601_v42, %v3274_v35 }
 0x2fd   :  { %v1762_v23 = vmax.f32 %v1492_v12, 0.0  ;;  %v1798_v24 = vmax.f32 %v1600_v16, 0.0 }
 0x2fe   :  { %v1763_v25 = vmax.f32 %v1494_v1, 0.0  ;;  %v1799_v26 = vmax.f32 %v1602_v20, 0.0  ;;  %v1497_v6 = vpop.f32.mrb[122].mxu0  ;;  %v1605_v28 = vpop.f32.mrb[86].mxu1 }
 0x2ff   :  { %1890 = vst [vmem:[#allocation2 + $0x1c0] sm:$0xff] %v1762_v23  ;;  %1926 = vst [vmem:[#allocation2 + $0x2e0] sm:$0xff] %v1798_v24  ;;  %v1498_v29 = vadd.f32 %v1497_v6, %v3272_v34  ;;  %v1606_v30 = vadd.f32 %v1605_v28, %v3272_v34  ;;  %v1499_v31 = vpop.f32.mrb[123].mxu0  ;;  %v1607_v32 = vpop.f32.mrb[87].mxu1 }
 0x300   :  { %1891 = vst [vmem:[#allocation2 + $0x1c8] sm:$0xff] %v1763_v25  ;;  %1927 = vst [vmem:[#allocation2 + $0x2e8] sm:$0xff] %v1799_v26  ;;  %v1500_v5 = vadd.f32 %v1499_v31, %v3274_v35  ;;  %v1608_v33 = vadd.f32 %v1607_v32, %v3274_v35 }
 0x301   :  { %v1764_v36 = vmax.f32 %v1498_v29, 0.0  ;;  %v1800_v14 = vmax.f32 %v1606_v30, 0.0 }
 0x302   :  { %v1765_v37 = vmax.f32 %v1500_v5, 0.0  ;;  %v1801_v27 = vmax.f32 %v1608_v33, 0.0  ;;  %v1503_v10 = vpop.f32.mrb[124].mxu0  ;;  %v1611_v38 = vpop.f32.mrb[88].mxu1 }
 0x303   :  { %1892 = vst [vmem:[#allocation2 + $0x1d0] sm:$0xff] %v1764_v36  ;;  %1928 = vst [vmem:[#allocation2 + $0x2f0] sm:$0xff] %v1800_v14  ;;  %v1504_v39 = vadd.f32 %v1503_v10, %v3272_v34  ;;  %v1612_v40 = vadd.f32 %v1611_v38, %v3272_v34  ;;  %v1505_v41 = vpop.f32.mrb[125].mxu0  ;;  %v1613_v43 = vpop.f32.mrb[89].mxu1 }
 0x304   :  { %1893 = vst [vmem:[#allocation2 + $0x1d8] sm:$0xff] %v1765_v37  ;;  %1929 = vst [vmem:[#allocation2 + $0x2f8] sm:$0xff] %v1801_v27  ;;  %v1506_v9 = vadd.f32 %v1505_v41, %v3274_v35  ;;  %v1614_v44 = vadd.f32 %v1613_v43, %v3274_v35 }
 0x305   :  { %v1766_v45 = vmax.f32 %v1504_v39, 0.0  ;;  %v1802_v46 = vmax.f32 %v1612_v40, 0.0 }
 0x306   :  { %v1767_v47 = vmax.f32 %v1506_v9, 0.0  ;;  %v1803_v15 = vmax.f32 %v1614_v44, 0.0  ;;  %v1509_v48 = vpop.f32.mrb[126].mxu0  ;;  %v1617_v49 = vpop.f32.mrb[90].mxu1 }
 0x307   :  { %1894 = vst [vmem:[#allocation2 + $0x1e0] sm:$0xff] %v1766_v45  ;;  %1930 = vst [vmem:[#allocation2 + $0x300] sm:$0xff] %v1802_v46  ;;  %v1510_v50 = vadd.f32 %v1509_v48, %v3272_v34  ;;  %v1618_v51 = vadd.f32 %v1617_v49, %v3272_v34  ;;  %v1511_v52 = vpop.f32.mrb[127].mxu0  ;;  %v1619_v13 = vpop.f32.mrb[91].mxu1 }
 0x308   :  { %1895 = vst [vmem:[#allocation2 + $0x1e8] sm:$0xff] %v1767_v47  ;;  %1931 = vst [vmem:[#allocation2 + $0x308] sm:$0xff] %v1803_v15  ;;  %v1512_v53 = vadd.f32 %v1511_v52, %v3274_v35  ;;  %v1620_v54 = vadd.f32 %v1619_v13, %v3274_v35 }
 0x309   :  { %v1768_v55 = vmax.f32 %v1510_v50, 0.0  ;;  %v1804_v56 = vmax.f32 %v1618_v51, 0.0 }
 0x30a   :  { %v1769_v57 = vmax.f32 %v1512_v53, 0.0  ;;  %v1805_v19 = vmax.f32 %v1620_v54, 0.0  ;;  %v1515_v58 = vpop.f32.mrb[128].mxu0  ;;  %v1623_v59 = vpop.f32.mrb[92].mxu1 }
 0x30b   :  { %1896 = vst [vmem:[#allocation2 + $0x1f0] sm:$0xff] %v1768_v55  ;;  %1932 = vst [vmem:[#allocation2 + $0x310] sm:$0xff] %v1804_v56  ;;  %v1516_v60 = vadd.f32 %v1515_v58, %v3272_v34  ;;  %v1624_v18 = vadd.f32 %v1623_v59, %v3272_v34  ;;  %v1517_v62 = vpop.f32.mrb[129].mxu0  ;;  %v1625_v63 = vpop.f32.mrb[93].mxu1 }
 0x30c   :  { %1897 = vst [vmem:[#allocation2 + $0x1f8] sm:$0xff] %v1769_v57  ;;  %1933 = vst [vmem:[#allocation2 + $0x318] sm:$0xff] %v1805_v19  ;;  %v1518_v0 = vadd.f32 %v1517_v62, %v3274_v35  ;;  %v1626_v22 = vadd.f32 %v1625_v63, %v3274_v35 }
 0x30d   :  { %v1770_v61 = vmax.f32 %v1516_v60, 0.0  ;;  %v1806_v3 = vmax.f32 %v1624_v18, 0.0 }
 0x30e   :  { %v1771_v21 = vmax.f32 %v1518_v0, 0.0  ;;  %v1807_v4 = vmax.f32 %v1626_v22, 0.0  ;;  %v1521_v7 = vpop.f32.mrb[130].mxu0  ;;  %v1629_v8 = vpop.f32.mrb[94].mxu1 }
 0x30f   :  { %1898 = vst [vmem:[#allocation2 + $0x200] sm:$0xff] %v1770_v61  ;;  %1934 = vst [vmem:[#allocation2 + $0x320] sm:$0xff] %v1806_v3  ;;  %v1522_v11 = vadd.f32 %v1521_v7, %v3272_v34  ;;  %v1630_v2 = vadd.f32 %v1629_v8, %v3272_v34  ;;  %v1523_v12 = vpop.f32.mrb[131].mxu0  ;;  %v1631_v16 = vpop.f32.mrb[95].mxu1 }
 0x310   :  { %1899 = vst [vmem:[#allocation2 + $0x208] sm:$0xff] %v1771_v21  ;;  %1935 = vst [vmem:[#allocation2 + $0x328] sm:$0xff] %v1807_v4  ;;  %v1524_v17 = vadd.f32 %v1523_v12, %v3274_v35  ;;  %v1632_v42 = vadd.f32 %v1631_v16, %v3274_v35 }
 0x311   :  { %v1772_v1 = vmax.f32 %v1522_v11, 0.0  ;;  %v1808_v20 = vmax.f32 %v1630_v2, 0.0 }
 0x312   :  { %v1773_v23 = vmax.f32 %v1524_v17, 0.0  ;;  %v1809_v24 = vmax.f32 %v1632_v42, 0.0  ;;  %v1527_v25 = vpop.f32.mrb[132].mxu0  ;;  %v1635_v26 = vpop.f32.mrb[96].mxu1 }
 0x313   :  { %1900 = vst [vmem:[#allocation2 + $0x210] sm:$0xff] %v1772_v1  ;;  %1936 = vst [vmem:[#allocation2 + $0x330] sm:$0xff] %v1808_v20  ;;  %v1528_v6 = vadd.f32 %v1527_v25, %v3272_v34  ;;  %v1636_v28 = vadd.f32 %v1635_v26, %v3272_v34  ;;  %v1529_v29 = vpop.f32.mrb[133].mxu0  ;;  %v1637_v30 = vpop.f32.mrb[97].mxu1 }
 0x314   :  { %1901 = vst [vmem:[#allocation2 + $0x218] sm:$0xff] %v1773_v23  ;;  %1937 = vst [vmem:[#allocation2 + $0x338] sm:$0xff] %v1809_v24  ;;  %v1530_v31 = vadd.f32 %v1529_v29, %v3274_v35  ;;  %v1638_v32 = vadd.f32 %v1637_v30, %v3274_v35 }
 0x315   :  { %v1774_v5 = vmax.f32 %v1528_v6, 0.0  ;;  %v1810_v33 = vmax.f32 %v1636_v28, 0.0 }
 0x316   :  { %v1775_v36 = vmax.f32 %v1530_v31, 0.0  ;;  %v1811_v14 = vmax.f32 %v1638_v32, 0.0  ;;  %v1533_v37 = vpop.f32.mrb[134].mxu0  ;;  %v1641_v27 = vpop.f32.mrb[98].mxu1 }
 0x317   :  { %1902 = vst [vmem:[#allocation2 + $0x220] sm:$0xff] %v1774_v5  ;;  %1938 = vst [vmem:[#allocation2 + $0x340] sm:$0xff] %v1810_v33  ;;  %v1534_v10 = vadd.f32 %v1533_v37, %v3272_v34  ;;  %v1642_v38 = vadd.f32 %v1641_v27, %v3272_v34  ;;  %v1535_v39 = vpop.f32.mrb[135].mxu0  ;;  %v1643_v40 = vpop.f32.mrb[99].mxu1 }
 0x318   :  { %1903 = vst [vmem:[#allocation2 + $0x228] sm:$0xff] %v1775_v36  ;;  %1939 = vst [vmem:[#allocation2 + $0x348] sm:$0xff] %v1811_v14  ;;  %v1536_v41 = vadd.f32 %v1535_v39, %v3274_v35  ;;  %v1644_v43 = vadd.f32 %v1643_v40, %v3274_v35 }
 0x319   :  { %v1776_v9 = vmax.f32 %v1534_v10, 0.0  ;;  %v1812_v44 = vmax.f32 %v1642_v38, 0.0 }
 0x31a   :  { %v1777_v45 = vmax.f32 %v1536_v41, 0.0  ;;  %v1813_v46 = vmax.f32 %v1644_v43, 0.0  ;;  %v1647_v47 = vpop.f32.mrb[100].mxu1 }
 0x31b   :  { %1904 = vst [vmem:[#allocation2 + $0x230] sm:$0xff] %v1776_v9  ;;  %1940 = vst [vmem:[#allocation2 + $0x350] sm:$0xff] %v1812_v44  ;;  %v1648_v15 = vadd.f32 %v1647_v47, %v3272_v34  ;;  %v1649_v48 = vpop.f32.mrb[101].mxu1 }
 0x31c   :  { %1905 = vst [vmem:[#allocation2 + $0x238] sm:$0xff] %v1777_v45  ;;  %1941 = vst [vmem:[#allocation2 + $0x358] sm:$0xff] %v1813_v46  ;;  %v1650_v49 = vadd.f32 %v1649_v48, %v3274_v35 }
 0x31d   :  { %v1814_v50 = vmax.f32 %v1648_v15, 0.0 }
 0x31e   :  { %v1815_v51 = vmax.f32 %v1650_v49, 0.0  ;;  %v1653_v52 = vpop.f32.mrb[102].mxu1 }
 0x31f   :  { %1942 = vst [vmem:[#allocation2 + $0x360] sm:$0xff] %v1814_v50  ;;  %v1654_v13 = vadd.f32 %v1653_v52, %v3272_v34  ;;  %v1655_v53 = vpop.f32.mrb[103].mxu1 }
 0x320   :  { %1943 = vst [vmem:[#allocation2 + $0x368] sm:$0xff] %v1815_v51  ;;  %v1656_v54 = vadd.f32 %v1655_v53, %v3274_v35 }
 0x321   :  { %v1816_v55 = vmax.f32 %v1654_v13, 0.0 }
 0x322   :  { %v1817_v56 = vmax.f32 %v1656_v54, 0.0  ;;  %v1659_v57 = vpop.f32.mrb[104].mxu1 }
 0x323   :  { %1944 = vst [vmem:[#allocation2 + $0x370] sm:$0xff] %v1816_v55  ;;  %v1660_v19 = vadd.f32 %v1659_v57, %v3272_v34  ;;  %v1661_v58 = vpop.f32.mrb[105].mxu1 }
 0x324   :  { %1945 = vst [vmem:[#allocation2 + $0x378] sm:$0xff] %v1817_v56  ;;  %v1662_v59 = vadd.f32 %v1661_v58, %v3274_v35 }
 0x325   :  { %v1818_v60 = vmax.f32 %v1660_v19, 0.0 }
 0x326   :  { %v1819_v18 = vmax.f32 %v1662_v59, 0.0  ;;  %v1665_v62 = vpop.f32.mrb[106].mxu1 }
 0x327   :  { %1946 = vst [vmem:[#allocation2 + $0x380] sm:$0xff] %v1818_v60  ;;  %v1666_v63 = vadd.f32 %v1665_v62, %v3272_v34  ;;  %v1667_v0 = vpop.f32.mrb[107].mxu1 }
 0x328   :  { %1947 = vst [vmem:[#allocation2 + $0x388] sm:$0xff] %v1819_v18  ;;  %v1668_v22 = vadd.f32 %v1667_v0, %v3274_v35 }
 0x329   :  { %v1820_v61 = vmax.f32 %v1666_v63, 0.0 }
 0x32a   :  { %v1821_v3 = vmax.f32 %v1668_v22, 0.0  ;;  %v1671_v21 = vpop.f32.mrb[108].mxu1 }
 0x32b   :  { %1948 = vst [vmem:[#allocation2 + $0x390] sm:$0xff] %v1820_v61  ;;  %v1672_v4 = vadd.f32 %v1671_v21, %v3272_v34  ;;  %v1673_v7 = vpop.f32.mrb[109].mxu1 }
 0x32c   :  { %1949 = vst [vmem:[#allocation2 + $0x398] sm:$0xff] %v1821_v3  ;;  %v1674_v8 = vadd.f32 %v1673_v7, %v3274_v35 }
 0x32d   :  { %v1822_v11 = vmax.f32 %v1672_v4, 0.0 }
 0x32e   :  { %v1823_v2 = vmax.f32 %v1674_v8, 0.0  ;;  %v1677_v12 = vpop.f32.mrb[110].mxu1 }
 0x32f   :  { %1950 = vst [vmem:[#allocation2 + $0x3a0] sm:$0xff] %v1822_v11  ;;  %v1678_v16 = vadd.f32 %v1677_v12, %v3272_v34  ;;  %v1679_v17 = vpop.f32.mrb[111].mxu1 }
 0x330   :  { %1951 = vst [vmem:[#allocation2 + $0x3a8] sm:$0xff] %v1823_v2  ;;  %v1680_v42 = vadd.f32 %v1679_v17, %v3274_v35 }
 0x331   :  { %v1824_v1 = vmax.f32 %v1678_v16, 0.0 }
 0x332   :  { %v1825_v20 = vmax.f32 %v1680_v42, 0.0  ;;  %v1683_v23 = vpop.f32.mrb[112].mxu1 }
 0x333   :  { %1952 = vst [vmem:[#allocation2 + $0x3b0] sm:$0xff] %v1824_v1  ;;  %v1684_v24 = vadd.f32 %v1683_v23, %v3272_v34  ;;  %v1685_v25 = vpop.f32.mrb[113].mxu1 }
 0x334   :  { %1953 = vst [vmem:[#allocation2 + $0x3b8] sm:$0xff] %v1825_v20  ;;  %v1686_v26 = vadd.f32 %v1685_v25, %v3274_v35 }
 0x335   :  { %v1826_v6 = vmax.f32 %v1684_v24, 0.0 }
 0x336   :  { %v1827_v28 = vmax.f32 %v1686_v26, 0.0  ;;  %v1689_v29 = vpop.f32.mrb[114].mxu1 }
 0x337   :  { %1954 = vst [vmem:[#allocation2 + $0x3c0] sm:$0xff] %v1826_v6  ;;  %v1690_v30 = vadd.f32 %v1689_v29, %v3272_v34  ;;  %v1691_v31 = vpop.f32.mrb[115].mxu1 }
 0x338   :  { %1955 = vst [vmem:[#allocation2 + $0x3c8] sm:$0xff] %v1827_v28  ;;  %v1692_v32 = vadd.f32 %v1691_v31, %v3274_v35 }
 0x339   :  { %v1828_v5 = vmax.f32 %v1690_v30, 0.0 }
 0x33a   :  { %v1829_v33 = vmax.f32 %v1692_v32, 0.0  ;;  %v1695_v36 = vpop.f32.mrb[116].mxu1 }
 0x33b   :  { %1956 = vst [vmem:[#allocation2 + $0x3d0] sm:$0xff] %v1828_v5  ;;  %v1696_v14 = vadd.f32 %v1695_v36, %v3272_v34  ;;  %v1697_v37 = vpop.f32.mrb[117].mxu1 }
 0x33c   :  { %1957 = vst [vmem:[#allocation2 + $0x3d8] sm:$0xff] %v1829_v33  ;;  %v1698_v27 = vadd.f32 %v1697_v37, %v3274_v35 }
 0x33d   :  { %v1830_v10 = vmax.f32 %v1696_v14, 0.0 }
 0x33e   :  { %v1831_v38 = vmax.f32 %v1698_v27, 0.0  ;;  %v1701_v39 = vpop.f32.mrb[118].mxu1 }
 0x33f   :  { %1958 = vst [vmem:[#allocation2 + $0x3e0] sm:$0xff] %v1830_v10  ;;  %v1702_v40 = vadd.f32 %v1701_v39, %v3272_v34  ;;  %v1703_v41 = vpop.f32.mrb[119].mxu1 }
 0x340   :  { %1959 = vst [vmem:[#allocation2 + $0x3e8] sm:$0xff] %v1831_v38  ;;  %v1704_v43 = vadd.f32 %v1703_v41, %v3274_v35 }
 0x341   :  { %v1832_v9 = vmax.f32 %v1702_v40, 0.0 }
 0x342   :  { %v1833_v44 = vmax.f32 %v1704_v43, 0.0 }
 0x343   :  { %1960 = vst [vmem:[#allocation2 + $0x3f0] sm:$0xff] %v1832_v9 }
 0x344   :  { %1961 = vst [vmem:[#allocation2 + $0x3f8] sm:$0xff] %v1833_v44 }
 0x345   :  { %2510 = shalt.err (!%p2507_p4)
}
 0x346   :  { %s2511_s1 = scalar_lea.hbm %s3423_s7, 16384 }
 0x347   :  { %p2512_p5 = scmp.ne.s32.totalorder %s3423_s7, %s2511_s1  ;;  %p2515_p6 = scmp.lt.u32.totalorder %s2511_s1, %s3423_s7 }
 0x349   :  { %p2517_p7 = pnand %p2515_p6, %p2512_p5 }
 0x34b   :  { %2520 = shalt.err (!%p2517_p7)
}
 0x34c   :  { %s2525_s13 = smov 256   ;;  %s2526_s14 = smov 16  }
 0x34d   :  { %1973 = dma.vmem_to_hbm [thread:$0]  %s1968_s29, 16384, %s3423_s7, [#allocation3], %s2525_s13, %s2525_s13, %s2526_s14  }
 0x34e   :  { %2521 = dma.done.wait [#allocation3], 16384  }
 0x34f   :  { %2522 = vsyncadd [#allocation3], 4294950912 }
 0x350   :  { %1977 = vsyncpa [#allocation3], 1 }

</bundles_post_ra>
